<compile_context>
chip_gen: v7x
topology: tpu7x:2x2x1
jax: 0.10.0
libtpu: 0.0.40
codegen_flags: <defaults>
</compile_context>

<pallas_src>
import jax
import jax.numpy as jnp
from jax.experimental import pallas as pl
from jax.experimental.pallas import tpu as pltpu

# ----------------------------------------------------------------------------
# Small-shape configuration consistent with the module's forward semantics.
# ----------------------------------------------------------------------------
BATCH = 2
IMG_C, IMG_H, IMG_W = 3, 16, 16
IMG_FLAT = IMG_C * IMG_H * IMG_W       # 768
SEQ_LEN = 8                            # text sequence length (<= max_seq_len)
PROJ_DIM = 128                         # proj_dim (scaled down from 512, lane-friendly)
NUM_HEADS = 8
HEAD_DIM = PROJ_DIM // NUM_HEADS       # 16
NUM_FUSION_LAYERS = 3                  # FusionBlock(3, ...) -> 3 fusion layers
FFN_DIM = 4 * PROJ_DIM                 # 512
NUM_CLASSES = 9                        # Pipline(..., 9)
HEAD_PAD = 128                         # lane-dense padded logits width
OUT_ROWS = 8                           # sublane-padded logits rows (>= BATCH)
VOCAB = 100
TXT_DIM = 128                          # frozen text-encoder hidden size
LN_EPS = 1e-5


def _layernorm(x, gamma, beta):
    mu = jnp.mean(x, axis=-1, keepdims=True)
    var = jnp.mean((x - mu) ** 2, axis=-1, keepdims=True)
    return (x - mu) * jax.lax.rsqrt(var + LN_EPS) * gamma + beta


# ----------------------------------------------------------------------------
# The single fused forward kernel (grid axis = fusion layer).
# ----------------------------------------------------------------------------
def _fused_forward_kernel(img_ref, wvis_ref, bvis_ref, t_ref,
                          wq_ref, wkv_ref, wo_ref,
                          ln1_ref, w1_ref, bf1_ref, w2_ref, bf2_ref, ln2_ref,
                          whead_ref, bhead_ref, o_ref, x_ref):
    B, S, D, H, Hd = BATCH, SEQ_LEN, PROJ_DIM, NUM_HEADS, HEAD_DIM
    l = pl.program_id(0)

    # ---- first grid step: visual projection + broadcast across the sequence ----
    @pl.when(l == 0)
    def _init():
        I = (jnp.dot(img_ref[...], wvis_ref[...],
                     preferred_element_type=jnp.float32) + bvis_ref[...])       # (B, D)
        # I.unsqueeze(1).expand(-1, S, -1) built directly in VMEM as a (B*S, D) slab.
        x_ref[...] = jnp.concatenate(
            [jnp.broadcast_to(I[b:b + 1, :], (S, D)) for b in range(B)], axis=0)

    # ---- one cross-attention + FFN fusion layer (dropout=0.5 is eval-mode identity) ----
    x = x_ref[...]                                   # (B*S, D) f32, resident across layers
    x_bf = x.astype(jnp.bfloat16)
    t_bf = t_ref[...]                                # (B*S, D) bf16 text stream (constant)

    # Q projection (1/sqrt(Hd) folded into Wq at init) and merged K/V projection.
    q = jnp.dot(x_bf, wq_ref[0], preferred_element_type=jnp.float32)       # (B*S, D)
    kv = jnp.dot(t_bf, wkv_ref[0], preferred_element_type=jnp.float32)     # (B*S, 2D)
    k = kv[:, :D]                                    # 128-lane-aligned slices
    v = kv[:, D:]

    # Batched multi-head cross-attention: stack heads onto the einsum batch axis.
    q3 = q.reshape(B, S, D)
    k3 = k.reshape(B, S, D)
    v3 = v.reshape(B, S, D)
    qhb = jnp.concatenate([q3[:, :, h * Hd:(h + 1) * Hd] for h in range(H)], axis=0)  # (H*B,S,Hd)
    khb = jnp.concatenate([k3[:, :, h * Hd:(h + 1) * Hd] for h in range(H)], axis=0)
    vhb = jnp.concatenate([v3[:, :, h * Hd:(h + 1) * Hd] for h in range(H)], axis=0)

    s = jnp.einsum('bqd,bkd->bqk', qhb, khb,
                   preferred_element_type=jnp.float32)                      # (H*B, S, S)
    s = s - jnp.max(s, axis=-1, keepdims=True)
    p = jnp.exp(s)
    p = p * pl.reciprocal(jnp.sum(p, axis=-1, keepdims=True), approx=True)
    ctx = jnp.einsum('bqk,bkd->bqd', p, vhb,
                     preferred_element_type=jnp.float32)                    # (H*B, S, Hd)

    # Reassemble heads on the lane axis and apply ONE K=128 output projection.
    ctx2d = jnp.concatenate(
        [ctx[h * B:(h + 1) * B].reshape(B * S, Hd) for h in range(H)], axis=-1)  # (B*S, D)
    attn = jnp.dot(ctx2d.astype(jnp.bfloat16), wo_ref[0],
                   preferred_element_type=jnp.float32)

    # residual + layernorm 1 (f32 elementwise)
    ln1 = ln1_ref[0]                                 # (2, D): gamma, beta
    h1 = _layernorm(x + attn, ln1[0:1, :], ln1[1:2, :])

    # feed-forward (bf16 MXU, f32 acc; GELU in f32)
    f = jnp.dot(h1.astype(jnp.bfloat16), w1_ref[0],
                preferred_element_type=jnp.float32) + bf1_ref[0]
    # TODO(synk): PyTorch nn.GELU defaults to exact erf; tanh approximation used here
    #             (exact-erf path has no guaranteed Mosaic lowering).
    f = jax.nn.gelu(f)
    f = jnp.dot(f.astype(jnp.bfloat16), w2_ref[0],
                preferred_element_type=jnp.float32) + bf2_ref[0]

    # residual + layernorm 2; carry the activation to the next grid step
    ln2 = ln2_ref[0]
    x_new = _layernorm(h1 + f, ln2[0:1, :], ln2[1:2, :])
    x_ref[...] = x_new

    # ---- last grid step: Pipline head (mean-pool + Linear), sublane/lane-padded store ----
    @pl.when(l == NUM_FUSION_LAYERS - 1)
    def _head():
        # TODO(synk): Pipline internals not given in the source; implemented as
        #             seq-mean-pool + Linear(proj_dim, 9).
        pooled = jnp.mean(x_new.reshape(B, S, D), axis=1)                   # (B, D)
        pooled8 = jnp.concatenate(
            [pooled, jnp.zeros((OUT_ROWS - B, D), jnp.float32)], axis=0)    # (8, D)
        logits = jnp.dot(pooled8.astype(jnp.bfloat16), whead_ref[...],
                         preferred_element_type=jnp.float32) + bhead_ref[...]  # (8, 128)
        o_ref[...] = logits.astype(o_ref.dtype)


def fused_forward(img_flat, t2d, params):
    def resident(a):                                  # full array, fetched once, stays in VMEM
        nd = a.ndim
        return pl.BlockSpec(a.shape, lambda l, nd=nd: (0,) * nd)

    def per_layer(a):                                 # one layer's slice per grid step
        nd = a.ndim
        return pl.BlockSpec((1,) + a.shape[1:], lambda l, nd=nd: (l,) + (0,) * (nd - 1))

    resid_args = [img_flat, params["w_vis"], params["b_vis"], t2d]
    layer_args = [params["wq"], params["wkv"], params["wo"], params["ln1"],
                  params["w1"], params["bf1"], params["w2"], params["bf2"], params["ln2"]]
    tail_args = [params["w_head"], params["b_head"]]

    in_specs = ([resident(a) for a in resid_args]
                + [per_layer(a) for a in layer_args]
                + [resident(a) for a in tail_args])

    return pl.pallas_call(
        _fused_forward_kernel,
        out_shape=jax.ShapeDtypeStruct((OUT_ROWS, HEAD_PAD), jnp.float32),
        grid=(NUM_FUSION_LAYERS,),
        in_specs=in_specs,
        out_specs=pl.BlockSpec((OUT_ROWS, HEAD_PAD), lambda l: (0, 0)),
        scratch_shapes=[pltpu.VMEM((BATCH * SEQ_LEN, PROJ_DIM), jnp.float32)],
        compiler_params=pltpu.CompilerParams(dimension_semantics=("arbitrary",)),
    )(*resid_args, *layer_args, *tail_args)


# ----------------------------------------------------------------------------
# Deterministic parameter construction (synthetic; mirrors module shapes).
# Matmul weights stored in bf16 (MXU inputs); biases / LN params in f32.
# ----------------------------------------------------------------------------
def init_params(key):
    bf = jnp.bfloat16

    def nrm(k, shape, scale=0.02):
        return scale * jax.random.normal(k, shape, dtype=jnp.float32)

    keys = jax.random.split(key, 8 + NUM_FUSION_LAYERS)

    # Frozen text encoder: embedding + linear proj folded into one projected table at init
    # (the per-forward projection of a frozen encoder is redundant work). Stored bf16.
    emb = nrm(keys[1], (VOCAB, TXT_DIM), scale=0.1)
    w_txt = nrm(keys[2], (TXT_DIM, PROJ_DIM))
    b_txt = jnp.zeros((PROJ_DIM,), jnp.float32)
    emb_proj = (emb @ w_txt + b_txt[None, :]).astype(bf)              # (VOCAB, D) bf16

    attn_scale = 1.0 / (HEAD_DIM ** 0.5)

    wq_l, wkv_l, wo_l, ln1_l, w1_l, bf1_l, w2_l, bf2_l, ln2_l = ([] for _ in range(9))
    for l in range(NUM_FUSION_LAYERS):
        lk = jax.random.split(keys[8 + l], 6)
        # 1/sqrt(head_dim) attention scale folded into Wq (scores identical).
        wq_l.append(nrm(lk[0], (PROJ_DIM, PROJ_DIM)) * attn_scale)
        wkv_l.append(jnp.concatenate([nrm(lk[1], (PROJ_DIM, PROJ_DIM)),
                                      nrm(lk[2], (PROJ_DIM, PROJ_DIM))], axis=1))
        wo_l.append(nrm(lk[3], (PROJ_DIM, PROJ_DIM)))
        ln1_l.append(jnp.stack([jnp.ones((PROJ_DIM,), jnp.float32),
                                jnp.zeros((PROJ_DIM,), jnp.float32)]))
        w1_l.append(nrm(lk[4], (PROJ_DIM, FFN_DIM)))
        bf1_l.append(jnp.zeros((1, FFN_DIM), jnp.float32))
        w2_l.append(nrm(lk[5], (FFN_DIM, PROJ_DIM)))
        bf2_l.append(jnp.zeros((1, PROJ_DIM), jnp.float32))
        ln2_l.append(jnp.stack([jnp.ones((PROJ_DIM,), jnp.float32),
                                jnp.zeros((PROJ_DIM,), jnp.float32)]))

    # classifier head, lane-padded to 128 output columns (zeros beyond class 9)
    w_head = nrm(keys[3], (PROJ_DIM, NUM_CLASSES))
    w_head_pad = jnp.zeros((PROJ_DIM, HEAD_PAD), jnp.float32).at[:, :NUM_CLASSES].set(w_head)
    b_head_pad = jnp.zeros((1, HEAD_PAD), jnp.float32)

    return {
        "w_vis": nrm(keys[0], (IMG_FLAT, PROJ_DIM)).astype(bf),
        "b_vis": jnp.zeros((1, PROJ_DIM), jnp.float32),
        "emb_proj": emb_proj,                                     # frozen, pre-projected, bf16
        "wq": jnp.stack(wq_l).astype(bf),                         # (L, D, D)
        "wkv": jnp.stack(wkv_l).astype(bf),                       # (L, D, 2D)
        "wo": jnp.stack(wo_l).astype(bf),                         # (L, D, D)
        "ln1": jnp.stack(ln1_l),                                  # (L, 2, D)
        "w1": jnp.stack(w1_l).astype(bf),                         # (L, D, F)
        "bf1": jnp.stack(bf1_l),                                  # (L, 1, F)
        "w2": jnp.stack(w2_l).astype(bf),                         # (L, F, D)
        "bf2": jnp.stack(bf2_l),                                  # (L, 1, D)
        "ln2": jnp.stack(ln2_l),                                  # (L, 2, D)
        "w_head": w_head_pad.astype(bf),                          # (D, 128)
        "b_head": b_head_pad,                                     # (1, 128)
    }


# ----------------------------------------------------------------------------
# Full forward pass (mirrors FusionModel.forward).
# ----------------------------------------------------------------------------
def fusion_model_forward(params, image, tokens):
    B = image.shape[0]
    img_flat = image.reshape(B, IMG_FLAT).astype(jnp.bfloat16)     # glue: NCHW flatten + bf16
    T = jnp.take(params["emb_proj"], tokens, axis=0)               # glue: frozen text gather (bf16)
    t2d = T.reshape(B * SEQ_LEN, PROJ_DIM)
    logits_pad = fused_forward(img_flat, t2d, params)              # (8, 128), one kernel
    return logits_pad[:B, :NUM_CLASSES]                            # (B, 9)


if __name__ == "__main__":
    key = jax.random.PRNGKey(0)
    k_param, k_img, k_tok = jax.random.split(key, 3)

    params = init_params(k_param)
    image = jax.random.normal(k_img, (BATCH, IMG_C, IMG_H, IMG_W), dtype=jnp.float32)
    tokens = jax.random.randint(k_tok, (BATCH, SEQ_LEN), 0, VOCAB, dtype=jnp.int32)

    out = fusion_model_forward(params, image, tokens)
    out = jax.block_until_ready(out)
    assert out.shape == (BATCH, NUM_CLASSES), out.shape
    print("KERNEL_OK")
</pallas_src>

<mosaic_0001>
module attributes {stable_mosaic.version = 11 : i64} {
  func.func @_fused_forward_kernel(%arg0: i32, %arg1: memref<2x768xbf16, #tpu.memory_space<vmem>>, %arg2: memref<768x128xbf16, #tpu.memory_space<vmem>>, %arg3: memref<1x128xf32, #tpu.memory_space<vmem>>, %arg4: memref<16x128xbf16, #tpu.memory_space<vmem>>, %arg5: memref<1x128x128xbf16, #tpu.memory_space<vmem>>, %arg6: memref<1x128x256xbf16, #tpu.memory_space<vmem>>, %arg7: memref<1x128x128xbf16, #tpu.memory_space<vmem>>, %arg8: memref<1x2x128xf32, #tpu.memory_space<vmem>>, %arg9: memref<1x128x512xbf16, #tpu.memory_space<vmem>>, %arg10: memref<1x1x512xf32, #tpu.memory_space<vmem>>, %arg11: memref<1x512x128xbf16, #tpu.memory_space<vmem>>, %arg12: memref<1x1x128xf32, #tpu.memory_space<vmem>>, %arg13: memref<1x2x128xf32, #tpu.memory_space<vmem>>, %arg14: memref<128x128xbf16, #tpu.memory_space<vmem>>, %arg15: memref<1x128xf32, #tpu.memory_space<vmem>>, %arg16: memref<8x128xf32, #tpu.memory_space<vmem>>, %arg17: memref<16x128xf32, #tpu.memory_space<vmem>>) attributes {dimension_semantics = [#tpu.dimension_semantics<arbitrary>], iteration_bounds = array<i64: 3>, scalar_prefetch = 0 : i64, scratch_operands = 1 : i64, tpu.core_type = #tpu.core_type<tc>, window_params = [{pipeline_mode = #tpu.pipeline_mode<synchronous>, transform_indices = @transform_0, window_bounds = array<i64: 2, 768>}, {pipeline_mode = #tpu.pipeline_mode<synchronous>, transform_indices = @transform_1, window_bounds = array<i64: 768, 128>}, {pipeline_mode = #tpu.pipeline_mode<synchronous>, transform_indices = @transform_2, window_bounds = array<i64: 1, 128>}, {pipeline_mode = #tpu.pipeline_mode<synchronous>, transform_indices = @transform_3, window_bounds = array<i64: 16, 128>}, {transform_indices = @transform_4, window_bounds = array<i64: 1, 128, 128>}, {transform_indices = @transform_5, window_bounds = array<i64: 1, 128, 256>}, {transform_indices = @transform_6, window_bounds = array<i64: 1, 128, 128>}, {transform_indices = @transform_7, window_bounds = array<i64: 1, 2, 128>}, {transform_indices = @transform_8, window_bounds = array<i64: 1, 128, 512>}, {transform_indices = @transform_9, window_bounds = array<i64: 1, 1, 512>}, {transform_indices = @transform_10, window_bounds = array<i64: 1, 512, 128>}, {transform_indices = @transform_11, window_bounds = array<i64: 1, 1, 128>}, {transform_indices = @transform_12, window_bounds = array<i64: 1, 2, 128>}, {pipeline_mode = #tpu.pipeline_mode<synchronous>, transform_indices = @transform_13, window_bounds = array<i64: 128, 128>}, {pipeline_mode = #tpu.pipeline_mode<synchronous>, transform_indices = @transform_14, window_bounds = array<i64: 1, 128>}, {pipeline_mode = #tpu.pipeline_mode<synchronous>, transform_indices = @transform_15, window_bounds = array<i64: 8, 128>}]} {
    %c0_i32 = arith.constant 0 : i32
    %0 = arith.cmpi eq, %arg0, %c0_i32 : i32
    %1 = arith.extui %0 : i1 to i32
    %c0_i32_0 = arith.constant 0 : i32
    %2 = arith.cmpi ne, %1, %c0_i32_0 : i32
    scf.if %2 {
      %c0_56 = arith.constant 0 : index
      %c0_57 = arith.constant 0 : index
      %164 = vector.load %arg1[%c0_56, %c0_57] : memref<2x768xbf16, #tpu.memory_space<vmem>>, vector<2x768xbf16>
      %c0_58 = arith.constant 0 : index
      %c0_59 = arith.constant 0 : index
      %165 = vector.load %arg2[%c0_58, %c0_59] : memref<768x128xbf16, #tpu.memory_space<vmem>>, vector<768x128xbf16>
      %cst_60 = arith.constant dense<0.000000e+00> : vector<2x128xf32>
      %166 = tpu.matmul %164, %165, %cst_60 {dimension_numbers = #tpu.dot_dimension_numbers<[1], [0], [0], [1], [0, 0, 1, 1], [], []>} : vector<2x768xbf16>, vector<768x128xbf16>, vector<2x128xf32> -> vector<2x128xf32>
      %c0_61 = arith.constant 0 : index
      %c0_62 = arith.constant 0 : index
      %167 = vector.load %arg3[%c0_61, %c0_62] : memref<1x128xf32, #tpu.memory_space<vmem>>, vector<1x128xf32>
      %168 = vector.broadcast %167 : vector<1x128xf32> to vector<2x128xf32>
      %169 = arith.addf %166, %168 : vector<2x128xf32>
      %170 = vector.extract_strided_slice %169 {offsets = [0, 0], sizes = [1, 128], strides = [1, 1]} : vector<2x128xf32> to vector<1x128xf32>
      %171 = vector.shape_cast %170 : vector<1x128xf32> to vector<1x128xf32>
      %172 = vector.broadcast %171 : vector<1x128xf32> to vector<8x128xf32>
      %173 = vector.extract_strided_slice %169 {offsets = [1, 0], sizes = [1, 128], strides = [1, 1]} : vector<2x128xf32> to vector<1x128xf32>
      %174 = vector.shape_cast %173 : vector<1x128xf32> to vector<1x128xf32>
      %175 = vector.broadcast %174 : vector<1x128xf32> to vector<8x128xf32>
      %176 = tpu.concatenate %172, %175 in 0 : vector<8x128xf32>, vector<8x128xf32> -> vector<16x128xf32>
      %c0_63 = arith.constant 0 : index
      %c0_64 = arith.constant 0 : index
      %177 = vector.load %arg17[%c0_63, %c0_64] : memref<16x128xf32, #tpu.memory_space<vmem>>, vector<16x128xf32>
      tpu.vector_store %arg17[%c0_63, %c0_64], %176 {strides = array<i32>} : memref<16x128xf32, #tpu.memory_space<vmem>>, vector<16x128xf32>,
    } else {
    }
    %c0 = arith.constant 0 : index
    %c0_1 = arith.constant 0 : index
    %3 = vector.load %arg17[%c0, %c0_1] : memref<16x128xf32, #tpu.memory_space<vmem>>, vector<16x128xf32>
    %4 = arith.truncf %3 : vector<16x128xf32> to vector<16x128xbf16>
    %c0_2 = arith.constant 0 : index
    %c0_3 = arith.constant 0 : index
    %5 = vector.load %arg4[%c0_2, %c0_3] : memref<16x128xbf16, #tpu.memory_space<vmem>>, vector<16x128xbf16>
    %c0_4 = arith.constant 0 : index
    %c0_5 = arith.constant 0 : index
    %c0_6 = arith.constant 0 : index
    %6 = vector.load %arg5[%c0_4, %c0_5, %c0_6] : memref<1x128x128xbf16, #tpu.memory_space<vmem>>, vector<1x128x128xbf16>
    %7 = vector.shape_cast %6 : vector<1x128x128xbf16> to vector<128x128xbf16>
    %cst = arith.constant dense<0.000000e+00> : vector<16x128xf32>
    %8 = tpu.matmul %4, %7, %cst {dimension_numbers = #tpu.dot_dimension_numbers<[1], [0], [0], [1], [0, 0, 1, 1], [], []>} : vector<16x128xbf16>, vector<128x128xbf16>, vector<16x128xf32> -> vector<16x128xf32>
    %c0_7 = arith.constant 0 : index
    %c0_8 = arith.constant 0 : index
    %c0_9 = arith.constant 0 : index
    %9 = vector.load %arg6[%c0_7, %c0_8, %c0_9] : memref<1x128x256xbf16, #tpu.memory_space<vmem>>, vector<1x128x256xbf16>
    %10 = vector.shape_cast %9 : vector<1x128x256xbf16> to vector<128x256xbf16>
    %cst_10 = arith.constant dense<0.000000e+00> : vector<16x256xf32>
    %11 = tpu.matmul %5, %10, %cst_10 {dimension_numbers = #tpu.dot_dimension_numbers<[1], [0], [0], [1], [0, 0, 1, 1], [], []>} : vector<16x128xbf16>, vector<128x256xbf16>, vector<16x256xf32> -> vector<16x256xf32>
    %12 = vector.extract_strided_slice %11 {offsets = [0, 0], sizes = [16, 128], strides = [1, 1]} : vector<16x256xf32> to vector<16x128xf32>
    %13 = vector.extract_strided_slice %11 {offsets = [0, 128], sizes = [16, 128], strides = [1, 1]} : vector<16x256xf32> to vector<16x128xf32>
    %14 = vector.shape_cast %8 : vector<16x128xf32> to vector<2x8x128xf32>
    %15 = vector.shape_cast %12 : vector<16x128xf32> to vector<2x8x128xf32>
    %16 = vector.shape_cast %13 : vector<16x128xf32> to vector<2x8x128xf32>
    %17 = vector.extract_strided_slice %14 {offsets = [0, 0, 0], sizes = [2, 8, 16], strides = [1, 1, 1]} : vector<2x8x128xf32> to vector<2x8x16xf32>
    %18 = vector.extract_strided_slice %14 {offsets = [0, 0, 16], sizes = [2, 8, 16], strides = [1, 1, 1]} : vector<2x8x128xf32> to vector<2x8x16xf32>
    %19 = vector.extract_strided_slice %14 {offsets = [0, 0, 32], sizes = [2, 8, 16], strides = [1, 1, 1]} : vector<2x8x128xf32> to vector<2x8x16xf32>
    %20 = vector.extract_strided_slice %14 {offsets = [0, 0, 48], sizes = [2, 8, 16], strides = [1, 1, 1]} : vector<2x8x128xf32> to vector<2x8x16xf32>
    %21 = vector.extract_strided_slice %14 {offsets = [0, 0, 64], sizes = [2, 8, 16], strides = [1, 1, 1]} : vector<2x8x128xf32> to vector<2x8x16xf32>
    %22 = vector.extract_strided_slice %14 {offsets = [0, 0, 80], sizes = [2, 8, 16], strides = [1, 1, 1]} : vector<2x8x128xf32> to vector<2x8x16xf32>
    %23 = vector.extract_strided_slice %14 {offsets = [0, 0, 96], sizes = [2, 8, 16], strides = [1, 1, 1]} : vector<2x8x128xf32> to vector<2x8x16xf32>
    %24 = vector.extract_strided_slice %14 {offsets = [0, 0, 112], sizes = [2, 8, 16], strides = [1, 1, 1]} : vector<2x8x128xf32> to vector<2x8x16xf32>
    %25 = tpu.concatenate %17, %18, %19, %20, %21, %22, %23, %24 in 0 : vector<2x8x16xf32>, vector<2x8x16xf32>, vector<2x8x16xf32>, vector<2x8x16xf32>, vector<2x8x16xf32>, vector<2x8x16xf32>, vector<2x8x16xf32>, vector<2x8x16xf32> -> vector<16x8x16xf32>
    %26 = vector.extract_strided_slice %15 {offsets = [0, 0, 0], sizes = [2, 8, 16], strides = [1, 1, 1]} : vector<2x8x128xf32> to vector<2x8x16xf32>
    %27 = vector.extract_strided_slice %15 {offsets = [0, 0, 16], sizes = [2, 8, 16], strides = [1, 1, 1]} : vector<2x8x128xf32> to vector<2x8x16xf32>
    %28 = vector.extract_strided_slice %15 {offsets = [0, 0, 32], sizes = [2, 8, 16], strides = [1, 1, 1]} : vector<2x8x128xf32> to vector<2x8x16xf32>
    %29 = vector.extract_strided_slice %15 {offsets = [0, 0, 48], sizes = [2, 8, 16], strides = [1, 1, 1]} : vector<2x8x128xf32> to vector<2x8x16xf32>
    %30 = vector.extract_strided_slice %15 {offsets = [0, 0, 64], sizes = [2, 8, 16], strides = [1, 1, 1]} : vector<2x8x128xf32> to vector<2x8x16xf32>
    %31 = vector.extract_strided_slice %15 {offsets = [0, 0, 80], sizes = [2, 8, 16], strides = [1, 1, 1]} : vector<2x8x128xf32> to vector<2x8x16xf32>
    %32 = vector.extract_strided_slice %15 {offsets = [0, 0, 96], sizes = [2, 8, 16], strides = [1, 1, 1]} : vector<2x8x128xf32> to vector<2x8x16xf32>
    %33 = vector.extract_strided_slice %15 {offsets = [0, 0, 112], sizes = [2, 8, 16], strides = [1, 1, 1]} : vector<2x8x128xf32> to vector<2x8x16xf32>
    %34 = tpu.concatenate %26, %27, %28, %29, %30, %31, %32, %33 in 0 : vector<2x8x16xf32>, vector<2x8x16xf32>, vector<2x8x16xf32>, vector<2x8x16xf32>, vector<2x8x16xf32>, vector<2x8x16xf32>, vector<2x8x16xf32>, vector<2x8x16xf32> -> vector<16x8x16xf32>
    %35 = vector.extract_strided_slice %16 {offsets = [0, 0, 0], sizes = [2, 8, 16], strides = [1, 1, 1]} : vector<2x8x128xf32> to vector<2x8x16xf32>
    %36 = vector.extract_strided_slice %16 {offsets = [0, 0, 16], sizes = [2, 8, 16], strides = [1, 1, 1]} : vector<2x8x128xf32> to vector<2x8x16xf32>
    %37 = vector.extract_strided_slice %16 {offsets = [0, 0, 32], sizes = [2, 8, 16], strides = [1, 1, 1]} : vector<2x8x128xf32> to vector<2x8x16xf32>
    %38 = vector.extract_strided_slice %16 {offsets = [0, 0, 48], sizes = [2, 8, 16], strides = [1, 1, 1]} : vector<2x8x128xf32> to vector<2x8x16xf32>
    %39 = vector.extract_strided_slice %16 {offsets = [0, 0, 64], sizes = [2, 8, 16], strides = [1, 1, 1]} : vector<2x8x128xf32> to vector<2x8x16xf32>
    %40 = vector.extract_strided_slice %16 {offsets = [0, 0, 80], sizes = [2, 8, 16], strides = [1, 1, 1]} : vector<2x8x128xf32> to vector<2x8x16xf32>
    %41 = vector.extract_strided_slice %16 {offsets = [0, 0, 96], sizes = [2, 8, 16], strides = [1, 1, 1]} : vector<2x8x128xf32> to vector<2x8x16xf32>
    %42 = vector.extract_strided_slice %16 {offsets = [0, 0, 112], sizes = [2, 8, 16], strides = [1, 1, 1]} : vector<2x8x128xf32> to vector<2x8x16xf32>
    %43 = tpu.concatenate %35, %36, %37, %38, %39, %40, %41, %42 in 0 : vector<2x8x16xf32>, vector<2x8x16xf32>, vector<2x8x16xf32>, vector<2x8x16xf32>, vector<2x8x16xf32>, vector<2x8x16xf32>, vector<2x8x16xf32>, vector<2x8x16xf32> -> vector<16x8x16xf32>
    "tpu.trace_start"() <{level = 10 : i32, message = "bqd,bkd->bqk"}> : () -> ()
    %cst_11 = arith.constant dense<0.000000e+00> : vector<16x8x8xf32>
    %44 = tpu.matmul %25, %34, %cst_11 {dimension_numbers = #tpu.dot_dimension_numbers<[2], [2], [1], [1], [0, 0, 0, 1, 1, 1], [0], [0]>} : vector<16x8x16xf32>, vector<16x8x16xf32>, vector<16x8x8xf32> -> vector<16x8x8xf32>
    "tpu.trace_stop"() : () -> ()
    %cst_12 = arith.constant dense<0xFF800000> : vector<16x8xf32>
    %45 = vector.multi_reduction <maximumf>, %44, %cst_12 [2] : vector<16x8x8xf32> to vector<16x8xf32>
    %46 = vector.shape_cast %45 : vector<16x8xf32> to vector<16x8x1xf32>
    %47 = vector.broadcast %46 : vector<16x8x1xf32> to vector<16x8x8xf32>
    %48 = arith.subf %44, %47 : vector<16x8x8xf32>
    %49 = math.exp %48 : vector<16x8x8xf32>
    %cst_13 = arith.constant dense<0.000000e+00> : vector<16x8xf32>
    %50 = vector.multi_reduction <add>, %49, %cst_13 [2] : vector<16x8x8xf32> to vector<16x8xf32>
    %51 = vector.shape_cast %50 : vector<16x8xf32> to vector<16x8x1xf32>
    %52 = tpu.reciprocal %51 {approx = true} : vector<16x8x1xf32> -> vector<16x8x1xf32>
    %53 = vector.broadcast %52 : vector<16x8x1xf32> to vector<16x8x8xf32>
    %54 = arith.mulf %49, %53 : vector<16x8x8xf32>
    "tpu.trace_start"() <{level = 10 : i32, message = "bqk,bkd->bqd"}> : () -> ()
    %cst_14 = arith.constant dense<0.000000e+00> : vector<16x8x16xf32>
    %55 = tpu.matmul %54, %43, %cst_14 {dimension_numbers = #tpu.dot_dimension_numbers<[2], [1], [1], [2], [0, 0, 0, 1, 1, 2], [0], [0]>} : vector<16x8x8xf32>, vector<16x8x16xf32>, vector<16x8x16xf32> -> vector<16x8x16xf32>
    "tpu.trace_stop"() : () -> ()
    %56 = vector.extract_strided_slice %55 {offsets = [0, 0, 0], sizes = [2, 8, 16], strides = [1, 1, 1]} : vector<16x8x16xf32> to vector<2x8x16xf32>
    %57 = vector.shape_cast %56 : vector<2x8x16xf32> to vector<16x16xf32>
    %58 = vector.extract_strided_slice %55 {offsets = [2, 0, 0], sizes = [2, 8, 16], strides = [1, 1, 1]} : vector<16x8x16xf32> to vector<2x8x16xf32>
    %59 = vector.shape_cast %58 : vector<2x8x16xf32> to vector<16x16xf32>
    %60 = vector.extract_strided_slice %55 {offsets = [4, 0, 0], sizes = [2, 8, 16], strides = [1, 1, 1]} : vector<16x8x16xf32> to vector<2x8x16xf32>
    %61 = vector.shape_cast %60 : vector<2x8x16xf32> to vector<16x16xf32>
    %62 = vector.extract_strided_slice %55 {offsets = [6, 0, 0], sizes = [2, 8, 16], strides = [1, 1, 1]} : vector<16x8x16xf32> to vector<2x8x16xf32>
    %63 = vector.shape_cast %62 : vector<2x8x16xf32> to vector<16x16xf32>
    %64 = vector.extract_strided_slice %55 {offsets = [8, 0, 0], sizes = [2, 8, 16], strides = [1, 1, 1]} : vector<16x8x16xf32> to vector<2x8x16xf32>
    %65 = vector.shape_cast %64 : vector<2x8x16xf32> to vector<16x16xf32>
    %66 = vector.extract_strided_slice %55 {offsets = [10, 0, 0], sizes = [2, 8, 16], strides = [1, 1, 1]} : vector<16x8x16xf32> to vector<2x8x16xf32>
    %67 = vector.shape_cast %66 : vector<2x8x16xf32> to vector<16x16xf32>
    %68 = vector.extract_strided_slice %55 {offsets = [12, 0, 0], sizes = [2, 8, 16], strides = [1, 1, 1]} : vector<16x8x16xf32> to vector<2x8x16xf32>
    %69 = vector.shape_cast %68 : vector<2x8x16xf32> to vector<16x16xf32>
    %70 = vector.extract_strided_slice %55 {offsets = [14, 0, 0], sizes = [2, 8, 16], strides = [1, 1, 1]} : vector<16x8x16xf32> to vector<2x8x16xf32>
    %71 = vector.shape_cast %70 : vector<2x8x16xf32> to vector<16x16xf32>
    %72 = tpu.concatenate %57, %59, %61, %63, %65, %67, %69, %71 in 1 : vector<16x16xf32>, vector<16x16xf32>, vector<16x16xf32>, vector<16x16xf32>, vector<16x16xf32>, vector<16x16xf32>, vector<16x16xf32>, vector<16x16xf32> -> vector<16x128xf32>
    %73 = arith.truncf %72 : vector<16x128xf32> to vector<16x128xbf16>
    %c0_15 = arith.constant 0 : index
    %c0_16 = arith.constant 0 : index
    %c0_17 = arith.constant 0 : index
    %74 = vector.load %arg7[%c0_15, %c0_16, %c0_17] : memref<1x128x128xbf16, #tpu.memory_space<vmem>>, vector<1x128x128xbf16>
    %75 = vector.shape_cast %74 : vector<1x128x128xbf16> to vector<128x128xbf16>
    %cst_18 = arith.constant dense<0.000000e+00> : vector<16x128xf32>
    %76 = tpu.matmul %73, %75, %cst_18 {dimension_numbers = #tpu.dot_dimension_numbers<[1], [0], [0], [1], [0, 0, 1, 1], [], []>} : vector<16x128xbf16>, vector<128x128xbf16>, vector<16x128xf32> -> vector<16x128xf32>
    %c0_19 = arith.constant 0 : index
    %c0_20 = arith.constant 0 : index
    %c0_21 = arith.constant 0 : index
    %77 = vector.load %arg8[%c0_19, %c0_20, %c0_21] : memref<1x2x128xf32, #tpu.memory_space<vmem>>, vector<1x2x128xf32>
    %78 = vector.shape_cast %77 : vector<1x2x128xf32> to vector<2x128xf32>
    %79 = arith.addf %3, %76 : vector<16x128xf32>
    %80 = vector.extract_strided_slice %78 {offsets = [0, 0], sizes = [1, 128], strides = [1, 1]} : vector<2x128xf32> to vector<1x128xf32>
    %81 = vector.extract_strided_slice %78 {offsets = [1, 0], sizes = [1, 128], strides = [1, 1]} : vector<2x128xf32> to vector<1x128xf32>
    %cst_22 = arith.constant dense<0.000000e+00> : vector<16xf32>
    %82 = vector.multi_reduction <add>, %79, %cst_22 [1] : vector<16x128xf32> to vector<16xf32>
    %83 = vector.shape_cast %82 : vector<16xf32> to vector<16x1xf32>
    %cst_23 = arith.constant 1.280000e+02 : f32
    %84 = vector.broadcast %cst_23 : f32 to vector<16x1xf32>
    %85 = arith.divf %83, %84 : vector<16x1xf32>
    %86 = vector.broadcast %85 : vector<16x1xf32> to vector<16x128xf32>
    %87 = arith.subf %79, %86 : vector<16x128xf32>
    %88 = arith.mulf %87, %87 : vector<16x128xf32>
    %cst_24 = arith.constant dense<0.000000e+00> : vector<16xf32>
    %89 = vector.multi_reduction <add>, %88, %cst_24 [1] : vector<16x128xf32> to vector<16xf32>
    %90 = vector.shape_cast %89 : vector<16xf32> to vector<16x1xf32>
    %cst_25 = arith.constant 1.280000e+02 : f32
    %91 = vector.broadcast %cst_25 : f32 to vector<16x1xf32>
    %92 = arith.divf %90, %91 : vector<16x1xf32>
    %93 = vector.broadcast %85 : vector<16x1xf32> to vector<16x128xf32>
    %94 = arith.subf %79, %93 : vector<16x128xf32>
    %cst_26 = arith.constant 9.99999974E-6 : f32
    %95 = vector.broadcast %cst_26 : f32 to vector<16x1xf32>
    %96 = arith.addf %92, %95 : vector<16x1xf32>
    %97 = math.rsqrt %96 : vector<16x1xf32>
    %98 = vector.broadcast %97 : vector<16x1xf32> to vector<16x128xf32>
    %99 = arith.mulf %94, %98 : vector<16x128xf32>
    %100 = vector.broadcast %80 : vector<1x128xf32> to vector<16x128xf32>
    %101 = arith.mulf %99, %100 : vector<16x128xf32>
    %102 = vector.broadcast %81 : vector<1x128xf32> to vector<16x128xf32>
    %103 = arith.addf %101, %102 : vector<16x128xf32>
    %104 = arith.truncf %103 : vector<16x128xf32> to vector<16x128xbf16>
    %c0_27 = arith.constant 0 : index
    %c0_28 = arith.constant 0 : index
    %c0_29 = arith.constant 0 : index
    %105 = vector.load %arg9[%c0_27, %c0_28, %c0_29] : memref<1x128x512xbf16, #tpu.memory_space<vmem>>, vector<1x128x512xbf16>
    %106 = vector.shape_cast %105 : vector<1x128x512xbf16> to vector<128x512xbf16>
    %cst_30 = arith.constant dense<0.000000e+00> : vector<16x512xf32>
    %107 = tpu.matmul %104, %106, %cst_30 {dimension_numbers = #tpu.dot_dimension_numbers<[1], [0], [0], [1], [0, 0, 1, 1], [], []>} : vector<16x128xbf16>, vector<128x512xbf16>, vector<16x512xf32> -> vector<16x512xf32>
    %c0_31 = arith.constant 0 : index
    %c0_32 = arith.constant 0 : index
    %c0_33 = arith.constant 0 : index
    %108 = vector.load %arg10[%c0_31, %c0_32, %c0_33] : memref<1x1x512xf32, #tpu.memory_space<vmem>>, vector<1x1x512xf32>
    %109 = vector.shape_cast %108 : vector<1x1x512xf32> to vector<1x512xf32>
    %110 = vector.broadcast %109 : vector<1x512xf32> to vector<16x512xf32>
    %111 = arith.addf %107, %110 : vector<16x512xf32>
    %112 = arith.mulf %111, %111 : vector<16x512xf32>
    %113 = arith.mulf %111, %112 : vector<16x512xf32>
    %cst_34 = arith.constant 4.471500e-02 : f32
    %114 = vector.broadcast %cst_34 : f32 to vector<16x512xf32>
    %115 = arith.mulf %114, %113 : vector<16x512xf32>
    %116 = arith.addf %111, %115 : vector<16x512xf32>
    %cst_35 = arith.constant 0.797884583 : f32
    %117 = vector.broadcast %cst_35 : f32 to vector<16x512xf32>
    %118 = arith.mulf %117, %116 : vector<16x512xf32>
    %119 = math.tanh %118 : vector<16x512xf32>
    %cst_36 = arith.constant 1.000000e+00 : f32
    %120 = vector.broadcast %cst_36 : f32 to vector<16x512xf32>
    %121 = arith.addf %120, %119 : vector<16x512xf32>
    %cst_37 = arith.constant 5.000000e-01 : f32
    %122 = vector.broadcast %cst_37 : f32 to vector<16x512xf32>
    %123 = arith.mulf %122, %121 : vector<16x512xf32>
    %124 = arith.mulf %111, %123 : vector<16x512xf32>
    %125 = arith.truncf %124 : vector<16x512xf32> to vector<16x512xbf16>
    %c0_38 = arith.constant 0 : index
    %c0_39 = arith.constant 0 : index
    %c0_40 = arith.constant 0 : index
    %126 = vector.load %arg11[%c0_38, %c0_39, %c0_40] : memref<1x512x128xbf16, #tpu.memory_space<vmem>>, vector<1x512x128xbf16>
    %127 = vector.shape_cast %126 : vector<1x512x128xbf16> to vector<512x128xbf16>
    %cst_41 = arith.constant dense<0.000000e+00> : vector<16x128xf32>
    %128 = tpu.matmul %125, %127, %cst_41 {dimension_numbers = #tpu.dot_dimension_numbers<[1], [0], [0], [1], [0, 0, 1, 1], [], []>} : vector<16x512xbf16>, vector<512x128xbf16>, vector<16x128xf32> -> vector<16x128xf32>
    %c0_42 = arith.constant 0 : index
    %c0_43 = arith.constant 0 : index
    %c0_44 = arith.constant 0 : index
    %129 = vector.load %arg12[%c0_42, %c0_43, %c0_44] : memref<1x1x128xf32, #tpu.memory_space<vmem>>, vector<1x1x128xf32>
    %130 = vector.shape_cast %129 : vector<1x1x128xf32> to vector<1x128xf32>
    %131 = vector.broadcast %130 : vector<1x128xf32> to vector<16x128xf32>
    %132 = arith.addf %128, %131 : vector<16x128xf32>
    %c0_45 = arith.constant 0 : index
    %c0_46 = arith.constant 0 : index
    %c0_47 = arith.constant 0 : index
    %133 = vector.load %arg13[%c0_45, %c0_46, %c0_47] : memref<1x2x128xf32, #tpu.memory_space<vmem>>, vector<1x2x128xf32>
    %134 = vector.shape_cast %133 : vector<1x2x128xf32> to vector<2x128xf32>
    %135 = arith.addf %103, %132 : vector<16x128xf32>
    %136 = vector.extract_strided_slice %134 {offsets = [0, 0], sizes = [1, 128], strides = [1, 1]} : vector<2x128xf32> to vector<1x128xf32>
    %137 = vector.extract_strided_slice %134 {offsets = [1, 0], sizes = [1, 128], strides = [1, 1]} : vector<2x128xf32> to vector<1x128xf32>
    %cst_48 = arith.constant dense<0.000000e+00> : vector<16xf32>
    %138 = vector.multi_reduction <add>, %135, %cst_48 [1] : vector<16x128xf32> to vector<16xf32>
    %139 = vector.shape_cast %138 : vector<16xf32> to vector<16x1xf32>
    %cst_49 = arith.constant 1.280000e+02 : f32
    %140 = vector.broadcast %cst_49 : f32 to vector<16x1xf32>
    %141 = arith.divf %139, %140 : vector<16x1xf32>
    %142 = vector.broadcast %141 : vector<16x1xf32> to vector<16x128xf32>
    %143 = arith.subf %135, %142 : vector<16x128xf32>
    %144 = arith.mulf %143, %143 : vector<16x128xf32>
    %cst_50 = arith.constant dense<0.000000e+00> : vector<16xf32>
    %145 = vector.multi_reduction <add>, %144, %cst_50 [1] : vector<16x128xf32> to vector<16xf32>
    %146 = vector.shape_cast %145 : vector<16xf32> to vector<16x1xf32>
    %cst_51 = arith.constant 1.280000e+02 : f32
    %147 = vector.broadcast %cst_51 : f32 to vector<16x1xf32>
    %148 = arith.divf %146, %147 : vector<16x1xf32>
    %149 = vector.broadcast %141 : vector<16x1xf32> to vector<16x128xf32>
    %150 = arith.subf %135, %149 : vector<16x128xf32>
    %cst_52 = arith.constant 9.99999974E-6 : f32
    %151 = vector.broadcast %cst_52 : f32 to vector<16x1xf32>
    %152 = arith.addf %148, %151 : vector<16x1xf32>
    %153 = math.rsqrt %152 : vector<16x1xf32>
    %154 = vector.broadcast %153 : vector<16x1xf32> to vector<16x128xf32>
    %155 = arith.mulf %150, %154 : vector<16x128xf32>
    %156 = vector.broadcast %136 : vector<1x128xf32> to vector<16x128xf32>
    %157 = arith.mulf %155, %156 : vector<16x128xf32>
    %158 = vector.broadcast %137 : vector<1x128xf32> to vector<16x128xf32>
    %159 = arith.addf %157, %158 : vector<16x128xf32>
    %c0_53 = arith.constant 0 : index
    %c0_54 = arith.constant 0 : index
    %160 = vector.load %arg17[%c0_53, %c0_54] : memref<16x128xf32, #tpu.memory_space<vmem>>, vector<16x128xf32>
    tpu.vector_store %arg17[%c0_53, %c0_54], %159 {strides = array<i32>} : memref<16x128xf32, #tpu.memory_space<vmem>>, vector<16x128xf32>,
    %c2_i32 = arith.constant 2 : i32
    %161 = arith.cmpi eq, %arg0, %c2_i32 : i32
    %162 = arith.extui %161 : i1 to i32
    %c0_i32_55 = arith.constant 0 : i32
    %163 = arith.cmpi ne, %162, %c0_i32_55 : i32
    scf.if %163 {
      %164 = vector.shape_cast %159 : vector<16x128xf32> to vector<2x8x128xf32>
      %cst_56 = arith.constant dense<0.000000e+00> : vector<2x128xf32>
      %165 = vector.multi_reduction <add>, %164, %cst_56 [1] : vector<2x8x128xf32> to vector<2x128xf32>
      %cst_57 = arith.constant 8.000000e+00 : f32
      %166 = vector.broadcast %cst_57 : f32 to vector<2x128xf32>
      %167 = arith.divf %165, %166 : vector<2x128xf32>
      %cst_58 = arith.constant 0.000000e+00 : f32
      %168 = vector.broadcast %cst_58 : f32 to vector<6x128xf32>
      %169 = tpu.concatenate %167, %168 in 0 : vector<2x128xf32>, vector<6x128xf32> -> vector<8x128xf32>
      %170 = arith.truncf %169 : vector<8x128xf32> to vector<8x128xbf16>
      %c0_59 = arith.constant 0 : index
      %c0_60 = arith.constant 0 : index
      %171 = vector.load %arg14[%c0_59, %c0_60] : memref<128x128xbf16, #tpu.memory_space<vmem>>, vector<128x128xbf16>
      %cst_61 = arith.constant dense<0.000000e+00> : vector<8x128xf32>
      %172 = tpu.matmul %170, %171, %cst_61 {dimension_numbers = #tpu.dot_dimension_numbers<[1], [0], [0], [1], [0, 0, 1, 1], [], []>} : vector<8x128xbf16>, vector<128x128xbf16>, vector<8x128xf32> -> vector<8x128xf32>
      %c0_62 = arith.constant 0 : index
      %c0_63 = arith.constant 0 : index
      %173 = vector.load %arg15[%c0_62, %c0_63] : memref<1x128xf32, #tpu.memory_space<vmem>>, vector<1x128xf32>
      %174 = vector.broadcast %173 : vector<1x128xf32> to vector<8x128xf32>
      %175 = arith.addf %172, %174 : vector<8x128xf32>
      %c0_64 = arith.constant 0 : index
      %c0_65 = arith.constant 0 : index
      %176 = vector.load %arg16[%c0_64, %c0_65] : memref<8x128xf32, #tpu.memory_space<vmem>>, vector<8x128xf32>
      tpu.vector_store %arg16[%c0_64, %c0_65], %175 {strides = array<i32>} : memref<8x128xf32, #tpu.memory_space<vmem>>, vector<8x128xf32>,
    } else {
    }
    return
  }
  func.func @transform_0(%arg0: i32) -> (i32, i32) {
    %c0_i32 = arith.constant 0 : i32
    %c0_i32_0 = arith.constant 0 : i32
    %c0_i32_1 = arith.constant 0 : i32
    return %c0_i32, %c0_i32_0 : i32, i32
  }
  func.func @transform_1(%arg0: i32) -> (i32, i32) {
    %c0_i32 = arith.constant 0 : i32
    %c0_i32_0 = arith.constant 0 : i32
    %c0_i32_1 = arith.constant 0 : i32
    return %c0_i32, %c0_i32_0 : i32, i32
  }
  func.func @transform_2(%arg0: i32) -> (i32, i32) {
    %c0_i32 = arith.constant 0 : i32
    %c0_i32_0 = arith.constant 0 : i32
    %c0_i32_1 = arith.constant 0 : i32
    return %c0_i32, %c0_i32_0 : i32, i32
  }
  func.func @transform_3(%arg0: i32) -> (i32, i32) {
    %c0_i32 = arith.constant 0 : i32
    %c0_i32_0 = arith.constant 0 : i32
    %c0_i32_1 = arith.constant 0 : i32
    return %c0_i32, %c0_i32_0 : i32, i32
  }
  func.func @transform_4(%arg0: i32) -> (i32, i32, i32) {
    %c0_i32 = arith.constant 0 : i32
    %c0_i32_0 = arith.constant 0 : i32
    %c0_i32_1 = arith.constant 0 : i32
    return %arg0, %c0_i32, %c0_i32_0 : i32, i32, i32
  }
  func.func @transform_5(%arg0: i32) -> (i32, i32, i32) {
    %c0_i32 = arith.constant 0 : i32
    %c0_i32_0 = arith.constant 0 : i32
    %c0_i32_1 = arith.constant 0 : i32
    return %arg0, %c0_i32, %c0_i32_0 : i32, i32, i32
  }
  func.func @transform_6(%arg0: i32) -> (i32, i32, i32) {
    %c0_i32 = arith.constant 0 : i32
    %c0_i32_0 = arith.constant 0 : i32
    %c0_i32_1 = arith.constant 0 : i32
    return %arg0, %c0_i32, %c0_i32_0 : i32, i32, i32
  }
  func.func @transform_7(%arg0: i32) -> (i32, i32, i32) {
    %c0_i32 = arith.constant 0 : i32
    %c0_i32_0 = arith.constant 0 : i32
    %c0_i32_1 = arith.constant 0 : i32
    return %arg0, %c0_i32, %c0_i32_0 : i32, i32, i32
  }
  func.func @transform_8(%arg0: i32) -> (i32, i32, i32) {
    %c0_i32 = arith.constant 0 : i32
    %c0_i32_0 = arith.constant 0 : i32
    %c0_i32_1 = arith.constant 0 : i32
    return %arg0, %c0_i32, %c0_i32_0 : i32, i32, i32
  }
  func.func @transform_9(%arg0: i32) -> (i32, i32, i32) {
    %c0_i32 = arith.constant 0 : i32
    %c0_i32_0 = arith.constant 0 : i32
    %c0_i32_1 = arith.constant 0 : i32
    return %arg0, %c0_i32, %c0_i32_0 : i32, i32, i32
  }
  func.func @transform_10(%arg0: i32) -> (i32, i32, i32) {
    %c0_i32 = arith.constant 0 : i32
    %c0_i32_0 = arith.constant 0 : i32
    %c0_i32_1 = arith.constant 0 : i32
    return %arg0, %c0_i32, %c0_i32_0 : i32, i32, i32
  }
  func.func @transform_11(%arg0: i32) -> (i32, i32, i32) {
    %c0_i32 = arith.constant 0 : i32
    %c0_i32_0 = arith.constant 0 : i32
    %c0_i32_1 = arith.constant 0 : i32
    return %arg0, %c0_i32, %c0_i32_0 : i32, i32, i32
  }
  func.func @transform_12(%arg0: i32) -> (i32, i32, i32) {
    %c0_i32 = arith.constant 0 : i32
    %c0_i32_0 = arith.constant 0 : i32
    %c0_i32_1 = arith.constant 0 : i32
    return %arg0, %c0_i32, %c0_i32_0 : i32, i32, i32
  }
  func.func @transform_13(%arg0: i32) -> (i32, i32) {
    %c0_i32 = arith.constant 0 : i32
    %c0_i32_0 = arith.constant 0 : i32
    %c0_i32_1 = arith.constant 0 : i32
    return %c0_i32, %c0_i32_0 : i32, i32
  }
  func.func @transform_14(%arg0: i32) -> (i32, i32) {
    %c0_i32 = arith.constant 0 : i32
    %c0_i32_0 = arith.constant 0 : i32
    %c0_i32_1 = arith.constant 0 : i32
    return %c0_i32, %c0_i32_0 : i32, i32
  }
  func.func @transform_15(%arg0: i32) -> (i32, i32) {
    %c0_i32 = arith.constant 0 : i32
    %c0_i32_0 = arith.constant 0 : i32
    %c0_i32_1 = arith.constant 0 : i32
    return %c0_i32, %c0_i32_0 : i32, i32
  }
}

</mosaic_0001>

<bundles_post_ra>
// kernel: tpu_custom_call.1
= control target key start
LH: loop header
LB: loop body
LE: loop exit
PB: predicated region body
PF: predicated region fallthrough
CT: control target
= control target key end

     0   :  { %s8238_s0 = inlined_call_operand.hbm [shape: bf16[2,768], index: 0, kind: input, shape index: {}]   ;;  %s8239_s1 = inlined_call_operand.hbm [shape: bf16[768,128], index: 1, kind: input, shape index: {}]   ;;  %s8240_s2 = inlined_call_operand.hbm [shape: f32[1,128], index: 2, kind: input, shape index: {}]   ;;  %s8241_s3 = inlined_call_operand.vmem [shape: bf16[16,128], index: 3, kind: input, shape index: {}]   ;;  %s8242_s4 = inlined_call_operand.hbm [shape: bf16[3,128,128], index: 4, kind: input, shape index: {}]   ;;  %s8243_s5 = inlined_call_operand.hbm [shape: bf16[3,128,256], index: 5, kind: input, shape index: {}]   ;;  %s8244_s6 = inlined_call_operand.hbm [shape: bf16[3,128,128], index: 6, kind: input, shape index: {}]   ;;  %s8245_s7 = inlined_call_operand.vmem [shape: f32[3,2,128], index: 7, kind: input, shape index: {}]   ;;  %s8246_s8 = inlined_call_operand.hbm [shape: bf16[3,128,512], index: 8, kind: input, shape index: {}]   ;;  %s8247_s9 = inlined_call_operand.vmem [shape: f32[3,1,512], index: 9, kind: input, shape index: {}]   ;;  %s8248_s10 = inlined_call_operand.hbm [shape: bf16[3,512,128], index: 10, kind: input, shape index: {}]   ;;  %s8249_s11 = inlined_call_operand.vmem [shape: f32[3,1,128], index: 11, kind: input, shape index: {}]   ;;  %s8250_s12 = inlined_call_operand.vmem [shape: f32[3,2,128], index: 12, kind: input, shape index: {}]   ;;  %s8251_s13 = inlined_call_operand.hbm [shape: bf16[128,128], index: 13, kind: input, shape index: {}]   ;;  %s8252_s14 = inlined_call_operand.vmem [shape: f32[1,128], index: 14, kind: input, shape index: {}]   ;;  %s8253_s15 = inlined_call_operand.hbm [shape: f32[8,128], index: 15, kind: output, shape index: {}]  }
   0x1   :  { %8277 = sst [smem:[#allocation30_spill]] %s8238_s0 }
   0x2   :  { %8278 = sst [smem:[#allocation31_spill]] %s8239_s1 }
   0x3   :  { %8279 = sst [smem:[#allocation32_spill]] %s8241_s3 }
   0x4   :  { %8280 = sst [smem:[#allocation33_spill]] %s8242_s4 }
   0x5   :  { %8281 = sst [smem:[#allocation34_spill]] %s8245_s7 }
   0x6   :  { %8282 = sst [smem:[#allocation35_spill]] %s8247_s9 }
   0x7   :  { %8283 = sst [smem:[#allocation36_spill]] %s8249_s11 }
   0x8   :  { %8284 = sst [smem:[#allocation37_spill]] %s8250_s12 }
   0x9   :  { %8285 = sst [smem:[#allocation38_spill]] %s8251_s13 }
   0xa   :  { %8286 = sst [smem:[#allocation39_spill]] %s8252_s14 }
   0xb   :  { %8287 = sst [smem:[#allocation40_spill]] %s8253_s15 }
   0xc   :  { %20 = vsyncpa [#allocation4], 0 }
   0xd   :  { %21 = vsyncpa [#allocation7], 0 }
   0xe   :  { %22 = vsyncpa [#allocation10], 0 }
   0xf   :  { %24 = vsyncpa [#allocation10 + $0x1], 0 }
  0x10   :  { %25 = vsyncpa [#allocation13], 0 }
  0x11   :  { %27 = vsyncpa [#allocation13 + $0x1], 0 }
  0x12   :  { %28 = vsyncpa [#allocation16], 0 }
  0x13   :  { %30 = vsyncpa [#allocation16 + $0x1], 0 }
  0x14   :  { %31 = vsyncpa [#allocation5], 0  ;;  %s7152_s18 = smov 0   ;;  %s7154_s19 = smov 0  }
  0x15   :  { %s7156_s20 = smov 0   ;;  %s7158_s21 = smov 0  }
  0x16 LB: > { %8288 = sst [smem:[#allocation26_spill]] %s7037_s20  ;;  %s7171_s22 = sadd.s32 4294967295, %s7041_s21   ;;  %s7041_s21 = sphi %s7158_s21, %s8330_s21   ;;  %s7037_s20 = sphi %s7156_s20, %s8332_s20   ;;  %s7033_s19 = sphi %s7154_s19, %s8334_s19   ;;  %s7029_s18 = sphi %s7152_s18, %s8333_s18  }
  0x17   : > { %p141_p0 = scmp.ne.s32.totalorder %s7033_s19, %s7029_s18  ;;  %p8255_p1 = scmp.eq.s32.totalorder %s7171_s22, 0 }
  0x18   : > { %p5593_p2 = scmp.ge.s32.totalorder %s7041_s21, 1  ;;  %p423_p3 = scmp.lt.s32.totalorder %s7041_s21, 4 }
  0x19   : > { %p7180_p5 = por %p8255_p1, %p141_p0  ;;  %s7043_s25 = smov [#allocation6]  }
  0x1a   : > { %p7184_p6 = pnand %p5593_p2, %p423_p3  ;;  %s446_s26 = sshll.u32 %s7043_s25, 4  ;;  %s447_s26 = int_to_ptr.vmem [resolvable:$true] %s446_s26 }
  0x1b   : > { %s8289_s23 = scalar_select %p7180_p5, 1, 0 }
  0x1c   : > { %s8291_s24 = scalar_select %p7184_p6, 1, 0 }
  0x1d   : > { %8290 = sst [smem:[#allocation27_spill]] %s8289_s23  ;;  %p6296_p7 = pneg %p7184_p6 }
  0x1e   : > { %s7044_s28 = smov [#allocation17]   ;;  %s8293_s1 = sld [smem:[#allocation31_spill]] }
  0x1f   : > { %p7192_p8 = pnand %p6296_p7, %p8255_p1  ;;  %s473_s29 = sshll.u32 %s7044_s28, 4  ;;  %s7196_s29 = int_to_ptr.vmem [resolvable:$true] %s473_s29 }
  0x21   : > { %s8292_s27 = scalar_select %p7192_p8, 1, 0 }
  0x22   : > { %p7206_p10 = pneg %p7192_p8 }
  0x24   : > { %s6695_s17 = scalar_lea.hbm %s8293_s1, 6144 }
  0x25   : > { %p6696_p9 = scmp.ne.s32.totalorder %s8293_s1, %s6695_s17  ;;  %p6702_p13 = scmp.lt.u32.totalorder %s6695_s17, %s8293_s1 }
  0x26   : > { %s8294_s25 = scalar_select %p7206_p10, 1, 0 }
  0x27   : > { %p6698_p11 = pnand %p7206_p10, %p6696_p9 }
  0x29   : > { %p6699_p12 = pneg %p6698_p11 }
  0x2b   : > { %p6704_p0 = pnand %p6702_p13, %p6699_p12 }
  0x2d   : > { %6707 = shalt.err (!%p6704_p0)
}
  0x2e   : > { %s6708_s30 = scalar_lea.vmem %s447_s26, 6144  ;;  %p6716_p4 = scmp.lt.s32.totalorder %s447_s26, %s447_s26 }
  0x2f   : > { %p6709_p2 = scmp.ne.s32.totalorder %s447_s26, %s6708_s30  ;;  %p6717_p1 = scmp.lt.s32.totalorder %s6708_s30, %s6708_s30 }
  0x31   : > { %p6711_p3 = pnand %p6709_p2, %p7206_p10  ;;  %p6718_p5 = por %p6717_p1, %p6716_p4 }
  0x33   : > { %p6712_p7 = pneg %p6711_p3 }
  0x35   : > { %p6719_p6 = pnand %p6718_p5, %p6712_p7 }
  0x37   : > { %6722 = shalt.err (!%p6719_p6)
}
  0x38   : > { %s8258_s15 = smov 64   ;;  %s8260_s16 = smov 4  }
  0x39   : > { %6302 = dma.hbm_to_vmem [thread:$0]  (!%p7192_p8), %s8293_s1, 6144, %s447_s26, [#allocation7], %s8258_s15, %s8258_s15, %s8260_s16  }
  0x3a   : > { %s8295_s13 = sld [smem:[#allocation38_spill]] }
  0x40   : > { %s6723_s3 = scalar_lea.hbm %s8295_s13, 1024 }
  0x41   : > { %p6724_p1 = scmp.ne.s32.totalorder %s8295_s13, %s6723_s3  ;;  %p6730_p6 = scmp.lt.u32.totalorder %s6723_s3, %s8295_s13 }
  0x43   : > { %p6726_p4 = pnand %p6724_p1, %p7206_p10 }
  0x45   : > { %p6727_p5 = pneg %p6726_p4 }
  0x47   : > { %p6732_p9 = pnand %p6730_p6, %p6727_p5 }
  0x49   : > { %6735 = shalt.err (!%p6732_p9)
}
  0x4a   : > { %s6736_s26 = scalar_lea.vmem %s7196_s29, 1024  ;;  %p6744_p0 = scmp.lt.s32.totalorder %s7196_s29, %s7196_s29 }
  0x4b   : > { %p6737_p11 = scmp.ne.s32.totalorder %s7196_s29, %s6736_s26  ;;  %p6745_p2 = scmp.lt.s32.totalorder %s6736_s26, %s6736_s26 }
  0x4d   : > { %p6739_p12 = pnand %p6737_p11, %p7206_p10  ;;  %p6746_p3 = por %p6745_p2, %p6744_p0 }
  0x4f   : > { %p6740_p13 = pneg %p6739_p12 }
  0x51   : > { %p6747_p7 = pnand %p6746_p3, %p6740_p13 }
  0x53   : > { %6750 = shalt.err (!%p6747_p7)
}
  0x54   : > { %6308 = dma.hbm_to_vmem [thread:$0]  (!%p7192_p8), %s8295_s13, 1024, %s7196_s29, [#allocation16], %s8258_s15, %s8258_s15, %s8260_s16  }
  0x55   : > { %s7252_s11 = sadd.s32 1, %s7041_s21   ;;  %s128_s12 = sadd.s32 1, %s7037_s20 }
  0x56   : > { %8296 = sst [smem:[#allocation28_spill]] %s7252_s11  ;;  %s125_s14 = ssub.s32 %s7041_s21, %s7252_s11 }
  0x57   : > { %p135_p1 = scmp.ne.s32.totalorder %s7037_s20, %s7033_s19  ;;  %p126_p4 = scmp.eq.s32.totalorder %s125_s14, 0 }
  0x58   : > { %p136_p5 = scmp.eq.s32.totalorder %s7041_s21, 0  ;;  %p6329_p6 = scmp.lt.s32.totalorder %s7041_s21, 3 }
  0x59   : > { %s7262_s17 = sand.u32 1, %s7041_s21   ;;  %s7268_s28 = sand.u32 1, %s7037_s20  }
  0x5a   : > { %s7265_s18 = scalar_select %p126_p4, %s7037_s20, %s128_s12  }
  0x5b   : > { %p137_p9 = por %p136_p5, %p135_p1  ;;  %s8262_s29 = sshll.u32 %s7041_s21, 10 }
  0x5c   : > { %8297 = sst [smem:[#allocation29_spill]] %s7265_s18  ;;  %s8263_s30 = sshll.u32 %s7268_s28, 6 }
  0x5d   : > { %s8298_s4 = sld [smem:[#allocation33_spill]]  ;;  %p7279_p11 = pnand %p6329_p6, %p137_p9 }
  0x5e   : > { %s494_s14 = scalar_lea.vmem [#allocation9], %s8263_s30 }
  0x5f   : > { %s8299_s12 = scalar_select %p7279_p11, 1, 0 }
  0x60   : > { %s501_s15 = sshll.u32 %s494_s14, 4  ;;  %p7292_p13 = pneg %p7279_p11  ;;  %s7285_s15 = int_to_ptr.vmem [resolvable:$true] %s501_s15 }
  0x62   : > { %s8300_s26 = scalar_select %p7292_p13, 1, 0 }
  0x63   : > { %s7277_s9 = scalar_lea.hbm %s8298_s4, %s8262_s29  ;;  %s6756_s13 = scalar_lea.hbm %s8298_s4, 3072 }
  0x64   : > { %s6751_s1 = scalar_lea.hbm %s7277_s9, 1024  ;;  %p6757_p3 = scmp.lt.u32.totalorder %s7277_s9, %s8298_s4 }
  0x65   : > { %p6752_p12 = scmp.ne.s32.totalorder %s7277_s9, %s6751_s1  ;;  %p6758_p7 = scmp.lt.u32.totalorder %s6756_s13, %s6751_s1 }
  0x66   : > { %p6760_p4 = scmp.lt.u32.totalorder %s6751_s1, %s7277_s9 }
  0x67   : > { %p6754_p0 = pnand %p7292_p13, %p6752_p12  ;;  %p6759_p1 = por %p6758_p7, %p6757_p3 }
  0x69   : > { %p6755_p2 = pneg %p6754_p0  ;;  %p6761_p5 = por %p6760_p4, %p6759_p1 }
  0x6b   : > { %p6762_p6 = pnand %p6761_p5, %p6755_p2 }
  0x6d   : > { %6765 = shalt.err (!%p6762_p6)
}
  0x6e   : > { %s6766_s16 = scalar_lea.vmem %s7285_s15, 1024  ;;  %s7047_s29 = smov [#allocation9]  }
  0x6f   : > { %p6767_p9 = scmp.ne.s32.totalorder %s7285_s15, %s6766_s16  ;;  %s6771_s3 = sshll.u32 %s7047_s29, 4  ;;  %s6772_s3 = int_to_ptr.vmem [resolvable:$false] %s6771_s3 }
  0x70   : > { %s6773_s30 = scalar_lea.vmem %s6772_s3, 2048  ;;  %p6774_p8 = scmp.lt.s32.totalorder %s7285_s15, %s6772_s3 }
  0x71   : > { %p6769_p12 = pnand %p6767_p9, %p7292_p13  ;;  %p6775_p10 = scmp.lt.s32.totalorder %s6773_s30, %s6766_s16 }
  0x73   : > { %p6770_p0 = pneg %p6769_p12  ;;  %p6776_p3 = por %p6775_p10, %p6774_p8 }
  0x75   : > { %p6777_p7 = pnand %p6776_p3, %p6770_p0 }
  0x77   : > { %6780 = shalt.err (!%p6777_p7)
}
  0x78   : > { %s8301_s1 = smov 4   ;;  %s8302_s13 = smov 64  }
  0x79   : > { %s8303_s14 = scalar_lea.sflag [#allocation10], %s7262_s17  ;;  %s8304_s29 = sshll.u32 %s7041_s21, 10 }
  0x7a   : > { %6312 = dma.hbm_to_vmem [thread:$0]  (!%p7279_p11), %s7277_s9, 1024, %s7285_s15, %s8303_s14, %s8302_s13, %s8302_s13, %s8301_s1  }
  0x7b   : > { %s7325_s30 = scalar_lea.hbm %s8244_s6, %s8304_s29  ;;  %s8305_s4 = sshll.u32 %s7268_s28, 6 }
  0x7c   : > { %s536_s18 = scalar_lea.vmem [#allocation12], %s8305_s4  ;;  %s7048_s11 = smov [#allocation3]  }
  0x7d   : > { %s543_s20 = sshll.u32 %s536_s18, 4  ;;  %s7331_s7 = sshll.u32 %s7048_s11, 4  ;;  %s7329_s20 = int_to_ptr.vmem [resolvable:$true] %s543_s20  ;;  %s437_s7 = int_to_ptr.vmem [resolvable:$true] %s7331_s7 }
  0x7e   : > { %s533_s23 = scalar_lea.sflag [#allocation13], %s7262_s17  ;;  %s6781_s15 = scalar_lea.hbm %s7325_s30, 1024 }
  0x7f   : > { %p6782_p8 = scmp.ne.s32.totalorder %s7325_s30, %s6781_s15  ;;  %s6786_s29 = scalar_lea.hbm %s8244_s6, 3072 }
  0x80   : > { %p6787_p1 = scmp.lt.u32.totalorder %s7325_s30, %s8244_s6  ;;  %p6788_p4 = scmp.lt.u32.totalorder %s6786_s29, %s6781_s15 }
  0x81   : > { %p6784_p10 = pnand %p6782_p8, %p7292_p13  ;;  %p6790_p6 = scmp.lt.u32.totalorder %s6781_s15, %s7325_s30 }
  0x82   : > { %p6789_p5 = por %p6788_p4, %p6787_p1 }
  0x83   : > { %p6785_p2 = pneg %p6784_p10 }
  0x84   : > { %p6791_p9 = por %p6790_p6, %p6789_p5 }
  0x86   : > { %p6792_p12 = pnand %p6791_p9, %p6785_p2 }
  0x88   : > { %6795 = shalt.err (!%p6792_p12)
}
  0x89   : > { %s6796_s4 = scalar_lea.vmem %s7329_s20, 1024  ;;  %s7049_s11 = smov [#allocation12]  }
  0x8a   : > { %p6797_p0 = scmp.ne.s32.totalorder %s7329_s20, %s6796_s4  ;;  %s6801_s18 = sshll.u32 %s7049_s11, 4  ;;  %s6802_s18 = int_to_ptr.vmem [resolvable:$false] %s6801_s18 }
  0x8b   : > { %s6803_s9 = scalar_lea.vmem %s6802_s18, 2048  ;;  %p6804_p8 = scmp.lt.s32.totalorder %s7329_s20, %s6802_s18 }
  0x8c   : > { %p6799_p3 = pnand %p6797_p0, %p7292_p13  ;;  %p6805_p10 = scmp.lt.s32.totalorder %s6803_s9, %s6796_s4 }
  0x8e   : > { %p6800_p7 = pneg %p6799_p3  ;;  %p6806_p1 = por %p6805_p10, %p6804_p8 }
  0x90   : > { %p6807_p4 = pnand %p6806_p1, %p6800_p7 }
  0x92   : > { %6810 = shalt.err (!%p6807_p4)
}
  0x93   : > { %6318 = dma.hbm_to_vmem [thread:$0]  (!%p7279_p11), %s7325_s30, 1024, %s7329_s20, %s533_s23, %s8302_s13, %s8302_s13, %s8301_s1  }
  0x94   : > { %s8306_s0 = sld [smem:[#allocation30_spill]]  ;;  %p8307_p5 = scmp.ne.s32.totalorder %s8294_s25, 0 }
  0x9a   : > { %s6811_s29 = scalar_lea.hbm %s8306_s0, 96 }
  0x9b   : > { %p6812_p2 = scmp.ne.s32.totalorder %s8306_s0, %s6811_s29  ;;  %p6818_p12 = scmp.lt.u32.totalorder %s6811_s29, %s8306_s0 }
  0x9d   : > { %p6814_p6 = pnand %p6812_p2, %p8307_p5 }
  0x9f   : > { %p6815_p9 = pneg %p6814_p6 }
  0xa1   : > { %p6820_p0 = pnand %p6818_p12, %p6815_p9 }
  0xa3   : > { %6823 = shalt.err (!%p6820_p0)
}
  0xa4   : > { %s6824_s18 = scalar_lea.vmem %s437_s7, 96  ;;  %p6832_p10 = scmp.lt.s32.totalorder %s437_s7, %s437_s7 }
  0xa5   : > { %p6825_p3 = scmp.ne.s32.totalorder %s437_s7, %s6824_s18  ;;  %p6833_p1 = scmp.lt.s32.totalorder %s6824_s18, %s6824_s18 }
  0xa7   : > { %p6827_p7 = pnand %p6825_p3, %p8307_p5  ;;  %p6834_p4 = por %p6833_p1, %p6832_p10 }
  0xa9   : > { %p6828_p8 = pneg %p6827_p7 }
  0xab   : > { %p6835_p11 = pnand %p6834_p4, %p6828_p8 }
  0xad   : > { %6838 = shalt.err (!%p6835_p11)
}
  0xae   : > { %p8308_p2 = scmp.ne.s32.totalorder %s8292_s27, 0  ;;  %s7050_s9 = smov [#allocation8]  }
  0xaf   : > { %s460_s15 = sshll.u32 %s7050_s9, 4  ;;  %s5602_s14 = sshll.u32 %s7268_s28, 7  ;;  %s461_s15 = int_to_ptr.vmem [resolvable:$true] %s460_s15 }
  0xb0   : > { %6299 = dma.hbm_to_vmem [thread:$0]  (!%p8308_p2), %s8306_s0, 96, %s437_s7, [#allocation4]  }
  0xb1   : > { %s6839_s16 = scalar_lea.hbm %s8240_s2, 16 }
  0xb2   : > { %p6840_p11 = scmp.ne.s32.totalorder %s8240_s2, %s6839_s16  ;;  %p6846_p12 = scmp.lt.u32.totalorder %s6839_s16, %s8240_s2 }
  0xb4   : > { %p6842_p6 = pnand %p6840_p11, %p8307_p5 }
  0xb6   : > { %p6843_p9 = pneg %p6842_p6 }
  0xb8   : > { %p6848_p0 = pnand %p6846_p12, %p6843_p9 }
  0xba   : > { %6851 = shalt.err (!%p6848_p0)
}
  0xbb   : > { %s6852_s7 = scalar_lea.vmem %s461_s15, 16  ;;  %s6859_s30 = scalar_lea.vmem %s461_s15, 32 }
  0xbc   : > { %p6853_p3 = scmp.ne.s32.totalorder %s461_s15, %s6852_s7  ;;  %p6860_p10 = scmp.lt.s32.totalorder %s461_s15, %s461_s15 }
  0xbd   : > { %p6861_p1 = scmp.lt.s32.totalorder %s6859_s30, %s6852_s7 }
  0xbe   : > { %p6855_p7 = pnand %p6853_p3, %p8307_p5 }
  0xbf   : > { %p6862_p4 = por %p6861_p1, %p6860_p10 }
  0xc0   : > { %p6856_p8 = pneg %p6855_p7 }
  0xc2   : > { %p6863_p13 = pnand %p6862_p4, %p6856_p8 }
  0xc4   : > { %6866 = shalt.err (!%p6863_p13)
}
  0xc5   : > { %6305 = dma.hbm_to_vmem [thread:$0]  (!%p8308_p2), %s8240_s2, 16, %s461_s15, [#allocation7]  }
  0xc6   : > { %s5841_s3 = sshll.u32 %s7041_s21, 11  ;;  %s515_s16 = scalar_lea.vmem [#allocation11], %s5602_s14 }
  0xc7   : > { %s522_s4 = sshll.u32 %s515_s16, 4  ;;  %s7402_s18 = scalar_lea.hbm %s8243_s5, %s5841_s3  ;;  %s7404_s4 = int_to_ptr.vmem [resolvable:$true] %s522_s4 }
  0xc8   : > { %s6867_s27 = scalar_lea.hbm %s7402_s18, 2048  ;;  %p8309_p5 = scmp.ne.s32.totalorder %s8300_s26, 0 }
  0xc9   : > { %p6868_p13 = scmp.ne.s32.totalorder %s7402_s18, %s6867_s27  ;;  %s6872_s14 = scalar_lea.hbm %s8243_s5, 6144 }
  0xca   : > { %p6873_p2 = scmp.lt.u32.totalorder %s7402_s18, %s8243_s5  ;;  %p6874_p9 = scmp.lt.u32.totalorder %s6872_s14, %s6867_s27 }
  0xcb   : > { %p6870_p11 = pnand %p6868_p13, %p8309_p5  ;;  %p6876_p0 = scmp.lt.u32.totalorder %s6867_s27, %s7402_s18 }
  0xcc   : > { %p6875_p12 = por %p6874_p9, %p6873_p2 }
  0xcd   : > { %p6871_p6 = pneg %p6870_p11 }
  0xce   : > { %p6877_p3 = por %p6876_p0, %p6875_p12 }
  0xd0   : > { %p6878_p7 = pnand %p6877_p3, %p6871_p6 }
  0xd2   : > { %6881 = shalt.err (!%p6878_p7)
}
  0xd3   : > { %s6882_s9 = scalar_lea.vmem %s7404_s4, 2048  ;;  %s7051_s29 = smov [#allocation11]  }
  0xd4   : > { %p6883_p8 = scmp.ne.s32.totalorder %s7404_s4, %s6882_s9  ;;  %s6887_s3 = sshll.u32 %s7051_s29, 4  ;;  %s6888_s3 = int_to_ptr.vmem [resolvable:$false] %s6887_s3 }
  0xd5   : > { %s6889_s16 = scalar_lea.vmem %s6888_s3, 4096  ;;  %p6890_p4 = scmp.lt.s32.totalorder %s7404_s4, %s6888_s3 }
  0xd6   : > { %p6885_p10 = pnand %p6883_p8, %p8309_p5  ;;  %p6891_p13 = scmp.lt.s32.totalorder %s6889_s16, %s6882_s9 }
  0xd8   : > { %p6886_p1 = pneg %p6885_p10  ;;  %p6892_p11 = por %p6891_p13, %p6890_p4 }
  0xda   : > { %p6893_p2 = pnand %p6892_p11, %p6886_p1 }
  0xdc   : > { %6896 = shalt.err (!%p6893_p2)
}
  0xdd   : > { %s7052_s25 = smov 128   ;;  %s7053_s11 = smov 8  }
  0xde   : > { %p8310_p6 = scmp.ne.s32.totalorder %s8299_s12, 0  ;;  %s8311_s27 = scalar_lea.sflag [#allocation10], %s7262_s17 }
  0xdf   : > { %s5608_s15 = sshll.u32 %s7268_s28, 8  ;;  %s5843_s20 = sshll.u32 %s7041_s21, 12 }
  0xe0   : > { %6315 = dma.hbm_to_vmem [thread:$0]  (!%p8310_p6), %s7402_s18, 2048, %s7404_s4, %s8311_s27, %s7052_s25, %s7052_s25, %s7053_s11  }
  0xe1   : > { %s7436_s30 = scalar_lea.hbm %s8246_s8, %s5843_s20  ;;  %s564_s9 = scalar_lea.vmem [#allocation14], %s5608_s15 }
  0xe2   : > { %s571_s29 = sshll.u32 %s564_s9, 4  ;;  %s6897_s3 = scalar_lea.hbm %s7436_s30, 4096  ;;  %s7440_s29 = int_to_ptr.vmem [resolvable:$true] %s571_s29 }
  0xe3   : > { %p6898_p9 = scmp.ne.s32.totalorder %s7436_s30, %s6897_s3  ;;  %s6902_s16 = scalar_lea.hbm %s8246_s8, 12288 }
  0xe4   : > { %p6903_p3 = scmp.lt.u32.totalorder %s7436_s30, %s8246_s8  ;;  %p6904_p7 = scmp.lt.u32.totalorder %s6902_s16, %s6897_s3 }
  0xe5   : > { %p6900_p12 = pnand %p6898_p9, %p8309_p5  ;;  %p6906_p10 = scmp.lt.u32.totalorder %s6897_s3, %s7436_s30 }
  0xe6   : > { %p6905_p8 = por %p6904_p7, %p6903_p3 }
  0xe7   : > { %p6901_p0 = pneg %p6900_p12 }
  0xe8   : > { %p6907_p1 = por %p6906_p10, %p6905_p8 }
  0xea   : > { %p6908_p4 = pnand %p6907_p1, %p6901_p0 }
  0xec   : > { %6911 = shalt.err (!%p6908_p4)
}
  0xed   : > { %s6912_s27 = scalar_lea.vmem %s7440_s29, 4096  ;;  %s7054_s14 = smov [#allocation14]  }
  0xee   : > { %p6913_p13 = scmp.ne.s32.totalorder %s7440_s29, %s6912_s27  ;;  %s6917_s7 = sshll.u32 %s7054_s14, 4  ;;  %s6918_s7 = int_to_ptr.vmem [resolvable:$false] %s6917_s7 }
  0xef   : > { %s6919_s9 = scalar_lea.vmem %s6918_s7, 8192  ;;  %p6920_p9 = scmp.lt.s32.totalorder %s7440_s29, %s6918_s7 }
  0xf0   : > { %p6915_p11 = pnand %p6913_p13, %p8309_p5  ;;  %p6921_p12 = scmp.lt.s32.totalorder %s6919_s9, %s6912_s27 }
  0xf2   : > { %p6916_p2 = pneg %p6915_p11  ;;  %p6922_p3 = por %p6921_p12, %p6920_p9 }
  0xf4   : > { %p6923_p7 = pnand %p6922_p3, %p6916_p2 }
  0xf6   : > { %6926 = shalt.err (!%p6923_p7)
}
  0xf7   : > { %s7055_s3 = smov 256   ;;  %s7056_s4 = smov 16  }
  0xf8   : > { %6321 = dma.hbm_to_vmem [thread:$0]  (!%p8310_p6), %s7436_s30, 4096, %s7440_s29, %s533_s23, %s7055_s3, %s7055_s3, %s7056_s4  }
  0xf9   : > { %s7470_s25 = scalar_lea.hbm %s8248_s10, %s5843_s20  ;;  %s592_s11 = scalar_lea.vmem [#allocation15], %s5608_s15 }
  0xfa   : > { %s599_s27 = sshll.u32 %s592_s11, 4  ;;  %s589_s14 = scalar_lea.sflag [#allocation16], %s7262_s17  ;;  %s7474_s27 = int_to_ptr.vmem [resolvable:$true] %s599_s27 }
  0xfb   : > { %s6927_s7 = scalar_lea.hbm %s7470_s25, 4096  ;;  %s6932_s20 = scalar_lea.hbm %s8248_s10, 12288 }
  0xfc   : > { %p6928_p0 = scmp.ne.s32.totalorder %s7470_s25, %s6927_s7  ;;  %p6933_p1 = scmp.lt.u32.totalorder %s7470_s25, %s8248_s10 }
  0xfd   : > { %p6934_p4 = scmp.lt.u32.totalorder %s6932_s20, %s6927_s7  ;;  %p6936_p11 = scmp.lt.u32.totalorder %s6927_s7, %s7470_s25 }
  0xfe   : > { %p6930_p8 = pnand %p6928_p0, %p8309_p5 }
  0xff   : > { %p6935_p13 = por %p6934_p4, %p6933_p1 }
 0x100   : > { %p6931_p10 = pneg %p6930_p8 }
 0x101   : > { %p6937_p2 = por %p6936_p11, %p6935_p13 }
 0x103   : > { %p6938_p9 = pnand %p6937_p2, %p6931_p10 }
 0x105   : > { %6941 = shalt.err (!%p6938_p9)
}
 0x106   : > { %s6942_s15 = scalar_lea.vmem %s7474_s27, 4096  ;;  %s7057_s29 = smov [#allocation15]  }
 0x107   : > { %p6943_p12 = scmp.ne.s32.totalorder %s7474_s27, %s6942_s15  ;;  %s6947_s9 = sshll.u32 %s7057_s29, 4  ;;  %s6948_s9 = int_to_ptr.vmem [resolvable:$false] %s6947_s9 }
 0x108   : > { %s6949_s3 = scalar_lea.vmem %s6948_s9, 8192  ;;  %p6950_p0 = scmp.lt.s32.totalorder %s7474_s27, %s6948_s9 }
 0x109   : > { %p6945_p3 = pnand %p6943_p12, %p8309_p5  ;;  %p6951_p8 = scmp.lt.s32.totalorder %s6949_s3, %s6942_s15 }
 0x10b   : > { %p6946_p7 = pneg %p6945_p3  ;;  %p6952_p1 = por %p6951_p8, %p6950_p0 }
 0x10d   : > { %p6953_p4 = pnand %p6952_p1, %p6946_p7 }
 0x10f   : > { %6956 = shalt.err (!%p6953_p4)
}
 0x110   : > { %6324 = dma.hbm_to_vmem [thread:$0]  (!%p8310_p6), %s7470_s25, 4096, %s7474_s27, %s589_s14, %s8302_s13, %s8302_s13, %s8301_s1  }
 0x111   : > { %p8312_p5 = scmp.ne.s32.totalorder %s8291_s24, 0 }
 0x112   : > { %p8313_p10 = scmp.eq.s32.totalorder (!%p8312_p5), %s7171_s22, 0 }
 0x113   : > { %624 = sbr.rel (%p8312_p5) target bundleno = 3489 (0xda1), region = 80 }
 0x11a   : > { %7000 = dma.done.wait (%p8313_p10), [#allocation4], 96   ;;  %p8314_p13 = pmov %p8313_p10 }
 0x11b   : > { %p8315_p11 = pmov %p8313_p10 }
 0x11c   : > { %7002 = vsyncadd (%p8314_p13), [#allocation4], 4294967200 }
 0x11d   : > { %7004 = dma.done.wait (%p8315_p11), [#allocation7], 6160   ;;  %p8316_p2 = pmov %p8313_p10 }
 0x11e   : > { %s8317_s17 = sld [smem:[#allocation27_spill]]  ;;  %s638_s12 = sand.u32 1, %s7171_s22  }
 0x11f   : > { %7006 = vsyncadd (%p8316_p2), [#allocation7], 4294961136  ;;  %s640_s26 = sand.u32 1, %s7033_s19   ;;  %s639_s24 = scalar_lea.sflag [#allocation10], %s638_s12 }
 0x120   : > { %s5618_s1 = sshll.u32 %s640_s26, 6 }
 0x121   : > { %s7515_s13 = scalar_lea.vmem [#allocation9], %s5618_s1 }
 0x124   : > { %p8318_p6 = scmp.ne.s32.totalorder %s8317_s17, 0 }
 0x126   : > { %7008 = dma.done.wait (%p8318_p6), %s639_s24, 3072  }
 0x127   : > { %7010 = vsyncadd (%p8318_p6), %s639_s24, 4294964224  ;;  %s5619_s4 = sshll.u32 %s640_s26, 7  ;;  %s657_s16 = scalar_lea.sflag [#allocation13], %s638_s12 }
 0x128   : > { %s7521_s18 = scalar_lea.vmem [#allocation11], %s5619_s4  ;;  %s7523_s25 = scalar_lea.vmem [#allocation12], %s5618_s1 }
 0x129   : > { %7012 = dma.done.wait (%p8318_p6), %s657_s16, 5120  }
 0x12a   : > { %7014 = vsyncadd (%p8318_p6), %s657_s16, 4294962176  ;;  %s5621_s11 = sshll.u32 %s640_s26, 8  ;;  %s675_s14 = scalar_lea.sflag [#allocation16], %s638_s12 }
 0x12b   : > { %s7529_s27 = scalar_lea.vmem [#allocation14], %s5621_s11  ;;  %s7531_s7 = scalar_lea.vmem [#allocation15], %s5621_s11 }
 0x12c   : > { %7016 = dma.done.wait (%p8318_p6), %s675_s14, 4096  }
 0x12d   : > { %7018 = vsyncadd (%p8318_p6), %s675_s14, 4294963200  ;;  %p8319_p9 = pmov %p8316_p2 }
 0x12e   : > { %p8320_p12 = pmov %p8316_p2 }
 0x12f   : > { %7020 = dma.done.wait (%p8319_p9), [#allocation16], 1024  }
 0x130   : > { %7022 = vsyncadd (%p8320_p12), [#allocation16], 4294966272  ;;  %p759_p3 = scmp.lt.s32.totalorder %s7171_s22, 2  ;;  %s8321_s15 = sld [smem:[#allocation34_spill]] }
 0x131   : > { %s8322_s17 = sld [smem:[#allocation35_spill]]  ;;  %s8323_s24 = sld [smem:[#allocation36_spill]] }
 0x132   : > { %s7543_s21 = scalar_select %p759_p3, %s7171_s22, 2 }
 0x133   : > { %s8324_s14 = sld [smem:[#allocation37_spill]]  ;;  %p8325_p7 = scmp.ne.s32.totalorder %s7171_s22, 0 }
 0x134   : > { %s5624_s23 = sshll.u32 %s7543_s21, 1  ;;  %s5625_s20 = sshll.u32 %s7543_s21, 2  ;;  %v6392_v0 = vld [vmem:[#allocation6 + $0x40] sm:$0xff] (!%p8325_p7)   ;;  %v6396_v4 = vld [vmem:[#allocation6 + $0x48] sm:$0xff] (!%p8325_p7)   ;;  %v6400_v8 = vld [vmem:[#allocation6 + $0x50] sm:$0xff] (!%p8325_p7)   ;;  %v888_v29 = vlaneseq (!%p8325_p7) }
 0x135   : > { %778 = sbr.rel (%p8325_p7) target bundleno = 593 (0x251), region = 120  ;;  %v6393_v1 = vld [vmem:[#allocation6] sm:$0xff] (!%p8325_p7)   ;;  %5845 = vmatprep.subr.bf16.mxu0 (!%p8325_p7), %v6392_v0  ;;  %v6397_v5 = vld [vmem:[#allocation6 + $0x8] sm:$0xff] (!%p8325_p7)   ;;  %v6401_v9 = vld [vmem:[#allocation6 + $0x10] sm:$0xff] (!%p8325_p7)   ;;  %v7058_v33 = vmov (!%p8325_p7), 1966171168  }
 0x136   : > { %s7550_s29 = scalar_lea.vmem %s8321_s15, %s5624_s23  ;;  %v6394_v2 = vld [vmem:[#allocation6 + $0xc0] sm:$0xff] (!%p8325_p7)   ;;  %5846 = vmatpush3.bf16.msra.mxu0 (!%p8325_p7), %v6393_v1  ;;  %v6398_v6 = vld [vmem:[#allocation6 + $0xc8] sm:$0xff] (!%p8325_p7)   ;;  %v6402_v10 = vld [vmem:[#allocation6 + $0xd0] sm:$0xff] (!%p8325_p7)   ;;  %v886_v34 = vunpack.c.l.s4 (!%p8325_p7), %v7058_v33  ;;  %v7568_v35 = vshrl.u32 (!%p8325_p7), %v888_v29, 7 }
 0x137   : > { %s7555_s12 = scalar_lea.vmem %s8322_s17, %s5625_s20  ;;  %s769_s4 = scalar_lea.vmem %s8323_s24, %s7543_s21  ;;  %v6395_v3 = vld [vmem:[#allocation6 + $0x80] sm:$0xff] (!%p8325_p7)   ;;  %5867 = vmatprep.subr.bf16.mxu1 (!%p8325_p7), %v6394_v2  ;;  %5847 = vmatprep.subr.bf16.mxu0 (!%p8325_p7), %v6396_v4  ;;  %v6399_v7 = vld [vmem:[#allocation6 + $0x88] sm:$0xff] (!%p8325_p7)   ;;  %v6403_v11 = vld [vmem:[#allocation6 + $0x90] sm:$0xff] (!%p8325_p7)  }
 0x138   : > { %5868 = vmatpush3.bf16.msra.mxu1 (!%p8325_p7), %v6395_v3  ;;  %v6404_v12 = vld [vmem:[#allocation6 + $0x58] sm:$0xff] (!%p8325_p7)   ;;  %v6408_v16 = vld [vmem:[#allocation6 + $0x60] sm:$0xff] (!%p8325_p7)   ;;  %v6412_v20 = vld [vmem:[#allocation6 + $0x68] sm:$0xff] (!%p8325_p7)   ;;  %v887_v39 = vunpack.c.0.s8 (!%p8325_p7), %v886_v34 }
 0x139   : > { %s7564_s0 = scalar_lea.vmem %s8324_s14, %s5624_s23  ;;  %5869 = vmatprep.subr.bf16.mxu1 (!%p8325_p7), %v6398_v6  ;;  %v6405_v13 = vld [vmem:[#allocation6 + $0x18] sm:$0xff] (!%p8325_p7)   ;;  %v6409_v17 = vld [vmem:[#allocation6 + $0x20] sm:$0xff] (!%p8325_p7)   ;;  %v6413_v21 = vld [vmem:[#allocation6 + $0x28] sm:$0xff] (!%p8325_p7)  }
 0x13a   : > { %5848 = vmatpush3.bf16.msra.mxu0 (!%p8325_p7), %v6397_v5  ;;  %v6406_v14 = vld [vmem:[#allocation6 + $0xd8] sm:$0xff] (!%p8325_p7)   ;;  %v6410_v18 = vld [vmem:[#allocation6 + $0xe0] sm:$0xff] (!%p8325_p7)   ;;  %v6414_v22 = vld [vmem:[#allocation6 + $0xe8] sm:$0xff] (!%p8325_p7)   ;;  %v890_v40 = vsub.s32 (!%p8325_p7), %v887_v39, %v7568_v35 }
 0x13b   : > { %5849 = vmatprep.subr.bf16.mxu0 (!%p8325_p7), %v6400_v8  ;;  %v6407_v15 = vld [vmem:[#allocation6 + $0x98] sm:$0xff] (!%p8325_p7)   ;;  %v6411_v19 = vld [vmem:[#allocation6 + $0xa0] sm:$0xff] (!%p8325_p7)   ;;  %v6415_v23 = vld [vmem:[#allocation6 + $0xa8] sm:$0xff] (!%p8325_p7)  }
 0x13c   : > { %5870 = vmatpush3.bf16.msra.mxu1 %v6399_v7  ;;  %v6416_v24 = vld [vmem:[#allocation6 + $0x70] sm:$0xff]   ;;  %v6420_v28 = vld [vmem:[#allocation6 + $0x78] sm:$0xff]   ;;  %v6425_v37 = vld [vmem:[#allocation6 + $0x140] sm:$0xff]  }
 0x13d   : > { %5871 = vmatprep.subr.bf16.mxu1 %v6402_v10  ;;  %v6417_v25 = vld [vmem:[#allocation6 + $0x30] sm:$0xff]   ;;  %v6421_v30 = vld [vmem:[#allocation6 + $0x38] sm:$0xff]   ;;  %v6426_v47 = vld [vmem:[#allocation6 + $0x100] sm:$0xff]  }
 0x13e   : > { %5850 = vmatpush3.bf16.msra.mxu0 %v6401_v9  ;;  %v6418_v26 = vld [vmem:[#allocation6 + $0xf0] sm:$0xff]   ;;  %v6422_v31 = vld [vmem:[#allocation6 + $0xf8] sm:$0xff]   ;;  %v6427_v49 = vld [vmem:[#allocation6 + $0x148] sm:$0xff]  }
 0x13f   : > { %5851 = vmatprep.subr.bf16.mxu0 %v6404_v12  ;;  %v6419_v27 = vld [vmem:[#allocation6 + $0xb0] sm:$0xff]   ;;  %v779_v32 = vld [vmem:[#allocation3] sm:$0x3f]  ;;  %v6428_v52 = vld [vmem:[#allocation6 + $0x108] sm:$0xff]  }
 0x140   : > { %5872 = vmatpush3.bf16.msra.mxu1 %v6403_v11  ;;  %v6424_v36 = vld [vmem:[#allocation6 + $0xb8] sm:$0xff]   ;;  %v884_v38 = vcombine.high %v779_v32, %v779_v32  ;;  %v891_v41 = vrot.slane %v779_v32, %v890_v40  ;;  %v6429_v53 = vld [vmem:[#allocation6 + $0x150] sm:$0xff]   ;;  %v6433_v57 = vld [vmem:[#allocation6 + $0x160] sm:$0xff]  }
 0x141   : > { %5873 = vmatprep.subr.bf16.mxu1 %v6406_v14  ;;  %v6430_v54 = vld [vmem:[#allocation6 + $0x110] sm:$0xff]   ;;  %v6431_v55 = vld [vmem:[#allocation6 + $0x158] sm:$0xff]   ;;  %v6434_v58 = vld [vmem:[#allocation6 + $0x120] sm:$0xff]  }
 0x142   : > { %5852 = vmatpush3.bf16.msra.mxu0 %v6405_v13  ;;  %v898_v42 = vrot.slane %v884_v38, %v890_v40  ;;  %v899_v43 = vcombine.high %v891_v41, %v891_v41  ;;  %v907_v44 = vrot.slane %v891_v41, %v890_v40  ;;  %v6432_v56 = vld [vmem:[#allocation6 + $0x118] sm:$0xff]   ;;  %v6435_v59 = vld [vmem:[#allocation6 + $0x168] sm:$0xff]   ;;  %v6437_v61 = vld [vmem:[#allocation6 + $0x170] sm:$0xff]  }
 0x143   : > { %5853 = vmatprep.subr.bf16.mxu0 %v6408_v16  ;;  %v6436_v60 = vld [vmem:[#allocation6 + $0x128] sm:$0xff]   ;;  %v6438_v62 = vld [vmem:[#allocation6 + $0x130] sm:$0xff]   ;;  %v6439_v63 = vld [vmem:[#allocation6 + $0x178] sm:$0xff]  }
 0x144   : > { %5874 = vmatpush3.bf16.msra.mxu1 %v6407_v15  ;;  %v900_v45 = vcombine.high %v898_v42, %v898_v42  ;;  %v921_v46 = vrot.slane %v899_v43, %v890_v40  ;;  %v929_v48 = vcombine.high %v907_v44, %v907_v44  ;;  %v6440_v0 = vld [vmem:[#allocation6 + $0x138] sm:$0xff]   ;;  %v914_v1 = vrot.slane %v898_v42, %v890_v40  ;;  %v5628_v3 = vld [vmem:[#allocation8] ss:$0 sm:$0xff] }
 0x145   : > { %5875 = vmatprep.subr.bf16.mxu1 %v6410_v18  ;;  %v1347_v18 = vsub.s32 0, %v7568_v35 }
 0x146   : > { %5854 = vmatpush3.bf16.msra.mxu0 %v6409_v17  ;;  %1257 = vmatprep.mubr.bf16.mxu0 %v921_v46  ;;  %v930_v50 = vcombine.high %v921_v46, %v921_v46  ;;  %v928_v51 = vrot.slane %v900_v45, %v890_v40 }
 0x147   : > { %5855 = vmatprep.subr.bf16.mxu0 %v6412_v20 }
 0x148   : > { %5876 = vmatpush3.bf16.msra.mxu1 %v6411_v19  ;;  %1297 = vmatprep.mubr.bf16.mxu1 %v930_v50  ;;  %v1351_v19 = vsub.s32 1, %v7568_v35 }
 0x149   : > { %5877 = vmatprep.subr.bf16.mxu1 %v6414_v22 }
 0x14a   : > { %5856 = vmatpush3.bf16.msra.mxu0 %v6413_v21 }
 0x14b   : > { %5857 = vmatprep.subr.bf16.mxu0 %v6416_v24 }
 0x14c   : > { %5878 = vmatpush3.bf16.msra.mxu1 %v6415_v23 }
 0x14d   : > { %5879 = vmatprep.subr.bf16.mxu1 %v6418_v26 }
 0x14e   : > { %5858 = vmatpush3.bf16.msra.mxu0 %v6417_v25 }
 0x14f   : > { %5859 = vmatprep.subr.bf16.mxu0 %v6420_v28 }
 0x150   : > { %5880 = vmatpush3.bf16.msra.mxu1 %v6419_v27 }
 0x151   : > { %5881 = vmatprep.subr.bf16.mxu1 %v6422_v31 }
 0x152   : > { %5860 = vmatpush3.bf16.msra.mxu0 %v6421_v30 }
 0x153   : > { %5889 = vmatprep.subr.bf16.mxu0 %v6425_v37 }
 0x154   : > { %5882 = vmatpush3.bf16.msra.mxu1 %v6424_v36 }
 0x155   : > { %1258 = vmatmul.mubr.bf16.vlgmr.msra.gmra.mrb[0].mxu0 %v907_v44 }
 0x156   : > { %5890 = vmatpush3.bf16.msra.mxu0 %v6426_v47  ;;  %1337 = vmatprep.mubr.bf16.mxu0 %v928_v51 }
 0x157   : > { %1298 = vmatmul.mubr.bf16.vlgmr.msra.gmra.mrb[0].mxu1 %v929_v48  ;;  %5891 = vmatprep.subr.bf16.mxu0 %v6427_v49 }
 0x15a   : > { %5892 = vmatpush3.bf16.msra.mxu0 %v6428_v52 }
 0x15b   : > { %5893 = vmatprep.subr.bf16.mxu0 %v6429_v53 }
 0x15e   : > { %5894 = vmatpush3.bf16.msra.mxu0 %v6430_v54 }
 0x15f   : > { %5895 = vmatprep.subr.bf16.mxu0 %v6431_v55 }
 0x162   : > { %5896 = vmatpush3.bf16.msra.mxu0 %v6432_v56 }
 0x163   : > { %5897 = vmatprep.subr.bf16.mxu0 %v6433_v57 }
 0x166   : > { %5898 = vmatpush3.bf16.msra.mxu0 %v6434_v58 }
 0x167   : > { %5899 = vmatprep.subr.bf16.mxu0 %v6435_v59 }
 0x16a   : > { %5900 = vmatpush3.bf16.msra.mxu0 %v6436_v60 }
 0x16b   : > { %5901 = vmatprep.subr.bf16.mxu0 %v6437_v61 }
 0x16e   : > { %5902 = vmatpush3.bf16.msra.mxu0 %v6438_v62 }
 0x16f   : > { %5903 = vmatprep.subr.bf16.mxu0 %v6439_v63 }
 0x172   : > { %5904 = vmatpush3.bf16.msra.mxu0 %v6440_v0 }
 0x175   : > { %1338 = vmatmul.mubr.bf16.vlgmr.msra.gmra.mrb[4].mxu0 %v914_v1 }
 0x228   : > { %v5861_v2 = vpop.f32.mrb[0].mxu0 }
 0x229   : > { %v5862_v4 = vpop.f32.mrb[1].mxu0 }
 0x22a   : > { %v5863_v5 = vadd.f32 %v5862_v4, %v5861_v2  ;;  %v5864_v6 = vpop.f32.mrb[2].mxu0  ;;  %v5883_v7 = vpop.f32.mrb[0].mxu1 }
 0x22b   : > { %v5865_v8 = vpop.f32.mrb[3].mxu0  ;;  %v5884_v9 = vpop.f32.mrb[1].mxu1 }
 0x22c   : > { %v1260_v10 = vadd.f32 %v5863_v5, %v5628_v3  ;;  %v5885_v11 = vadd.f32 %v5884_v9, %v5883_v7  ;;  %v5886_v12 = vpop.f32.mrb[2].mxu1 }
 0x22d   : > { %v5887_v13 = vpop.f32.mrb[3].mxu1 }
 0x22e   : > { %v1300_v14 = vadd.f32 %v5885_v11, %v1260_v10 }
 0x248   : > { %v5905_v15 = vpop.f32.mrb[4].mxu0 }
 0x249   : > { %v5906_v16 = vpop.f32.mrb[5].mxu0 }
 0x24a   : > { %v5907_v17 = vadd.f32 %v5906_v16, %v5905_v15  ;;  %v5908_v20 = vpop.f32.mrb[6].mxu0 }
 0x24b   : > { %v5909_v21 = vpop.f32.mrb[7].mxu0 }
 0x24c   : > { %v1340_v22 = vadd.f32 %v5907_v17, %v1300_v14 }
 0x24e   : > { %v1348_v23 = vrot.slane %v1340_v22, %v1347_v18  ;;  %v1352_v24 = vrot.slane %v1340_v22, %v1351_v19 }
 0x250   : > { %1353 = vst [vmem:[#allocation2] sm:$0xff] %v1348_v23  ;;  %1354 = vst [vmem:[#allocation2 + $0x8] sm:$0xff] %v1352_v24 }
 0x251 PF: > { %v6476_v25 = vld [vmem:[%s7515_s13] sm:$0xff]   ;;  %v7059_v26 = vmov 0.0   ;;  %vm7060_vm0 = vmmov 0   ;;  %v6480_v29 = vld [vmem:[%s7515_s13 + $0x8] sm:$0xff]   ;;  %v6481_v30 = vld [vmem:[%s7521_s18 + $0x14] ss:$8 sps:$4 sm:$0xff]  }
 0x252   : > { %6046 = vmatprep.subr.bf16.mxu0 %v7059_v26  ;;  %v6477_v27 = vld [vmem:[%s7521_s18 + $0x4] ss:$8 sps:$4 sm:$0xff]   ;;  %v6479_v28 = vld [vmem:[%s7521_s18] ss:$8 sps:$4 sm:$0xff]   ;;  %6062 = vmatprep.mubr.msk.bf16.mxu0 %vm7060_vm0, %v7059_v26  ;;  %v6483_v31 = vld [vmem:[%s7521_s18 + $0x10] ss:$8 sps:$4 sm:$0xff]  }
 0x253   : > { %6047 = vmatpush3.bf16.msra.mxu0 %v6476_v25  ;;  %1567 = vmatprep.subr.bf16.mxu1 %v6477_v27  ;;  %v7061_v32 = vmov 0   ;;  %v6484_v33 = vld [vmem:[%s7515_s13 + $0x10] sm:$0xff]   ;;  %v6485_v34 = vld [vmem:[%s7521_s18 + $0x24] ss:$8 sps:$4 sm:$0xff]   ;;  %v6487_v35 = vld [vmem:[%s7521_s18 + $0x20] ss:$8 sps:$4 sm:$0xff]  }
 0x254   : > { %6048 = vmatprep.subr.bf16.mxu0 %v7059_v26  ;;  %1568 = vmatpush1.bf16.msra.mxu1 %v6479_v28  ;;  %v6489_v36 = vld [vmem:[%s7521_s18 + $0x34] ss:$8 sps:$4 sm:$0xff]   ;;  %v6491_v38 = vld [vmem:[%s7521_s18 + $0x30] ss:$8 sps:$4 sm:$0xff]   ;;  %v6493_v39 = vld [vmem:[%s7521_s18 + $0x44] ss:$8 sps:$4 sm:$0xff]  }
 0x255   : > { %1599 = vmatprep.mubr.bf16.mxu1 %v7061_v32  ;;  %1569 = vmatprep.subr.bf16.mxu1 %v6481_v30  ;;  %v6488_v37 = vld [vmem:[%s7515_s13 + $0x18] sm:$0xff]   ;;  %v6492_v40 = vld [vmem:[%s7515_s13 + $0x20] sm:$0xff]   ;;  %v6496_v43 = vld [vmem:[%s7515_s13 + $0x28] sm:$0xff]   ;;  %s8326_s30 = sld [smem:[#allocation32_spill]]  ;;  %vm1714_vm1 = vcmask 130048   ;;  %s7064_s28 = smov 80  }
 0x256   : > { %v6495_v41 = vld [vmem:[%s7521_s18 + $0x40] ss:$8 sps:$4 sm:$0xff]   ;;  %v6497_v42 = vld [vmem:[%s7521_s18 + $0x54] ss:$8 sps:$4 sm:$0xff]   ;;  %v6499_v44 = vld [vmem:[%s7521_s18 + $0x50] ss:$8 sps:$4 sm:$0xff]  }
 0x257   : > { %6049 = vmatpush3.bf16.msra.mxu0 %v6480_v29  ;;  %v6500_v45 = vld [vmem:[%s7515_s13 + $0x30] sm:$0xff]   ;;  %v6501_v46 = vld [vmem:[%s7521_s18 + $0x64] ss:$8 sps:$4 sm:$0xff]   ;;  %v6503_v47 = vld [vmem:[%s7521_s18 + $0x60] ss:$8 sps:$4 sm:$0xff]   ;;  %s7065_s15 = smov 64  }
 0x258   : > { %6050 = vmatprep.subr.bf16.mxu0 %v7059_v26  ;;  %1570 = vmatpush1.bf16.msra.mxu1 %v6483_v31  ;;  %v6505_v48 = vld [vmem:[%s7521_s18 + $0x74] ss:$8 sps:$4 sm:$0xff]   ;;  %v1355_v50 = vld [vmem:[#allocation2] sm:$0xff]  ;;  %v6507_v52 = vld [vmem:[%s7521_s18 + $0x70] ss:$8 sps:$4 sm:$0xff]   ;;  %s7063_s18 = smov 112  }
 0x259   : > { %1571 = vmatprep.subr.bf16.mxu1 %v6485_v34  ;;  %v6504_v49 = vld [vmem:[%s7515_s13 + $0x38] sm:$0xff]   ;;  %v1356_v51 = vld [vmem:[#allocation2 + $0x8] sm:$0xff]  ;;  %s7062_s13 = smov 96   ;;  %s7066_s9 = smov 48   ;;  %vm2899_vm2 = vcmask 64512   ;;  %vm4302_vm3 = vcmask 261120  }
 0x25a   : > { %v1357_v53 = vpack.c.bf16 %v1356_v51, %v1355_v50  ;;  %s7067_s3 = smov 32   ;;  %s7068_s17 = smov 16   ;;  %vm4305_vm4 = vcmask 392192   ;;  %vm4308_vm5 = vcmask 523264   ;;  %vm4311_vm6 = vcmask 654336  }
 0x25b   : > { %6051 = vmatpush3.bf16.msra.mxu0 %v6484_v33  ;;  %v6508_v54 = vld [vmem:[%s8326_s30] sm:$0xff]   ;;  %vm4314_vm7 = vcmask 785408   ;;  %vm4317_vm8 = vcmask 916480   ;;  %p5823_p0 = scmp.ne.s32.totalorder %s7171_s22, 2 }
 0x25c   : > { %6052 = vmatprep.subr.bf16.mxu0 %v7059_v26  ;;  %1572 = vmatpush1.bf16.msra.mxu1 %v6487_v35  ;;  %vm7070_vm9 = vmmov (!%p5823_p0), 0   ;;  %vm5246_vm10 = vcmask (!%p5823_p0), 1041409   ;;  %vm5249_vm11 = vcmask (!%p5823_p0), 1041408  }
 0x25d   : > { %1573 = vmatprep.subr.bf16.mxu1 %v6489_v36  ;;  %vm5833_vm12 = vmpackc.low (!%p5823_p0), %vm5249_vm11, %vm5249_vm11 }
 0x25f   : > { %6053 = vmatpush3.bf16.msra.mxu0 %v6488_v37 }
 0x260   : > { %6054 = vmatprep.subr.bf16.mxu0 %v7059_v26  ;;  %1574 = vmatpush1.bf16.msra.mxu1 %v6491_v38 }
 0x261   : > { %1575 = vmatprep.subr.bf16.mxu1 %v6493_v39 }
 0x263   : > { %6055 = vmatpush3.bf16.msra.mxu0 %v6492_v40 }
 0x264   : > { %6056 = vmatprep.subr.bf16.mxu0 %v7059_v26  ;;  %1576 = vmatpush1.bf16.msra.mxu1 %v6495_v41 }
 0x265   : > { %1577 = vmatprep.subr.bf16.mxu1 %v6497_v42 }
 0x267   : > { %6057 = vmatpush3.bf16.msra.mxu0 %v6496_v43 }
 0x268   : > { %6058 = vmatprep.subr.bf16.mxu0 %v7059_v26  ;;  %1578 = vmatpush1.bf16.msra.mxu1 %v6499_v44 }
 0x269   : > { %1579 = vmatprep.subr.bf16.mxu1 %v6501_v46 }
 0x26b   : > { %6059 = vmatpush3.bf16.msra.mxu0 %v6500_v45 }
 0x26c   : > { %6060 = vmatprep.subr.bf16.mxu0 %v7059_v26  ;;  %1580 = vmatpush1.bf16.msra.mxu1 %v6503_v47 }
 0x26d   : > { %1581 = vmatprep.subr.bf16.mxu1 %v6505_v48 }
 0x26f   : > { %6061 = vmatpush3.bf16.msra.mxu0 %v6504_v49 }
 0x270   : > { %6106 = vmatprep.subr.mxu0 %v7059_v26  ;;  %1582 = vmatpush1.bf16.msra.mxu1 %v6507_v52 }
 0x271   : > { %6066 = vmatprep.subr.mxu1 %v7059_v26 }
 0x272   : > { %6063 = vmatmul.mubr.bf16.vlgmr.msra.gmra.mrb[0].mxu0 %v1357_v53 }
 0x273   : > { %6108 = vmatprep.mubr.msk.f32.mxu0 %vm7060_vm0, %v7059_v26  ;;  %1600 = vmatmul.mubr.bf16.vlgmr.msra.gmra.mrb[0].mxu1 %v6508_v54 }
 0x274   : > { %6068 = vmatprep.mubr.msk.f32.mxu1 %vm7060_vm0, %v7059_v26 }
 0x345   : > { %v1458_v55 = vpop.f32.mrb[0].mxu0 }
 0x346   : > { %1616 = vrot.lane.b32.xlu1 %v1458_v55, %s7062_s13  ;;  %1612 = vrot.lane.b32.xlu0 %v1458_v55, %s7063_s18  ;;  %v6064_v56 = vpop.f32.mrb[1].mxu0  ;;  %v1601_v57 = vpop.f32.mrb[0].mxu1 }
 0x347   : > { %v1461_v58 = vpop.f32.mrb[2].mxu0  ;;  %v7619_v59 = vpop.f32.mrb[1].mxu1  ;;  %6067 = vmatpush3.xpose.msk.msra.mxu1 %vm1714_vm1, %v1601_v57 }
 0x348   : > { %v6065_v60 = vpop.f32.mrb[3].mxu0  ;;  %v1605_v61 = vpop.f32.mrb[2].mxu1  ;;  %6071 = vmatprep.subr.mxu1 %v7059_v26 }
 0x349   : > { %v7623_v62 = vpop.f32.mrb[3].mxu1 }
 0x34a   : > { %1620 = vrot.lane.b32.xlu1 %v1458_v55, %s7064_s28  ;;  %1642 = vrot.lane.b32.xlu0 %v1601_v57, %s7063_s18 }
 0x34b   : > { %6069 = vmatmul.mubr.msk.f32.vlgmr.msra.gmra.mrb[4].mxu1 %vm1714_vm1, %v1458_v55 }
 0x34c   : > { %6072 = vmatpush3.xpose.msk.msra.mxu1 %vm1714_vm1, %v1605_v61  ;;  %6073 = vmatprep.mubr.msk.f32.mxu1 %vm7060_vm0, %v7059_v26 }
 0x34d   : > { %6076 = vmatprep.subr.mxu1 %v7059_v26 }
 0x34e   : > { %1646 = vrot.lane.b32.xlu0 %v1601_v57, %s7062_s13  ;;  %1614 = vrot.lane.b32.xlu1 %v1461_v58, %s7063_s18 }
 0x34f   : > { %6074 = vmatmul.mubr.msk.f32.vlgmr.msra.gmra.mrb[6].mxu1 %vm1714_vm1, %v1461_v58 }
 0x350   : > { %6078 = vmatprep.mubr.msk.f32.mxu1 %vm7060_vm0, %v7059_v26 }
 0x352   : > { %1650 = vrot.lane.b32.xlu0 %v1601_v57, %s7064_s28  ;;  %1618 = vrot.lane.b32.xlu1 %v1461_v58, %s7062_s13 }
 0x356   : > { %1654 = vrot.lane.b32.xlu0 %v1601_v57, %s7065_s15  ;;  %1644 = vrot.lane.b32.xlu1 %v1605_v61, %s7063_s18 }
 0x35a   : > { %1624 = vrot.lane.b32.xlu0 %v1458_v55, %s7065_s15  ;;  %1622 = vrot.lane.b32.xlu1 %v1461_v58, %s7064_s28 }
 0x35e   : > { %1648 = vrot.lane.b32.xlu0 %v1605_v61, %s7062_s13  ;;  %1626 = vrot.lane.b32.xlu1 %v1461_v58, %s7065_s15 }
 0x362   : > { %1658 = vrot.lane.b32.xlu0 %v1601_v57, %s7066_s9  ;;  %1630 = vrot.lane.b32.xlu1 %v1461_v58, %s7066_s9 }
 0x366   : > { %1652 = vrot.lane.b32.xlu0 %v1605_v61, %s7064_s28  ;;  %1634 = vrot.lane.b32.xlu1 %v1461_v58, %s7067_s3 }
 0x36a   : > { %1628 = vrot.lane.b32.xlu0 %v1458_v55, %s7066_s9  ;;  %1656 = vrot.lane.b32.xlu1 %v1605_v61, %s7065_s15 }
 0x36e   : > { %1662 = vrot.lane.b32.xlu0 %v1601_v57, %s7067_s3  ;;  %1660 = vrot.lane.b32.xlu1 %v1605_v61, %s7066_s9 }
 0x372   : > { %1632 = vrot.lane.b32.xlu0 %v1458_v55, %s7067_s3  ;;  %1664 = vrot.lane.b32.xlu1 %v1605_v61, %s7067_s3 }
 0x376   : > { %1666 = vrot.lane.b32.xlu0 %v1601_v57, %s7068_s17  ;;  %1668 = vrot.lane.b32.xlu1 %v1605_v61, %s7068_s17 }
 0x37a   : > { %1636 = vrot.lane.b32.xlu0 %v1458_v55, %s7068_s17  ;;  %1638 = vrot.lane.b32.xlu1 %v1461_v58, %s7068_s17 }
 0x37e   : > { %1674 = vrot.lane.b32.xlu0 %v7623_v62, %s7063_s18  ;;  %1672 = vrot.lane.b32.xlu1 %v7619_v59, %s7063_s18 }
 0x382   : > { %1678 = vrot.lane.b32.xlu1 %v7619_v59, %s7062_s13 }
 0x3b8   : > { %v1617_v63 = vpop.permute.xlu1 %1616  ;;  %v1613_v0 = vpop.permute.xlu0 %1612 }
 0x3bc   : > { %v1621_v1 = vpop.permute.xlu1 %1620  ;;  %v1643_v2 = vpop.permute.xlu0 %1642 }
 0x3bd   : > { %6077 = vmatpush3.xpose.msk.msra.mxu1 %vm1714_vm1, %v1643_v2 }
 0x3be   : > { %6081 = vmatprep.subr.mxu1 %v7059_v26 }
 0x3c0   : > { %v1647_v3 = vpop.permute.xlu0 %1646  ;;  %v1615_v4 = vpop.permute.xlu1 %1614  ;;  %6079 = vmatmul.mubr.msk.f32.vlgmr.msra.gmra.mrb[8].mxu1 %vm1714_vm1, %v1613_v0 }
 0x3c1   : > { %6083 = vmatprep.mubr.msk.f32.mxu1 %vm7060_vm0, %v7059_v26 }
 0x3c4   : > { %v1651_v5 = vpop.permute.xlu0 %1650  ;;  %v1619_v6 = vpop.permute.xlu1 %1618 }
 0x3c8   : > { %v1655_v7 = vpop.permute.xlu0 %1654  ;;  %v1645_v8 = vpop.permute.xlu1 %1644 }
 0x3c9   : > { %6082 = vmatpush3.xpose.msk.msra.mxu1 %vm1714_vm1, %v1645_v8  ;;  %6107 = vmatpush3.xpose.msk.msra.mxu0 %vm1714_vm1, %v1655_v7 }
 0x3ca   : > { %6086 = vmatprep.subr.mxu1 %v7059_v26  ;;  %6116 = vmatprep.subr.mxu0 %v7059_v26 }
 0x3cc   : > { %v1625_v9 = vpop.permute.xlu0 %1624  ;;  %v1623_v10 = vpop.permute.xlu1 %1622  ;;  %6084 = vmatmul.mubr.msk.f32.vlgmr.msra.gmra.mrb[10].mxu1 %vm1714_vm1, %v1615_v4 }
 0x3cd   : > { %6087 = vmatpush3.xpose.msk.msra.mxu1 %vm1714_vm1, %v1647_v3  ;;  %6109 = vmatmul.mubr.msk.f32.vlgmr.msra.gmra.mrb[4].mxu0 %vm1714_vm1, %v1625_v9 }
 0x3ce   : > { %6088 = vmatprep.mubr.msk.f32.mxu1 %vm7060_vm0, %v7059_v26  ;;  %6091 = vmatprep.subr.mxu1 %v7059_v26 }
 0x3cf   : > { %6118 = vmatprep.mubr.msk.f32.mxu0 %vm7060_vm0, %v7059_v26 }
 0x3d0   : > { %v1649_v11 = vpop.permute.xlu0 %1648  ;;  %v1627_v12 = vpop.permute.xlu1 %1626  ;;  %6089 = vmatmul.mubr.msk.f32.vlgmr.msra.gmra.mrb[12].mxu1 %vm1714_vm1, %v1617_v63 }
 0x3d1   : > { %6092 = vmatpush3.xpose.msk.msra.mxu1 %vm1714_vm1, %v1649_v11  ;;  %6093 = vmatprep.mubr.msk.f32.mxu1 %vm7060_vm0, %v7059_v26 }
 0x3d2   : > { %6096 = vmatprep.subr.mxu1 %v7059_v26 }
 0x3d4   : > { %v1659_v13 = vpop.permute.xlu0 %1658  ;;  %v1631_v14 = vpop.permute.xlu1 %1630  ;;  %6094 = vmatmul.mubr.msk.f32.vlgmr.msra.gmra.mrb[14].mxu1 %vm1714_vm1, %v1619_v6 }
 0x3d5   : > { %6097 = vmatpush3.xpose.msk.msra.mxu1 %vm1714_vm1, %v1651_v5  ;;  %6117 = vmatpush3.xpose.msk.msra.mxu0 %vm1714_vm1, %v1659_v13 }
 0x3d6   : > { %6098 = vmatprep.mubr.msk.f32.mxu1 %vm7060_vm0, %v7059_v26  ;;  %6101 = vmatprep.subr.mxu1 %v7059_v26 }
 0x3d7   : > { %6126 = vmatprep.subr.mxu0 %v7059_v26 }
 0x3d8   : > { %v1653_v15 = vpop.permute.xlu0 %1652  ;;  %v1635_v16 = vpop.permute.xlu1 %1634  ;;  %6099 = vmatmul.mubr.msk.f32.vlgmr.msra.gmra.mrb[16].mxu1 %vm1714_vm1, %v1621_v1 }
 0x3d9   : > { %6102 = vmatpush3.xpose.msk.msra.mxu1 %vm1714_vm1, %v1653_v15  ;;  %6103 = vmatprep.mubr.msk.f32.mxu1 %vm7060_vm0, %v7059_v26 }
 0x3da   : > { %6111 = vmatprep.subr.mxu1 %v7059_v26 }
 0x3dc   : > { %v1629_v17 = vpop.permute.xlu0 %1628  ;;  %v1657_v18 = vpop.permute.xlu1 %1656  ;;  %6104 = vmatmul.mubr.msk.f32.vlgmr.msra.gmra.mrb[18].mxu1 %vm1714_vm1, %v1623_v10 }
 0x3dd   : > { %6112 = vmatpush3.xpose.msk.msra.mxu1 %vm1714_vm1, %v1657_v18  ;;  %6119 = vmatmul.mubr.msk.f32.vlgmr.msra.gmra.mrb[6].mxu0 %vm1714_vm1, %v1629_v17 }
 0x3de   : > { %6113 = vmatprep.mubr.msk.f32.mxu1 %vm7060_vm0, %v7059_v26  ;;  %6121 = vmatprep.subr.mxu1 %v7059_v26 }
 0x3df   : > { %6128 = vmatprep.mubr.msk.f32.mxu0 %vm7060_vm0, %v7059_v26 }
 0x3e0   : > { %v1663_v19 = vpop.permute.xlu0 %1662  ;;  %v1661_v20 = vpop.permute.xlu1 %1660  ;;  %6114 = vmatmul.mubr.msk.f32.vlgmr.msra.gmra.mrb[20].mxu1 %vm1714_vm1, %v1627_v12 }
 0x3e1   : > { %6122 = vmatpush3.xpose.msk.msra.mxu1 %vm1714_vm1, %v1661_v20  ;;  %6127 = vmatpush3.xpose.msk.msra.mxu0 %vm1714_vm1, %v1663_v19 }
 0x3e2   : > { %6123 = vmatprep.mubr.msk.f32.mxu1 %vm7060_vm0, %v7059_v26  ;;  %6131 = vmatprep.subr.mxu1 %v7059_v26 }
 0x3e3   : > { %6136 = vmatprep.subr.mxu0 %v7059_v26 }
 0x3e4   : > { %v1633_v21 = vpop.permute.xlu0 %1632  ;;  %v1665_v22 = vpop.permute.xlu1 %1664  ;;  %6124 = vmatmul.mubr.msk.f32.vlgmr.msra.gmra.mrb[22].mxu1 %vm1714_vm1, %v1631_v14 }
 0x3e5   : > { %6129 = vmatmul.mubr.msk.f32.vlgmr.msra.gmra.mrb[8].mxu0 %vm1714_vm1, %v1633_v21  ;;  %6132 = vmatpush3.xpose.msk.msra.mxu1 %vm1714_vm1, %v1665_v22 }
 0x3e6   : > { %6133 = vmatprep.mubr.msk.f32.mxu1 %vm7060_vm0, %v7059_v26  ;;  %6141 = vmatprep.subr.mxu1 %v7059_v26 }
 0x3e7   : > { %6138 = vmatprep.mubr.msk.f32.mxu0 %vm7060_vm0, %v7059_v26 }
 0x3e8   : > { %v1667_v23 = vpop.permute.xlu0 %1666  ;;  %v1669_v24 = vpop.permute.xlu1 %1668  ;;  %6134 = vmatmul.mubr.msk.f32.vlgmr.msra.gmra.mrb[24].mxu1 %vm1714_vm1, %v1635_v16 }
 0x3e9   : > { %6137 = vmatpush3.xpose.msk.msra.mxu0 %vm1714_vm1, %v1667_v23  ;;  %6142 = vmatpush3.xpose.msk.msra.mxu1 %vm1714_vm1, %v1669_v24 }
 0x3ea   : > { %6146 = vmatprep.subr.mxu0 %v7059_v26  ;;  %6143 = vmatprep.mubr.msk.f32.mxu1 %vm7060_vm0, %v7059_v26 }
 0x3eb   : > { %6151 = vmatprep.subr.mxu1 %v7059_v26 }
 0x3ec   : > { %v1637_v25 = vpop.permute.xlu0 %1636  ;;  %v1639_v27 = vpop.permute.xlu1 %1638 }
 0x3ed   : > { %6139 = vmatmul.mubr.msk.f32.vlgmr.msra.gmra.mrb[10].mxu0 %vm1714_vm1, %v1637_v25  ;;  %6144 = vmatmul.mubr.msk.f32.vlgmr.msra.gmra.mrb[26].mxu1 %vm1714_vm1, %v1639_v27 }
 0x3ee   : > { %6147 = vmatpush3.msra.mxu0 %v7619_v59  ;;  %6152 = vmatpush3.msra.mxu1 %v7623_v62 }
 0x3ef   : > { %6148 = vmatprep.mubr.msk.f32.mxu0 %vm7060_vm0, %v7059_v26  ;;  %6156 = vmatprep.subr.mxu0 %v7059_v26 }
 0x3f0   : > { %6153 = vmatprep.mubr.msk.f32.mxu1 %vm7060_vm0, %v7059_v26  ;;  %6161 = vmatprep.subr.mxu1 %v7059_v26  ;;  %v7807_v12 = vpop.permute.xlu0 %1674  ;;  %v7820_v21 = vpop.permute.xlu1 %1672 }
 0x3f4   : > { %v7824_v22 = vpop.permute.xlu1 %1678 }
 0x41e   : > { %v7739_v28 = vpop.f32.mrb[4].mxu1 }
 0x41f   : > { %v6070_v29 = vpop.f32.mrb[5].mxu1  ;;  %v2900_v30 = vsel %vm2899_vm2, %v7739_v28, -inf }
 0x420   : > { %2901 = vmax.xlane.f32.xlu0 %v2900_v30 }
 0x422   : > { %v7743_v31 = vpop.f32.mrb[6].mxu1 }
 0x423   : > { %v6075_v33 = vpop.f32.mrb[7].mxu1  ;;  %v2903_v34 = vsel %vm2899_vm2, %v7743_v31, -inf }
 0x424   : > { %2904 = vmax.xlane.f32.xlu1 %v2903_v34 }
 0x493   : > { %v7747_v35 = vpop.f32.mrb[8].mxu1 }
 0x494   : > { %v6080_v36 = vpop.f32.mrb[9].mxu1  ;;  %v2906_v37 = vsel %vm2899_vm2, %v7747_v35, -inf }
 0x495   : > { %2907 = vmax.xlane.f32.xlu0 %v2906_v37 }
 0x49f   : > { %v7751_v38 = vpop.f32.mrb[10].mxu1 }
 0x4a0   : > { %v6085_v39 = vpop.f32.mrb[11].mxu1  ;;  %v7753_v40 = vpop.f32.mrb[4].mxu0  ;;  %v2909_v41 = vsel %vm2899_vm2, %v7751_v38, -inf }
 0x4a1   : > { %2910 = vmax.xlane.f32.xlu0 %v2909_v41  ;;  %v6110_v42 = vpop.f32.mrb[5].mxu0  ;;  %v2924_v43 = vsel %vm2899_vm2, %v7753_v40, -inf }
 0x4a2   : > { %2925 = vmax.xlane.f32.xlu1 %v2924_v43 }
 0x4a3   : > { %v7759_v44 = vpop.f32.mrb[12].mxu1 }
 0x4a4   : > { %v6090_v45 = vpop.f32.mrb[13].mxu1  ;;  %v2912_v58 = vsel %vm2899_vm2, %v7759_v44, -inf }
 0x4a7   : > { %v7761_v46 = vpop.f32.mrb[14].mxu1 }
 0x4a8   : > { %v6095_v47 = vpop.f32.mrb[15].mxu1  ;;  %v2915_v48 = vsel %vm2899_vm2, %v7761_v46, -inf }
 0x4a9   : > { %2916 = vmax.xlane.f32.xlu0 %v2915_v48 }
 0x4ab   : > { %v7765_v49 = vpop.f32.mrb[16].mxu1 }
 0x4ac   : > { %v6100_v50 = vpop.f32.mrb[17].mxu1  ;;  %v2918_v9 = vsel %vm2899_vm2, %v7765_v49, -inf }
 0x4ad   : > { %v2902_v14 = vpop.xlane.xlu0 %2901 }
 0x4ae   : > { %v2948_v15 = vsub.f32 %v7739_v28, %v2902_v14 }
 0x4af   : > { %v7767_v51 = vpop.f32.mrb[18].mxu1 }
 0x4b0   : > { %v6105_v52 = vpop.f32.mrb[19].mxu1  ;;  %v7769_v53 = vpop.f32.mrb[6].mxu0  ;;  %v2921_v10 = vsel %vm2899_vm2, %v7767_v51, -inf  ;;  %v2964_v17 = vmul.f32 1.442695, %v2948_v15 }
 0x4b1   : > { %v6120_v54 = vpop.f32.mrb[7].mxu0  ;;  %v2930_v55 = vsel %vm2899_vm2, %v7769_v53, -inf  ;;  %v2905_v23 = vpop.xlane.xlu1 %2904 }
 0x4b2   : > { %2931 = vmax.xlane.f32.xlu1 %v2930_v55  ;;  %6597 = vpow2.f32 %v2964_v17  ;;  %v2949_v24 = vsub.f32 %v7743_v31, %v2905_v23 }
 0x4b3   : > { %v7773_v56 = vpop.f32.mrb[20].mxu1 }
 0x4b4   : > { %v6115_v57 = vpop.f32.mrb[21].mxu1  ;;  %v2927_v11 = vsel %vm2899_vm2, %v7773_v56, -inf  ;;  %v2966_v25 = vmul.f32 1.442695, %v2949_v24 }
 0x4b6   : > { %2913 = vmax.xlane.f32.xlu1 %v2912_v58  ;;  %6599 = vpow2.f32 %v2966_v25 }
 0x4b7   : > { %v7777_v60 = vpop.f32.mrb[22].mxu1 }
 0x4b8   : > { %v6125_v61 = vpop.f32.mrb[23].mxu1  ;;  %v7779_v63 = vpop.f32.mrb[8].mxu0  ;;  %v2933_v13 = vsel %vm2899_vm2, %v7777_v60, -inf }
 0x4b9   : > { %v6130_v0 = vpop.f32.mrb[9].mxu0  ;;  %v2936_v1 = vsel %vm2899_vm2, %v7779_v63, -inf }
 0x4ba   : > { %2937 = vmax.xlane.f32.xlu1 %v2936_v1 }
 0x4bb   : > { %v7783_v2 = vpop.f32.mrb[24].mxu1 }
 0x4bc   : > { %v6135_v3 = vpop.f32.mrb[25].mxu1  ;;  %v2939_v16 = vsel %vm2899_vm2, %v7783_v2, -inf  ;;  %v7816_v19 = vpop.eup %6597 }
 0x4bd   : > { %v2996_v20 = vsel %vm2899_vm2, %v7816_v19, 0.0 }
 0x4bf   : > { %1684 = vrot.lane.b32.xlu0 %v7619_v59, %s7064_s28 }
 0x4c0   : > { %v7787_v4 = vpop.f32.mrb[10].mxu0  ;;  %v7789_v5 = vpop.f32.mrb[26].mxu1 }
 0x4c1   : > { %v6140_v6 = vpop.f32.mrb[11].mxu0  ;;  %v6145_v7 = vpop.f32.mrb[27].mxu1  ;;  %v2942_v8 = vsel %vm2899_vm2, %v7787_v4, -inf  ;;  %v2945_v18 = vsel %vm2899_vm2, %v7789_v5, -inf }
 0x4c2   : > { %2943 = vmax.xlane.f32.xlu1 %v2942_v8  ;;  %v7827_v28 = vpop.eup %6599 }
 0x4c3   : > { %1690 = vrot.lane.b32.xlu0 %v7619_v59, %s7065_s15  ;;  %v2999_v33 = vsel %vm2899_vm2, %v7827_v28, 0.0 }
 0x4c6   : > { %2919 = vmax.xlane.f32.xlu1 %v2918_v9 }
 0x4d7   : > { %1680 = vrot.lane.b32.xlu1 %v7623_v62, %s7062_s13 }
 0x4db   : > { %1686 = vrot.lane.b32.xlu1 %v7623_v62, %s7064_s28 }
 0x4df   : > { %1692 = vrot.lane.b32.xlu1 %v7623_v62, %s7065_s15 }
 0x4e2   : > { %2922 = vmax.xlane.f32.xlu0 %v2921_v10 }
 0x4e6   : > { %2928 = vmax.xlane.f32.xlu0 %v2927_v11 }
 0x4ea   : > { %2934 = vmax.xlane.f32.xlu0 %v2933_v13 }
 0x4ee   : > { %2940 = vmax.xlane.f32.xlu0 %v2939_v16 }
 0x4f2   : > { %2946 = vmax.xlane.f32.xlu0 %v2945_v18 }
 0x503   : > { %2997 = vadd.xlane.f32.xlu1 %v2996_v20 }
 0x508   : > { %1696 = vrot.lane.b32.xlu0 %v7619_v59, %s7066_s9 }
 0x522   : > { %v2908_v27 = vpop.xlane.xlu0 %2907 }
 0x523   : > { %v2950_v29 = vsub.f32 %v7747_v35, %v2908_v27 }
 0x525   : > { %v2968_v30 = vmul.f32 1.442695, %v2950_v29 }
 0x527   : > { %6601 = vpow2.f32 %v2968_v30  ;;  %3000 = vadd.xlane.f32.xlu0 %v2999_v33 }
 0x52e   : > { %v2911_v34 = vpop.xlane.xlu0 %2910 }
 0x52f   : > { %v2951_v36 = vsub.f32 %v7751_v38, %v2911_v34  ;;  %v2926_v37 = vpop.xlane.xlu1 %2925 }
 0x530   : > { %v2956_v39 = vsub.f32 %v7753_v40, %v2926_v37 }
 0x531   : > { %v7834_v31 = vpop.eup %6601  ;;  %v2970_v41 = vmul.f32 1.442695, %v2951_v36 }
 0x532   : > { %v2980_v42 = vmul.f32 1.442695, %v2956_v39  ;;  %v3002_v43 = vsel %vm2899_vm2, %v7834_v31, 0.0 }
 0x533   : > { %6603 = vpow2.f32 %v2970_v41  ;;  %3003 = vadd.xlane.f32.xlu1 %v3002_v43 }
 0x534   : > { %6605 = vpow2.f32 %v2980_v42 }
 0x536   : > { %v2917_v35 = vpop.xlane.xlu0 %2916 }
 0x537   : > { %v2953_v45 = vsub.f32 %v7761_v46, %v2917_v35 }
 0x539   : > { %v2974_v47 = vmul.f32 1.442695, %v2953_v45 }
 0x53a   : > { %v7878_v20 = vpop.permute.xlu0 %1684 }
 0x53b   : > { %6607 = vpow2.f32 %v2974_v47 }
 0x53d   : > { %v7839_v48 = vpop.eup %6603 }
 0x53e   : > { %v7841_v38 = vpop.eup %6605  ;;  %v3005_v40 = vsel %vm2899_vm2, %v7839_v48, 0.0  ;;  %v7880_v23 = vpop.permute.xlu0 %1690 }
 0x53f   : > { %3006 = vadd.xlane.f32.xlu0 %v3005_v40  ;;  %v2932_v50 = vpop.xlane.xlu1 %2931  ;;  %v3020_v52 = vsel %vm2899_vm2, %v7841_v38, 0.0 }
 0x540   : > { %v2958_v54 = vsub.f32 %v7769_v53, %v2932_v50  ;;  %3021 = vadd.xlane.f32.xlu1 %v3020_v52 }
 0x542   : > { %v2984_v55 = vmul.f32 1.442695, %v2958_v54 }
 0x543   : > { %v2914_v57 = vpop.xlane.xlu1 %2913 }
 0x544   : > { %6609 = vpow2.f32 %v2984_v55  ;;  %v2952_v46 = vsub.f32 %v7759_v44, %v2914_v57 }
 0x545   : > { %v7849_v58 = vpop.eup %6607 }
 0x546   : > { %v2972_v61 = vmul.f32 1.442695, %v2952_v46  ;;  %v3011_v0 = vsel %vm2899_vm2, %v7849_v58, 0.0 }
 0x547   : > { %3012 = vadd.xlane.f32.xlu0 %v3011_v0  ;;  %v2938_v1 = vpop.xlane.xlu1 %2937 }
 0x548   : > { %6611 = vpow2.f32 %v2972_v61  ;;  %v2960_v3 = vsub.f32 %v7779_v63, %v2938_v1 }
 0x54a   : > { %v2988_v6 = vmul.f32 1.442695, %v2960_v3 }
 0x54c   : > { %6613 = vpow2.f32 %v2988_v6 }
 0x54e   : > { %v7854_v53 = vpop.eup %6609 }
 0x54f   : > { %v2944_v7 = vpop.xlane.xlu1 %2943  ;;  %v3026_v8 = vsel %vm2899_vm2, %v7854_v53, 0.0 }
 0x550   : > { %v2962_v44 = vsub.f32 %v7787_v4, %v2944_v7  ;;  %3027 = vadd.xlane.f32.xlu1 %v3026_v8 }
 0x552   : > { %v7859_v9 = vpop.eup %6611  ;;  %v2992_v10 = vmul.f32 1.442695, %v2962_v44 }
 0x553   : > { %v2920_v11 = vpop.xlane.xlu1 %2919  ;;  %v3008_v13 = vsel %vm2899_vm2, %v7859_v9, 0.0 }
 0x554   : > { %6615 = vpow2.f32 %v2992_v10  ;;  %v2954_v63 = vsub.f32 %v7765_v49, %v2920_v11  ;;  %3009 = vadd.xlane.f32.xlu1 %v3008_v13 }
 0x556   : > { %v7864_v14 = vpop.eup %6613  ;;  %v2976_v15 = vmul.f32 1.442695, %v2954_v63 }
 0x557   : > { %v3032_v16 = vsel %vm2899_vm2, %v7864_v14, 0.0  ;;  %v1681_v35 = vpop.permute.xlu1 %1680 }
 0x558   : > { %6617 = vpow2.f32 %v2976_v15  ;;  %3033 = vadd.xlane.f32.xlu1 %v3032_v16 }
 0x55b   : > { %v1687_v40 = vpop.permute.xlu1 %1686 }
 0x55d   : > { %1702 = vrot.lane.b32.xlu0 %v7619_v59, %s7067_s3 }
 0x55e   : > { %v7870_v4 = vpop.eup %6615 }
 0x55f   : > { %v3038_v17 = vsel %vm2899_vm2, %v7870_v4, 0.0  ;;  %v7909_v54 = vpop.permute.xlu1 %1692 }
 0x560   : > { %3039 = vadd.xlane.f32.xlu1 %v3038_v17 }
 0x562   : > { %v7874_v18 = vpop.eup %6617 }
 0x563   : > { %v3014_v49 = vsel %vm2899_vm2, %v7874_v18, 0.0 }
 0x564   : > { %3015 = vadd.xlane.f32.xlu1 %v3014_v49 }
 0x56f   : > { %v2923_v24 = vpop.xlane.xlu0 %2922 }
 0x570   : > { %v2955_v25 = vsub.f32 %v7767_v51, %v2923_v24 }
 0x572   : > { %v2978_v27 = vmul.f32 1.442695, %v2955_v25 }
 0x573   : > { %v2929_v29 = vpop.xlane.xlu0 %2928 }
 0x574   : > { %6619 = vpow2.f32 %v2978_v27  ;;  %v2957_v30 = vsub.f32 %v7773_v56, %v2929_v29 }
 0x575   : > { %1698 = vrot.lane.b32.xlu1 %v7623_v62, %s7066_s9 }
 0x576   : > { %v2982_v33 = vmul.f32 1.442695, %v2957_v30 }
 0x577   : > { %v2935_v34 = vpop.xlane.xlu0 %2934 }
 0x578   : > { %6621 = vpow2.f32 %v2982_v33  ;;  %v2959_v36 = vsub.f32 %v7777_v60, %v2935_v34 }
 0x579   : > { %1704 = vrot.lane.b32.xlu1 %v7623_v62, %s7067_s3 }
 0x57a   : > { %v2986_v37 = vmul.f32 1.442695, %v2959_v36 }
 0x57b   : > { %v2941_v39 = vpop.xlane.xlu0 %2940 }
 0x57c   : > { %6623 = vpow2.f32 %v2986_v37  ;;  %v2961_v51 = vsub.f32 %v7783_v2, %v2941_v39 }
 0x57d   : > { %1710 = vrot.lane.b32.xlu1 %v7623_v62, %s7068_s17 }
 0x57e   : > { %v7892_v56 = vpop.eup %6619  ;;  %v2990_v41 = vmul.f32 1.442695, %v2961_v51 }
 0x57f   : > { %v2947_v42 = vpop.xlane.xlu0 %2946  ;;  %v3017_v43 = vsel %vm2899_vm2, %v7892_v56, 0.0 }
 0x580   : > { %6625 = vpow2.f32 %v2990_v41  ;;  %v2963_v60 = vsub.f32 %v7789_v5, %v2947_v42  ;;  %3018 = vadd.xlane.f32.xlu0 %v3017_v43 }
 0x582   : > { %v7897_v45 = vpop.eup %6621  ;;  %v2994_v47 = vmul.f32 1.442695, %v2963_v60 }
 0x583   : > { %v3023_v2 = vsel %vm2899_vm2, %v7897_v45, 0.0  ;;  %v1697_v1 = vpop.permute.xlu0 %1696 }
 0x584   : > { %6627 = vpow2.f32 %v2994_v47  ;;  %3024 = vadd.xlane.f32.xlu0 %v3023_v2 }
 0x586   : > { %v7901_v62 = vpop.eup %6623 }
 0x587   : > { %v3029_v50 = vsel %vm2899_vm2, %v7901_v62, 0.0 }
 0x588   : > { %3030 = vadd.xlane.f32.xlu0 %v3029_v50 }
 0x58a   : > { %v7905_v52 = vpop.eup %6625 }
 0x58b   : > { %v3035_v5 = vsel %vm2899_vm2, %v7905_v52, 0.0 }
 0x58c   : > { %3036 = vadd.xlane.f32.xlu0 %v3035_v5 }
 0x58e   : > { %v7911_v55 = vpop.eup %6627 }
 0x58f   : > { %v3041_v57 = vsel %vm2899_vm2, %v7911_v55, 0.0 }
 0x590   : > { %3042 = vadd.xlane.f32.xlu0 %v3041_v57  ;;  %v2998_v46 = vpop.xlane.xlu1 %2997 }
 0x591   : > { %6629 = vrcp.f32 %v2998_v46 }
 0x59b   : > { %v6630_v61 = vpop.eup %6629 }
 0x59c   : > { %v3060_v0 = vmul.f32 %v6630_v61, %v7816_v19 }
 0x59e   : > { %6149 = vmatmul.mubr.msk.f32.vlgmr.msra.gmra.mrb[12].mxu0 %vm2899_vm2, %v3060_v0 }
 0x59f   : > { %6157 = vmatpush3.msra.mxu0 %v7820_v21  ;;  %6158 = vmatprep.mubr.msk.f32.mxu0 %vm7060_vm0, %v7059_v26 }
 0x5a0   : > { %6166 = vmatprep.subr.mxu0 %v7059_v26 }
 0x5a6   : > { %1708 = vrot.lane.b32.xlu0 %v7619_v59, %s7068_s17 }
 0x5b4   : > { %v3001_v3 = vpop.xlane.xlu0 %3000 }
 0x5b5   : > { %6631 = vrcp.f32 %v3001_v3  ;;  %v6510_v3 = vld [vmem:[%s7523_s25 + $0x8] sm:$0xff]  }
 0x5bf   : > { %v6632_v6 = vpop.eup %6631 }
 0x5c0   : > { %v3061_v7 = vmul.f32 %v6632_v6, %v7827_v28  ;;  %v3004_v8 = vpop.xlane.xlu1 %3003  ;;  %v6511_v6 = vld [vmem:[%s7523_s25 + $0x10] sm:$0xff]  }
 0x5c1   : > { %6633 = vrcp.f32 %v3004_v8 }
 0x5c2   : > { %6154 = vmatmul.mubr.msk.f32.vlgmr.msra.gmra.mrb[28].mxu1 %vm2899_vm2, %v3061_v7 }
 0x5c3   : > { %6162 = vmatpush3.msra.mxu1 %v7807_v12  ;;  %6163 = vmatprep.mubr.msk.f32.mxu1 %vm7060_vm0, %v7059_v26 }
 0x5c4   : > { %6171 = vmatprep.subr.mxu1 %v7059_v26 }
 0x5cb   : > { %v6634_v19 = vpop.eup %6633 }
 0x5cc   : > { %v3062_v59 = vmul.f32 %v6634_v19, %v7834_v31  ;;  %v3007_v21 = vpop.xlane.xlu0 %3006 }
 0x5cd   : > { %6635 = vrcp.f32 %v3007_v21  ;;  %v3022_v10 = vpop.xlane.xlu1 %3021 }
 0x5ce   : > { %6159 = vmatmul.mubr.msk.f32.vlgmr.msra.gmra.mrb[14].mxu0 %vm2899_vm2, %v3062_v59 }
 0x5cf   : > { %6167 = vmatpush3.msra.mxu0 %v7824_v22  ;;  %6168 = vmatprep.mubr.msk.f32.mxu0 %vm7060_vm0, %v7059_v26 }
 0x5d0   : > { %6176 = vmatprep.subr.mxu0 %v7059_v26 }
 0x5d4   : > { %v3013_v12 = vpop.xlane.xlu0 %3012 }
 0x5d5   : > { %6637 = vrcp.f32 %v3013_v12 }
 0x5d7   : > { %v6636_v28 = vpop.eup %6635 }
 0x5d8   : > { %v3063_v44 = vmul.f32 %v6636_v28, %v7839_v48 }
 0x5da   : > { %6164 = vmatmul.mubr.msk.f32.vlgmr.msra.gmra.mrb[30].mxu1 %vm2899_vm2, %v3063_v44 }
 0x5db   : > { %6172 = vmatpush3.msra.mxu1 %v1681_v35  ;;  %6173 = vmatprep.mubr.msk.f32.mxu1 %vm7060_vm0, %v7059_v26 }
 0x5dc   : > { %6181 = vmatprep.subr.mxu1 %v7059_v26 }
 0x5dd   : > { %v3028_v22 = vpop.xlane.xlu1 %3027 }
 0x5df   : > { %v6638_v31 = vpop.eup %6637 }
 0x5e0   : > { %v3065_v11 = vmul.f32 %v6638_v31, %v7849_v58 }
 0x5e1   : > { %v3010_v13 = vpop.xlane.xlu1 %3009 }
 0x5e2   : > { %6639 = vrcp.f32 %v3010_v13  ;;  %6174 = vmatmul.mubr.msk.f32.vlgmr.msra.gmra.mrb[32].mxu1 %vm2899_vm2, %v3065_v11  ;;  %v6512_v11 = vld [vmem:[%s7523_s25 + $0x18] sm:$0xff]   ;;  %v6513_v13 = vld [vmem:[%s7523_s25 + $0x20] sm:$0xff]  }
 0x5e3   : > { %6182 = vmatpush3.msra.mxu1 %v1687_v40  ;;  %6183 = vmatprep.mubr.msk.f32.mxu1 %vm7060_vm0, %v7059_v26 }
 0x5e4   : > { %6191 = vmatprep.subr.mxu1 %v7059_v26 }
 0x5e5   : > { %v3034_v48 = vpop.xlane.xlu1 %3033 }
 0x5ec   : > { %v6640_v63 = vpop.eup %6639 }
 0x5ed   : > { %v3064_v15 = vmul.f32 %v6640_v63, %v7859_v9  ;;  %v3040_v16 = vpop.xlane.xlu1 %3039 }
 0x5ef   : > { %6169 = vmatmul.mubr.msk.f32.vlgmr.msra.gmra.mrb[16].mxu0 %vm2899_vm2, %v3064_v15 }
 0x5f0   : > { %6177 = vmatpush3.msra.mxu0 %v7878_v20  ;;  %6178 = vmatprep.mubr.msk.f32.mxu0 %vm7060_vm0, %v7059_v26 }
 0x5f1   : > { %v3016_v58 = vpop.xlane.xlu1 %3015  ;;  %6186 = vmatprep.subr.mxu0 %v7059_v26 }
 0x5f2   : > { %6641 = vrcp.f32 %v3016_v58  ;;  %v6515_v58 = vld [vmem:[%s7523_s25 + $0x30] sm:$0xff]  }
 0x5f3   : > { %6643 = vrcp.f32 %v3022_v10 }
 0x5f4   : > { %6645 = vrcp.f32 %v3028_v22 }
 0x5f5   : > { %6647 = vrcp.f32 %v3034_v48  ;;  %v6514_v48 = vld [vmem:[%s7523_s25 + $0x28] sm:$0xff]  }
 0x5fc   : > { %v6642_v17 = vpop.eup %6641 }
 0x5fd   : > { %v3066_v49 = vmul.f32 %v6642_v17, %v7874_v18  ;;  %v6644_v24 = vpop.eup %6643 }
 0x5fe   : > { %v3068_v9 = vmul.f32 %v6644_v24, %v7841_v38  ;;  %v6646_v20 = vpop.eup %6645 }
 0x5ff   : > { %6179 = vmatmul.mubr.msk.f32.vlgmr.msra.gmra.mrb[18].mxu0 %vm2899_vm2, %v3066_v49  ;;  %v3070_v18 = vmul.f32 %v6646_v20, %v7854_v53  ;;  %v6648_v25 = vpop.eup %6647 }
 0x600   : > { %6187 = vmatpush3.msra.mxu0 %v7880_v23  ;;  %6188 = vmatprep.mubr.msk.f32.mxu0 %vm7060_vm0, %v7059_v26  ;;  %v1703_v23 = vpop.permute.xlu0 %1702  ;;  %v3072_v38 = vmul.f32 %v6648_v25, %v7864_v14  ;;  %v1699_v14 = vpop.permute.xlu1 %1698 }
 0x601   : > { %6196 = vmatprep.subr.mxu0 %v7059_v26 }
 0x603   : > { %6189 = vmatmul.mubr.msk.f32.vlgmr.msra.gmra.mrb[20].mxu0 %vm2899_vm2, %v3068_v9  ;;  %v6516_v9 = vld [vmem:[%s7523_s25 + $0x38] sm:$0xff]  }
 0x604   : > { %6197 = vmatpush3.msra.mxu0 %v1697_v1  ;;  %6198 = vmatprep.mubr.msk.f32.mxu0 %vm7060_vm0, %v7059_v26  ;;  %v1705_v42 = vpop.permute.xlu1 %1704  ;;  %v6509_v1 = vld [vmem:[%s7523_s25] sm:$0xff]  }
 0x605   : > { %6206 = vmatprep.subr.mxu0 %v7059_v26 }
 0x607   : > { %6199 = vmatmul.mubr.msk.f32.vlgmr.msra.gmra.mrb[22].mxu0 %vm2899_vm2, %v3070_v18 }
 0x608   : > { %6207 = vmatpush3.msra.mxu0 %v1703_v23  ;;  %6208 = vmatprep.mubr.msk.f32.mxu0 %vm7060_vm0, %v7059_v26 }
 0x609   : > { %6216 = vmatprep.subr.mxu0 %v7059_v26 }
 0x60b   : > { %6209 = vmatmul.mubr.msk.f32.vlgmr.msra.gmra.mrb[24].mxu0 %vm2899_vm2, %v3072_v38 }
 0x60c   : > { %6218 = vmatprep.mubr.msk.f32.mxu0 %vm7060_vm0, %v7059_v26 }
 0x60d   : > { %v3019_v53 = vpop.xlane.xlu0 %3018 }
 0x60e   : > { %6649 = vrcp.f32 %v3019_v53 }
 0x611   : > { %v3025_v27 = vpop.xlane.xlu0 %3024 }
 0x612   : > { %6651 = vrcp.f32 %v3025_v27 }
 0x613   : > { %6653 = vrcp.f32 %v3040_v16 }
 0x615   : > { %v3031_v29 = vpop.xlane.xlu0 %3030 }
 0x616   : > { %6655 = vrcp.f32 %v3031_v29 }
 0x618   : > { %v6650_v30 = vpop.eup %6649 }
 0x619   : > { %v3067_v33 = vmul.f32 %v6650_v30, %v7892_v56  ;;  %v3037_v34 = vpop.xlane.xlu0 %3036 }
 0x61a   : > { %6657 = vrcp.f32 %v3037_v34 }
 0x61b   : > { %6184 = vmatmul.mubr.msk.f32.vlgmr.msra.gmra.mrb[34].mxu1 %vm2899_vm2, %v3067_v33 }
 0x61c   : > { %v6652_v36 = vpop.eup %6651  ;;  %6192 = vmatpush3.msra.mxu1 %v7909_v54  ;;  %6193 = vmatprep.mubr.msk.f32.mxu1 %vm7060_vm0, %v7059_v26 }
 0x61d   : > { %v3069_v37 = vmul.f32 %v6652_v36, %v7897_v45  ;;  %v3043_v39 = vpop.xlane.xlu0 %3042  ;;  %6201 = vmatprep.subr.mxu1 %v7059_v26  ;;  %v6654_v51 = vpop.eup %6653 }
 0x61e   : > { %6659 = vrcp.f32 %v3043_v39  ;;  %v3074_v41 = vmul.f32 %v6654_v51, %v7870_v4  ;;  %v1711_v4 = vpop.permute.xlu1 %1710 }
 0x61f   : > { %6194 = vmatmul.mubr.msk.f32.vlgmr.msra.gmra.mrb[36].mxu1 %vm2899_vm2, %v3069_v37 }
 0x620   : > { %v6656_v56 = vpop.eup %6655  ;;  %6202 = vmatpush3.msra.mxu1 %v1699_v14  ;;  %6203 = vmatprep.mubr.msk.f32.mxu1 %vm7060_vm0, %v7059_v26 }
 0x621   : > { %v3071_v43 = vmul.f32 %v6656_v56, %v7901_v62  ;;  %v1709_v35 = vpop.permute.xlu0 %1708  ;;  %6211 = vmatprep.subr.mxu1 %v7059_v26 }
 0x622   : > { %6217 = vmatpush3.msra.mxu0 %v1709_v35 }
 0x623   : > { %6204 = vmatmul.mubr.msk.f32.vlgmr.msra.gmra.mrb[38].mxu1 %vm2899_vm2, %v3071_v43  ;;  %6219 = vmatmul.mubr.msk.f32.vlgmr.msra.gmra.mrb[26].mxu0 %vm2899_vm2, %v3074_v41 }
 0x624   : > { %v6658_v60 = vpop.eup %6657  ;;  %6212 = vmatpush3.msra.mxu1 %v1705_v42  ;;  %6213 = vmatprep.mubr.msk.f32.mxu1 %vm7060_vm0, %v7059_v26 }
 0x625   : > { %v3073_v45 = vmul.f32 %v6658_v60, %v7905_v52  ;;  %6221 = vmatprep.subr.mxu1 %v7059_v26  ;;  %6226 = vmatprep.subr.bf16.mxu0 %v7059_v26 }
 0x626   : > { %6242 = vmatprep.mubr.msk.bf16.mxu0 %vm7060_vm0, %v7059_v26  ;;  %6227 = vmatpush3.bf16.msra.mxu0 %v6509_v1 }
 0x627   : > { %6214 = vmatmul.mubr.msk.f32.vlgmr.msra.gmra.mrb[40].mxu1 %vm2899_vm2, %v3073_v45  ;;  %6228 = vmatprep.subr.bf16.mxu0 %v7059_v26 }
 0x628   : > { %v6660_v47 = vpop.eup %6659  ;;  %6222 = vmatpush3.msra.mxu1 %v1711_v4  ;;  %6223 = vmatprep.mubr.msk.f32.mxu1 %vm7060_vm0, %v7059_v26 }
 0x629   : > { %v3075_v2 = vmul.f32 %v6660_v47, %v7911_v55 }
 0x62a   : > { %6229 = vmatpush3.bf16.msra.mxu0 %v6510_v3 }
 0x62b   : > { %6224 = vmatmul.mubr.msk.f32.vlgmr.msra.gmra.mrb[42].mxu1 %vm2899_vm2, %v3075_v2  ;;  %6230 = vmatprep.subr.bf16.mxu0 %v7059_v26 }
 0x62c   : > { %4711 = vmatprep.mubr.bf16.mxu1 %v7061_v32 }
 0x62e   : > { %6231 = vmatpush3.bf16.msra.mxu0 %v6511_v6 }
 0x62f   : > { %6232 = vmatprep.subr.bf16.mxu0 %v7059_v26 }
 0x632   : > { %6233 = vmatpush3.bf16.msra.mxu0 %v6512_v11  ;;  %v6686_v11 = vld [vmem:[#allocation2 + $0x8] sm:$0xff] }
 0x633   : > { %6234 = vmatprep.subr.bf16.mxu0 %v7059_v26 }
 0x636   : > { %6235 = vmatpush3.bf16.msra.mxu0 %v6513_v13 }
 0x637   : > { %6236 = vmatprep.subr.bf16.mxu0 %v7059_v26 }
 0x63a   : > { %6237 = vmatpush3.bf16.msra.mxu0 %v6514_v48 }
 0x63b   : > { %6238 = vmatprep.subr.bf16.mxu0 %v7059_v26 }
 0x63e   : > { %6239 = vmatpush3.bf16.msra.mxu0 %v6515_v58  ;;  %v6522_v58 = vld [vmem:[%s7529_s27 + $0xc] ss:$16 sps:$4 sm:$0xff]  }
 0x63f   : > { %6240 = vmatprep.subr.bf16.mxu0 %v7059_v26 }
 0x642   : > { %6241 = vmatpush3.bf16.msra.mxu0 %v6516_v9 }
 0x643   : > { %4722 = vmatprep.subr.bf16.mxu0 %v6522_v58  ;;  %v6570_v58 = vld [vmem:[%s7531_s7 + $0xc8] sm:$0xff]  }
 0x671   : > { %v7999_v62 = vpop.f32.mrb[12].mxu0 }
 0x672   : > { %v6150_v40 = vpop.f32.mrb[13].mxu0 }
 0x695   : > { %v8001_v50 = vpop.f32.mrb[28].mxu1 }
 0x696   : > { %v6155_v52 = vpop.f32.mrb[29].mxu1 }
 0x6a1   : > { %v3291_v5 = vpop.f32.mrb[14].mxu0 }
 0x6a2   : > { %v6160_v54 = vpop.f32.mrb[15].mxu0 }
 0x6ad   : > { %v3364_v57 = vpop.f32.mrb[30].mxu1 }
 0x6ae   : > { %v6441_v46 = vpack.i.bf16 %v3364_v57, %v3291_v5  ;;  %v6165_v61 = vpop.f32.mrb[31].mxu1 }
 0x6b0   : > { %6442 = vrot.lane.b32.xlu0 %v6441_v46, %s7068_s17 }
 0x6b5   : > { %v3510_v55 = vpop.f32.mrb[32].mxu1 }
 0x6b6   : > { %v6175_v0 = vpop.f32.mrb[33].mxu1 }
 0x6c2   : > { %v3437_v7 = vpop.f32.mrb[16].mxu0 }
 0x6c3   : > { %v6446_v8 = vpack.i.bf16 %v3510_v55, %v3437_v7  ;;  %v6170_v19 = vpop.f32.mrb[17].mxu0 }
 0x6c5   : > { %6447 = vrot.lane.b32.xlu1 %v6446_v8, %s7067_s3 }
 0x6d2   : > { %v3583_v59 = vpop.f32.mrb[18].mxu0 }
 0x6d3   : > { %v6180_v21 = vpop.f32.mrb[19].mxu0 }
 0x6d6   : > { %v3729_v12 = vpop.f32.mrb[20].mxu0 }
 0x6d7   : > { %v6190_v28 = vpop.f32.mrb[21].mxu0 }
 0x6da   : > { %v3875_v44 = vpop.f32.mrb[22].mxu0 }
 0x6db   : > { %v6200_v10 = vpop.f32.mrb[23].mxu0 }
 0x6de   : > { %v4021_v22 = vpop.f32.mrb[24].mxu0 }
 0x6df   : > { %v6210_v31 = vpop.f32.mrb[25].mxu0 }
 0x6ee   : > { %v3656_v63 = vpop.f32.mrb[34].mxu1 }
 0x6ef   : > { %v6451_v15 = vpack.i.bf16 %v3656_v63, %v3583_v59  ;;  %v6185_v16 = vpop.f32.mrb[35].mxu1  ;;  %v6517_v63 = vld [vmem:[%s7529_s27] ss:$16 sps:$4 sm:$0xff]  }
 0x6f0   : > { %v6520_v16 = vld [vmem:[%s7529_s27 + $0x8] ss:$16 sps:$4 sm:$0xff]  }
 0x6f1   : > { %6452 = vrot.lane.b32.xlu0 %v6451_v15, %s7066_s9  ;;  %v6519_v15 = vld [vmem:[%s7529_s27 + $0x4] ss:$16 sps:$4 sm:$0xff]  }
 0x6f2   : > { %v3802_v17 = vpop.f32.mrb[36].mxu1  ;;  %4679 = vmatprep.subr.bf16.mxu1 %v6519_v15  ;;  %v6568_v15 = vld [vmem:[%s7531_s7 + $0x80] sm:$0xff]  }
 0x6f3   : > { %v6456_v49 = vpack.i.bf16 %v3802_v17, %v3729_v12  ;;  %v6195_v24 = vpop.f32.mrb[37].mxu1  ;;  %v6525_v17 = vld [vmem:[%s7529_s27 + $0x24] ss:$16 sps:$4 sm:$0xff]   ;;  %4680 = vmatpush1.bf16.msra.mxu1 %v6517_v63 }
 0x6f4   : > { %4681 = vmatprep.subr.bf16.mxu1 %v6525_v17  ;;  %v6526_v24 = vld [vmem:[%s7529_s27 + $0x28] ss:$16 sps:$4 sm:$0xff]   ;;  %v6567_v63 = vld [vmem:[%s7531_s7] sm:$0xff]  }
 0x6f5   : > { %6457 = vrot.lane.b32.xlu1 %v6456_v49, %s7065_s15  ;;  %v6523_v49 = vld [vmem:[%s7529_s27 + $0x20] ss:$16 sps:$4 sm:$0xff]   ;;  %v6571_v17 = vld [vmem:[%s7531_s7 + $0x8] sm:$0xff]  }
 0x6f6   : > { %v3948_v20 = vpop.f32.mrb[38].mxu1  ;;  %v4167_v18 = vpop.f32.mrb[26].mxu0 }
 0x6f7   : > { %v6461_v25 = vpack.i.bf16 %v3948_v20, %v3875_v44  ;;  %v6205_v23 = vpop.f32.mrb[39].mxu1  ;;  %v6220_v38 = vpop.f32.mrb[27].mxu0  ;;  %v6685_v44 = vld [vmem:[#allocation2] sm:$0xff]  ;;  %4682 = vmatpush1.bf16.msra.mxu1 %v6523_v49  ;;  %v6573_v49 = vld [vmem:[%s7531_s7 + $0x50] sm:$0xff]  }
 0x6f9   : > { %6462 = vrot.lane.b32.xlu0 %v6461_v25, %s7064_s28 }
 0x6fa   : > { %v4094_v53 = vpop.f32.mrb[40].mxu1 }
 0x6fb   : > { %v6466_v27 = vpack.i.bf16 %v4094_v53, %v4021_v22  ;;  %v6215_v29 = vpop.f32.mrb[41].mxu1 }
 0x6fc   : > { %v6531_v29 = vld [vmem:[%s7529_s27 + $0x44] ss:$16 sps:$4 sm:$0xff]  }
 0x6fd   : > { %6467 = vrot.lane.b32.xlu1 %v6466_v27, %s7062_s13  ;;  %4683 = vmatprep.subr.bf16.mxu1 %v6531_v29  ;;  %v6583_v29 = vld [vmem:[%s7531_s7 + $0x20] sm:$0xff]  }
 0x6fe   : > { %v4240_v30 = vpop.f32.mrb[42].mxu1 }
 0x6ff   : > { %v6471_v33 = vpack.i.bf16 %v4240_v30, %v4167_v18  ;;  %v6225_v34 = vpop.f32.mrb[43].mxu1  ;;  %v6534_v30 = vld [vmem:[%s7529_s27 + $0x4c] ss:$16 sps:$4 sm:$0xff]  }
 0x700   : > { %v6532_v34 = vld [vmem:[%s7529_s27 + $0x48] ss:$16 sps:$4 sm:$0xff]  }
 0x701   : > { %6472 = vrot.lane.b32.xlu0 %v6471_v33, %s7063_s18  ;;  %v6529_v33 = vld [vmem:[%s7529_s27 + $0x40] ss:$16 sps:$4 sm:$0xff]  }
 0x702   : > { %4684 = vmatpush1.bf16.msra.mxu1 %v6529_v33  ;;  %v6585_v33 = vld [vmem:[%s7531_s7 + $0x68] sm:$0xff]  }
 0x722   : > { %v6443_v26 = vpop.permute.xlu0 %6442 }
 0x723   : > { %v6445_v39 = vunpack.i.h.bf16 %v6443_v26  ;;  %v6444_v51 = vunpack.i.l.bf16 %v6443_v26  ;;  %v6537_v26 = vld [vmem:[%s7529_s27 + $0x64] ss:$16 sps:$4 sm:$0xff]  }
 0x724   : > { %4685 = vmatprep.subr.bf16.mxu1 %v6537_v26  ;;  %v6587_v26 = vld [vmem:[%s7531_s7 + $0x28] sm:$0xff]  }
 0x725   : > { %v4301_v47 = vsel %vm1714_vm1, %v8001_v50, %v6445_v39  ;;  %v4300_v2 = vsel %vm1714_vm1, %v7999_v62, %v6444_v51  ;;  %v6543_v39 = vld [vmem:[%s7529_s27 + $0x84] ss:$16 sps:$4 sm:$0xff]   ;;  %v6546_v51 = vld [vmem:[%s7529_s27 + $0x8c] ss:$16 sps:$4 sm:$0xff]  }
 0x737   : > { %v6448_v14 = vpop.permute.xlu1 %6447 }
 0x738   : > { %v6450_v56 = vunpack.i.h.bf16 %v6448_v14  ;;  %v6449_v41 = vunpack.i.l.bf16 %v6448_v14  ;;  %v6540_v14 = vld [vmem:[%s7529_s27 + $0x6c] ss:$16 sps:$4 sm:$0xff]  }
 0x73a   : > { %v4304_v5 = vsel %vm4302_vm3, %v4301_v47, %v6450_v56  ;;  %v4303_v54 = vsel %vm4302_vm3, %v4300_v2, %v6449_v41  ;;  %v6541_v56 = vld [vmem:[%s7529_s27 + $0x80] ss:$16 sps:$4 sm:$0xff]   ;;  %v6544_v41 = vld [vmem:[%s7529_s27 + $0x88] ss:$16 sps:$4 sm:$0xff]  }
 0x73b   : > { %v6553_v47 = vld [vmem:[%s7529_s27 + $0xc0] ss:$16 sps:$4 sm:$0xff]   ;;  %v6556_v2 = vld [vmem:[%s7529_s27 + $0xc8] ss:$16 sps:$4 sm:$0xff]  }
 0x763   : > { %v6453_v36 = vpop.permute.xlu0 %6452 }
 0x764   : > { %v6455_v43 = vunpack.i.h.bf16 %v6453_v36  ;;  %v6454_v35 = vunpack.i.l.bf16 %v6453_v36  ;;  %v6535_v36 = vld [vmem:[%s7529_s27 + $0x60] ss:$16 sps:$4 sm:$0xff]  }
 0x765   : > { %4686 = vmatpush1.bf16.msra.mxu1 %v6535_v36  ;;  %v6589_v36 = vld [vmem:[%s7531_s7 + $0x70] sm:$0xff]  }
 0x766   : > { %v4307_v61 = vsel %vm4305_vm4, %v4304_v5, %v6455_v43  ;;  %v4306_v55 = vsel %vm4305_vm4, %v4303_v54, %v6454_v35  ;;  %4687 = vmatprep.subr.bf16.mxu1 %v6543_v39  ;;  %v6552_v43 = vld [vmem:[%s7529_s27 + $0xac] ss:$16 sps:$4 sm:$0xff]   ;;  %v6547_v35 = vld [vmem:[%s7529_s27 + $0xa0] ss:$16 sps:$4 sm:$0xff]   ;;  %v6562_v54 = vld [vmem:[%s7529_s27 + $0xe8] ss:$16 sps:$4 sm:$0xff]  }
 0x767   : > { %v6458_v37 = vpop.permute.xlu1 %6457  ;;  %v6559_v5 = vld [vmem:[%s7529_s27 + $0xe0] ss:$16 sps:$4 sm:$0xff]  }
 0x768   : > { %v6460_v60 = vunpack.i.h.bf16 %v6458_v37  ;;  %v6459_v45 = vunpack.i.l.bf16 %v6458_v37  ;;  %v6538_v37 = vld [vmem:[%s7529_s27 + $0x68] ss:$16 sps:$4 sm:$0xff]   ;;  %v6591_v39 = vld [vmem:[%s7531_s7 + $0x30] sm:$0xff]  }
 0x769   : > { %4688 = vmatpush1.bf16.msra.mxu1 %v6541_v56  ;;  %v6593_v56 = vld [vmem:[%s7531_s7 + $0x78] sm:$0xff]  }
 0x76a   : > { %v4310_v0 = vsel %vm4308_vm5, %v4307_v61, %v6460_v60  ;;  %v4309_v1 = vsel %vm4308_vm5, %v4306_v55, %v6459_v45  ;;  %v6550_v60 = vld [vmem:[%s7529_s27 + $0xa8] ss:$16 sps:$4 sm:$0xff]   ;;  %v6555_v45 = vld [vmem:[%s7529_s27 + $0xc4] ss:$16 sps:$4 sm:$0xff]   ;;  %v4452_v55 = vlaneseq }
 0x76b   : > { %v6463_v42 = vpop.permute.xlu0 %6462 }
 0x76c   : > { %v6465_v40 = vunpack.i.h.bf16 %v6463_v42  ;;  %v6464_v52 = vunpack.i.l.bf16 %v6463_v42  ;;  %v6549_v42 = vld [vmem:[%s7529_s27 + $0xa4] ss:$16 sps:$4 sm:$0xff]  }
 0x76d   : > { %4689 = vmatprep.subr.bf16.mxu1 %v6549_v42  ;;  %v6595_v42 = vld [vmem:[%s7531_s7 + $0x38] sm:$0xff]  }
 0x76e   : > { %v4313_v3 = vsel %vm4311_vm6, %v4310_v0, %v6465_v40  ;;  %v4312_v62 = vsel %vm4311_vm6, %v4309_v1, %v6464_v52  ;;  %4690 = vmatpush1.bf16.msra.mxu1 %v6547_v35  ;;  %v6561_v40 = vld [vmem:[%s7529_s27 + $0xe4] ss:$16 sps:$4 sm:$0xff]   ;;  %v6564_v52 = vld [vmem:[%s7529_s27 + $0xec] ss:$16 sps:$4 sm:$0xff]  }
 0x76f   : > { %v6468_v4 = vpop.permute.xlu1 %6467  ;;  %4691 = vmatprep.subr.bf16.mxu1 %v6555_v45 }
 0x770   : > { %v6470_v57 = vunpack.i.h.bf16 %v6468_v4  ;;  %v6469_v46 = vunpack.i.l.bf16 %v6468_v4  ;;  %v6558_v4 = vld [vmem:[%s7529_s27 + $0xcc] ss:$16 sps:$4 sm:$0xff]  }
 0x772   : > { %v4316_v8 = vsel %vm4314_vm7, %v4313_v3, %v6470_v57  ;;  %v4315_v19 = vsel %vm4314_vm7, %v4312_v62, %v6469_v46  ;;  %4692 = vmatpush1.bf16.msra.mxu1 %v6553_v47  ;;  %v8076_v3 = vshrl.u32 %v4452_v55, 7 }
 0x773   : > { %v6473_v50 = vpop.permute.xlu0 %6472  ;;  %4693 = vmatprep.subr.bf16.mxu1 %v6561_v40 }
 0x774   : > { %v6475_v6 = vunpack.i.h.bf16 %v6473_v50  ;;  %v6474_v7 = vunpack.i.l.bf16 %v6473_v50  ;;  %v8079_v62 = vsub.s32 0, %v8076_v3  ;;  %v4509_v35 = vsub.s32 2, %v8076_v3 }
 0x775   : > { %v4513_v45 = vsub.s32 3, %v8076_v3 }
 0x776   : > { %v4319_v59 = vsel %vm4317_vm8, %v4316_v8, %v6475_v6  ;;  %v4318_v21 = vsel %vm4317_vm8, %v4315_v19, %v6474_v7  ;;  %4694 = vmatpush1.bf16.msra.mxu1 %v6559_v5  ;;  %v4426_v6 = vld [vmem:[%s7550_s29] sm:$0x3]  ;;  %v8084_v8 = vsub.s32 1, %v8076_v3  ;;  %s8328_s29 = sld [smem:[#allocation39_spill]] (!%p5823_p0) }
 0x777   : > { %v4320_v12 = vpack.c.bf16 %v4319_v59, %v4318_v21  ;;  %v4455_v7 = vrot.slane %v4426_v6, %v8079_v62 }
 0x779   : > { %6243 = vmatmul.mubr.bf16.vlgmr.msra.gmra.mrb[28].mxu0 %v4320_v12 }
 0x77a   : > { %4754 = vmatprep.mubr.bf16.mxu0 %v7061_v32  ;;  %v6528_v32 = vld [vmem:[%s7529_s27 + $0x2c] ss:$16 sps:$4 sm:$0xff]   ;;  %4723 = vmatpush1.bf16.msra.mxu0 %v6520_v16 }
 0x77b   : > { %4724 = vmatprep.subr.bf16.mxu0 %v6528_v32  ;;  %v6569_v16 = vld [vmem:[%s7531_s7 + $0x48] sm:$0xff]  }
 0x77c   : > { %v6572_v32 = vld [vmem:[%s7531_s7 + $0x88] sm:$0xff]  }
 0x77e   : > { %4725 = vmatpush1.bf16.msra.mxu0 %v6526_v24  ;;  %v6574_v24 = vld [vmem:[%s7531_s7 + $0xd0] sm:$0xff]  }
 0x77f   : > { %4726 = vmatprep.subr.bf16.mxu0 %v6534_v30  ;;  %v6584_v30 = vld [vmem:[%s7531_s7 + $0xa0] sm:$0xff]  }
 0x782   : > { %4727 = vmatpush1.bf16.msra.mxu0 %v6532_v34  ;;  %v6586_v34 = vld [vmem:[%s7531_s7 + $0xe8] sm:$0xff]  }
 0x783   : > { %4728 = vmatprep.subr.bf16.mxu0 %v6540_v14  ;;  %v6588_v14 = vld [vmem:[%s7531_s7 + $0xa8] sm:$0xff]  }
 0x786   : > { %4729 = vmatpush1.bf16.msra.mxu0 %v6538_v37  ;;  %v6590_v37 = vld [vmem:[%s7531_s7 + $0xf0] sm:$0xff]  }
 0x787   : > { %4730 = vmatprep.subr.bf16.mxu0 %v6546_v51  ;;  %v6592_v51 = vld [vmem:[%s7531_s7 + $0xb0] sm:$0xff]  }
 0x78a   : > { %4731 = vmatpush1.bf16.msra.mxu0 %v6544_v41  ;;  %v6594_v41 = vld [vmem:[%s7531_s7 + $0xf8] sm:$0xff]  }
 0x78b   : > { %4732 = vmatprep.subr.bf16.mxu0 %v6552_v43  ;;  %v6596_v43 = vld [vmem:[%s7531_s7 + $0xb8] sm:$0xff]  }
 0x78e   : > { %4733 = vmatpush1.bf16.msra.mxu0 %v6550_v60  ;;  %v4497_v60 = vld [vmem:[%s7555_s12] sm:$0xf] }
 0x78f   : > { %4734 = vmatprep.subr.bf16.mxu0 %v6558_v4  ;;  %v4502_v4 = vrot.slane %v4497_v60, %v8079_v62  ;;  %v4510_v47 = vrot.slane %v4497_v60, %v4509_v35  ;;  %v4514_v40 = vrot.slane %v4497_v60, %v4513_v45 }
 0x792   : > { %4735 = vmatpush1.bf16.msra.mxu0 %v6556_v2  ;;  %v4506_v2 = vrot.slane %v4497_v60, %v8084_v8 }
 0x793   : > { %4736 = vmatprep.subr.bf16.mxu0 %v6564_v52 }
 0x796   : > { %4737 = vmatpush1.bf16.msra.mxu0 %v6562_v54 }
 0x84c   : > { %v4419_v28 = vpop.f32.mrb[28].mxu0 }
 0x84d   : > { %v4427_v10 = vadd.f32 %v6685_v44, %v4419_v28  ;;  %v6244_v22 = vpop.f32.mrb[29].mxu0  ;;  %v4461_v44 = vrot.slane %v4426_v6, %v8084_v8 }
 0x84e   : > { %v4422_v31 = vpop.f32.mrb[30].mxu0 }
 0x84f   : > { %v4428_v13 = vadd.f32 %v6686_v11, %v4422_v31  ;;  %4429 = vadd.xlane.f32.xlu1 %v4427_v10  ;;  %v6245_v48 = vpop.f32.mrb[31].mxu0 }
 0x850   : > { %v6566_v48 = vld [vmem:[%s7531_s7 + $0xc0] sm:$0xff]  }
 0x851   : > { %4431 = vadd.xlane.f32.xlu0 %v4428_v13  ;;  %6015 = vmatprep.subr.bf16.mxu0 %v6566_v48 }
 0x8dc   : > { %v4430_v9 = vpop.xlane.xlu1 %4429 }
 0x8dd   : > { %v4434_v20 = vmul.f32 0.0078125, %v4430_v9  ;;  %v6575_v9 = vld [vmem:[%s7531_s7 + $0x10] sm:$0xff]  }
 0x8de   : > { %v4432_v18 = vpop.xlane.xlu0 %4431 }
 0x8df   : > { %v8044_v25 = vsub.f32 %v4427_v10, %v4434_v20  ;;  %v4435_v23 = vmul.f32 0.0078125, %v4432_v18  ;;  %v6576_v20 = vld [vmem:[%s7531_s7 + $0x90] sm:$0xff]   ;;  %v6577_v18 = vld [vmem:[%s7531_s7 + $0x58] sm:$0xff]  }
 0x8e1   : > { %v8046_v38 = vsub.f32 %v4428_v13, %v4435_v23  ;;  %v4438_v53 = vmul.f32 %v8044_v25, %v8044_v25  ;;  %v6565_v13 = vld [vmem:[%s7531_s7 + $0x40] sm:$0xff]   ;;  %v6579_v23 = vld [vmem:[%s7531_s7 + $0x18] sm:$0xff]  }
 0x8e2   : > { %5993 = vmatprep.subr.bf16.mxu1 %v6565_v13 }
 0x8e3   : > { %4440 = vadd.xlane.f32.xlu0 %v4438_v53  ;;  %v4439_v27 = vmul.f32 %v8046_v38, %v8046_v38  ;;  %v6581_v53 = vld [vmem:[%s7531_s7 + $0x60] sm:$0xff]  }
 0x8e5   : > { %4442 = vadd.xlane.f32.xlu1 %v4439_v27  ;;  %v6582_v27 = vld [vmem:[%s7531_s7 + $0xe0] sm:$0xff]  }
 0x970   : > { %v4441_v57 = vpop.xlane.xlu0 %4440 }
 0x971   : > { %v4444_v46 = vmul.f32 0.0078125, %v4441_v57 }
 0x972   : > { %v4443_v61 = vpop.xlane.xlu1 %4442 }
 0x973   : > { %v4446_v0 = vadd.f32 1e-05, %v4444_v46  ;;  %v4445_v1 = vmul.f32 0.0078125, %v4443_v61 }
 0x975   : > { %6661 = vrsqrt.f32 %v4446_v0  ;;  %v4447_v50 = vadd.f32 1e-05, %v4445_v1 }
 0x977   : > { %6663 = vrsqrt.f32 %v4447_v50 }
 0x97f   : > { %v6662_v19 = vpop.eup %6661 }
 0x980   : > { %v4450_v59 = vmul.f32 %v6662_v19, %v8044_v25  ;;  %v6578_v25 = vld [vmem:[%s7531_s7 + $0xd8] sm:$0xff]  }
 0x981   : > { %v6664_v21 = vpop.eup %6663 }
 0x982   : > { %v4451_v12 = vmul.f32 %v6664_v21, %v8046_v38  ;;  %v4456_v28 = vmul.f32 %v4455_v7, %v4450_v59  ;;  %v6580_v38 = vld [vmem:[%s7531_s7 + $0x98] sm:$0xff]  }
 0x984   : > { %v4457_v10 = vmul.f32 %v4455_v7, %v4451_v12  ;;  %v8089_v22 = vadd.f32 %v4461_v44, %v4456_v28 }
 0x986   : > { %v8091_v31 = vadd.f32 %v4461_v44, %v4457_v10 }
 0x988   : > { %v4464_v11 = vpack.c.bf16 %v8091_v31, %v8089_v22 }
 0x98a   : > { %4712 = vmatmul.mubr.bf16.vlgmr.msra.gmra.mrb[44].mxu1 %v4464_v11  ;;  %4755 = vmatmul.mubr.bf16.vlgmr.msra.gmra.mrb[32].mxu0 %v4464_v11 }
 0x98b   : > { %5994 = vmatpush3.bf16.msra.mxu1 %v6567_v63  ;;  %6016 = vmatpush3.bf16.msra.mxu0 %v6568_v15 }
 0x98c   : > { %5995 = vmatprep.subr.bf16.mxu1 %v6569_v16  ;;  %6017 = vmatprep.subr.bf16.mxu0 %v6570_v58 }
 0x98f   : > { %5996 = vmatpush3.bf16.msra.mxu1 %v6571_v17  ;;  %6018 = vmatpush3.bf16.msra.mxu0 %v6572_v32 }
 0x990   : > { %5997 = vmatprep.subr.bf16.mxu1 %v6573_v49  ;;  %6019 = vmatprep.subr.bf16.mxu0 %v6574_v24 }
 0x993   : > { %5998 = vmatpush3.bf16.msra.mxu1 %v6575_v9  ;;  %6020 = vmatpush3.bf16.msra.mxu0 %v6576_v20 }
 0x994   : > { %5999 = vmatprep.subr.bf16.mxu1 %v6577_v18  ;;  %6021 = vmatprep.subr.bf16.mxu0 %v6578_v25 }
 0x997   : > { %6000 = vmatpush3.bf16.msra.mxu1 %v6579_v23  ;;  %6022 = vmatpush3.bf16.msra.mxu0 %v6580_v38 }
 0x998   : > { %6001 = vmatprep.subr.bf16.mxu1 %v6581_v53  ;;  %6023 = vmatprep.subr.bf16.mxu0 %v6582_v27 }
 0x99b   : > { %6002 = vmatpush3.bf16.msra.mxu1 %v6583_v29  ;;  %6024 = vmatpush3.bf16.msra.mxu0 %v6584_v30 }
 0x99c   : > { %6003 = vmatprep.subr.bf16.mxu1 %v6585_v33  ;;  %6025 = vmatprep.subr.bf16.mxu0 %v6586_v34 }
 0x99f   : > { %6004 = vmatpush3.bf16.msra.mxu1 %v6587_v26  ;;  %6026 = vmatpush3.bf16.msra.mxu0 %v6588_v14 }
 0x9a0   : > { %6005 = vmatprep.subr.bf16.mxu1 %v6589_v36  ;;  %6027 = vmatprep.subr.bf16.mxu0 %v6590_v37 }
 0x9a3   : > { %6006 = vmatpush3.bf16.msra.mxu1 %v6591_v39  ;;  %6028 = vmatpush3.bf16.msra.mxu0 %v6592_v51 }
 0x9a4   : > { %6007 = vmatprep.subr.bf16.mxu1 %v6593_v56  ;;  %6029 = vmatprep.subr.bf16.mxu0 %v6594_v41 }
 0x9a7   : > { %6008 = vmatpush3.bf16.msra.mxu1 %v6595_v42  ;;  %6030 = vmatpush3.bf16.msra.mxu0 %v6596_v43 }
 0xa5d   : > { %v4713_v52 = vpop.f32.mrb[44].mxu1  ;;  %v4756_v5 = vpop.f32.mrb[32].mxu0 }
 0xa5e   : > { %v8132_v54 = vadd.f32 %v4713_v52, %v4502_v4  ;;  %v8134_v57 = vadd.f32 %v4756_v5, %v4510_v47  ;;  %v4715_v46 = vpop.f32.mrb[45].mxu1  ;;  %v4758_v61 = vpop.f32.mrb[33].mxu0 }
 0xa5f   : > { %v8136_v55 = vadd.f32 %v4715_v46, %v4506_v2  ;;  %v8138_v0 = vadd.f32 %v4758_v61, %v4514_v40  ;;  %v4717_v1 = vpop.f32.mrb[46].mxu1  ;;  %v4760_v50 = vpop.f32.mrb[34].mxu0 }
 0xa60   : > { %v4765_v3 = vmul.f32 %v8132_v54, %v8132_v54  ;;  %v4767_v6 = vmul.f32 %v8134_v57, %v8134_v57  ;;  %v8144_v7 = vadd.f32 %v4717_v1, %v4502_v4  ;;  %v8146_v19 = vadd.f32 %v4760_v50, %v4510_v47  ;;  %v4719_v59 = vpop.f32.mrb[47].mxu1  ;;  %v4762_v21 = vpop.f32.mrb[35].mxu0 }
 0xa61   : > { %v4766_v12 = vmul.f32 %v8136_v55, %v8136_v55  ;;  %v4768_v28 = vmul.f32 %v8138_v0, %v8138_v0  ;;  %v8152_v44 = vadd.f32 %v4719_v59, %v4506_v2  ;;  %v8154_v10 = vadd.f32 %v4762_v21, %v4514_v40 }
 0xa62   : > { %v4773_v11 = vmul.f32 %v4765_v3, %v8132_v54  ;;  %v4775_v13 = vmul.f32 %v4767_v6, %v8134_v57  ;;  %v4769_v48 = vmul.f32 %v8144_v7, %v8144_v7  ;;  %v4771_v63 = vmul.f32 %v8146_v19, %v8146_v19 }
 0xa63   : > { %v4774_v15 = vmul.f32 %v4766_v12, %v8136_v55  ;;  %v4776_v16 = vmul.f32 %v4768_v28, %v8138_v0  ;;  %v4770_v58 = vmul.f32 %v8152_v44, %v8152_v44  ;;  %v4772_v17 = vmul.f32 %v8154_v10, %v8154_v10 }
 0xa64   : > { %v4781_v32 = vmul.f32 0.044715, %v4773_v11  ;;  %v4783_v49 = vmul.f32 0.044715, %v4775_v13  ;;  %v4777_v24 = vmul.f32 %v4769_v48, %v8144_v7  ;;  %v4779_v9 = vmul.f32 %v4771_v63, %v8146_v19 }
 0xa65   : > { %v4782_v20 = vmul.f32 0.044715, %v4774_v15  ;;  %v4784_v18 = vmul.f32 0.044715, %v4776_v16  ;;  %v4778_v25 = vmul.f32 %v4770_v58, %v8152_v44  ;;  %v4780_v23 = vmul.f32 %v4772_v17, %v8154_v10 }
 0xa66   : > { %v4789_v38 = vadd.f32 %v4781_v32, %v8132_v54  ;;  %v4791_v53 = vadd.f32 %v4783_v49, %v8134_v57  ;;  %v4785_v27 = vmul.f32 0.044715, %v4777_v24  ;;  %v4787_v29 = vmul.f32 0.044715, %v4779_v9 }
 0xa67   : > { %v4790_v30 = vadd.f32 %v4782_v20, %v8136_v55  ;;  %v4792_v33 = vadd.f32 %v4784_v18, %v8138_v0  ;;  %v4786_v34 = vmul.f32 0.044715, %v4778_v25  ;;  %v4788_v26 = vmul.f32 0.044715, %v4780_v23 }
 0xa68   : > { %v4797_v14 = vmul.f32 0.7978846, %v4789_v38  ;;  %v4799_v36 = vmul.f32 0.7978846, %v4791_v53  ;;  %v4793_v37 = vadd.f32 %v4785_v27, %v8144_v7  ;;  %v4795_v39 = vadd.f32 %v4787_v29, %v8146_v19 }
 0xa69   : > { %v4798_v51 = vmul.f32 0.7978846, %v4790_v30  ;;  %v4800_v56 = vmul.f32 0.7978846, %v4792_v33  ;;  %v4794_v41 = vadd.f32 %v4786_v34, %v8152_v44  ;;  %v4796_v42 = vadd.f32 %v4788_v26, %v8154_v10 }
 0xa6a   : > { %6665 = vtanh.f32 %v4797_v14  ;;  %v4801_v43 = vmul.f32 0.7978846, %v4793_v37  ;;  %v4803_v35 = vmul.f32 0.7978846, %v4795_v39 }
 0xa6b   : > { %6667 = vtanh.f32 %v4799_v36  ;;  %v4802_v60 = vmul.f32 0.7978846, %v4794_v41  ;;  %v4804_v45 = vmul.f32 0.7978846, %v4796_v42 }
 0xa6c   : > { %6669 = vtanh.f32 %v4798_v51 }
 0xa6d   : > { %6671 = vtanh.f32 %v4800_v56 }
 0xa6e   : > { %6673 = vtanh.f32 %v4801_v43 }
 0xa6f   : > { %6675 = vtanh.f32 %v4803_v35 }
 0xa70   : > { %6677 = vtanh.f32 %v4802_v60 }
 0xa71   : > { %6679 = vtanh.f32 %v4804_v45 }
 0xa74   : > { %v6666_v4 = vpop.eup %6665 }
 0xa75   : > { %v6668_v47 = vpop.eup %6667  ;;  %v4813_v2 = vadd.f32 1.0, %v6666_v4 }
 0xa76   : > { %v6670_v40 = vpop.eup %6669  ;;  %v4815_v52 = vadd.f32 1.0, %v6668_v47 }
 0xa77   : > { %v6672_v5 = vpop.eup %6671  ;;  %v4814_v46 = vadd.f32 1.0, %v6670_v40  ;;  %v4821_v3 = vmul.f32 0.5, %v4813_v2 }
 0xa78   : > { %v6674_v61 = vpop.eup %6673  ;;  %v4816_v1 = vadd.f32 1.0, %v6672_v5  ;;  %v4823_v21 = vmul.f32 0.5, %v4815_v52 }
 0xa79   : > { %v6676_v50 = vpop.eup %6675  ;;  %v4817_v6 = vadd.f32 1.0, %v6674_v61  ;;  %v4822_v48 = vmul.f32 0.5, %v4814_v46  ;;  %v4829_v58 = vmul.f32 %v4821_v3, %v8132_v54 }
 0xa7a   : > { %v6678_v59 = vpop.eup %6677  ;;  %v4819_v12 = vadd.f32 1.0, %v6676_v50  ;;  %v4824_v16 = vmul.f32 0.5, %v4816_v1  ;;  %v4831_v49 = vmul.f32 %v4823_v21, %v8134_v57 }
 0xa7b   : > { %v6680_v28 = vpop.eup %6679  ;;  %v4825_v11 = vmul.f32 0.5, %v4817_v6  ;;  %v4818_v13 = vadd.f32 1.0, %v6678_v59  ;;  %v4830_v20 = vmul.f32 %v4822_v48, %v8136_v55  ;;  %v5790_v55 = vld [vmem:[%s769_s4] ss:$0 sm:$0xff]  ;;  %v6687_v48 = vld [vmem:[#allocation17] sm:$0xff] (!%p5823_p0)  }
 0xa7c   : > { %v4827_v63 = vmul.f32 0.5, %v4819_v12  ;;  %v4820_v15 = vadd.f32 1.0, %v6680_v28  ;;  %v4832_v23 = vmul.f32 %v4824_v16, %v8138_v0 }
 0xa7d   : > { %v4833_v17 = vmul.f32 %v4825_v11, %v8144_v7  ;;  %v4826_v32 = vmul.f32 0.5, %v4818_v13 }
 0xa7e   : > { %v4835_v24 = vmul.f32 %v4827_v63, %v8146_v19  ;;  %v4828_v9 = vmul.f32 0.5, %v4820_v15  ;;  %v7069_v63 = vmov (!%p5823_p0), 0.0  }
 0xa7f   : > { %v4834_v18 = vmul.f32 %v4826_v32, %v8152_v44  ;;  %v4837_v25 = vpack.c.bf16 %v4833_v17, %v4829_v58  ;;  %6246 = vmatprep.subr.bf16.mxu0 (!%p5823_p0), %v7069_v63  ;;  %v6689_v17 = vld [vmem:[#allocation17 + $0x10] sm:$0xff] (!%p5823_p0)  }
 0xa80   : > { %v4836_v38 = vmul.f32 %v4828_v9, %v8154_v10  ;;  %v4839_v53 = vpack.c.bf16 %v4835_v24, %v4831_v49  ;;  %v6690_v24 = vld [vmem:[#allocation17 + $0x18] sm:$0xff] (!%p5823_p0)  }
 0xa81   : > { %v4838_v54 = vpack.c.bf16 %v4834_v18, %v4830_v20  ;;  %v6691_v18 = vld [vmem:[#allocation17 + $0x20] sm:$0xff] (!%p5823_p0)  }
 0xa82   : > { %v4840_v27 = vpack.c.bf16 %v4836_v38, %v4832_v23  ;;  %v6692_v38 = vld [vmem:[#allocation17 + $0x28] sm:$0xff] (!%p5823_p0)  }
 0xa83   : > { %5136 = vmatprep.mubr.bf16.mxu1 %v4838_v54 }
 0xa84   : > { %5177 = vmatprep.mubr.bf16.mxu0 %v4840_v27  ;;  %5137 = vmatmul.mubr.bf16.vlgmr.msra.gmra.mrb[48].mxu1 %v4837_v25  ;;  %v6693_v27 = vld [vmem:[#allocation17 + $0x30] sm:$0xff] (!%p5823_p0)  }
 0xa85   : > { %5178 = vmatmul.mubr.bf16.vlgmr.msra.gmra.mrb[36].mxu0 %v4839_v53 }
 0xa86   : > { %6247 = vmatpush3.bf16.msra.mxu0 (!%p5823_p0), %v6687_v48  ;;  %6262 = vmatprep.mubr.msk.bf16.mxu0 (!%p5823_p0), %vm7070_vm9, %v7069_v63 }
 0xa87   : > { %6248 = vmatprep.subr.bf16.mxu0 (!%p5823_p0), %v7069_v63 }
 0xb57   : > { %v6009_v57 = vpop.f32.mrb[48].mxu1 }
 0xb58   : > { %v6031_v7 = vpop.f32.mrb[36].mxu0  ;;  %v6010_v19 = vpop.f32.mrb[49].mxu1 }
 0xb59   : > { %v6011_v44 = vadd.f32 %v6010_v19, %v6009_v57  ;;  %v6032_v29 = vpop.f32.mrb[37].mxu0  ;;  %v6012_v0 = vpop.f32.mrb[50].mxu1 }
 0xb5a   : > { %v6033_v30 = vadd.f32 %v6032_v29, %v6031_v7  ;;  %v6034_v10 = vpop.f32.mrb[38].mxu0  ;;  %v6013_v33 = vpop.f32.mrb[51].mxu1  ;;  %v5824_v29 = vld [vmem:[%s8328_s29] ss:$0 sm:$0xff] (!%p5823_p0) }
 0xb5b   : > { %v5139_v34 = vadd.f32 %v6011_v44, %v5790_v55  ;;  %v6014_v26 = vadd.f32 %v6013_v33, %v6012_v0  ;;  %v6035_v14 = vpop.f32.mrb[39].mxu0 }
 0xb5c   : > { %v6036_v36 = vadd.f32 %v6035_v14, %v6034_v10 }
 0xb5d   : > { %v5180_v37 = vadd.f32 %v6033_v30, %v5139_v34  ;;  %v5142_v39 = vadd.f32 %v6014_v26, %v5790_v55  ;;  %v6694_v55 = vld [vmem:[#allocation17 + $0x38] sm:$0xff] (!%p5823_p0)  }
 0xb5f   : > { %v5183_v51 = vadd.f32 %v6036_v36, %v5142_v39  ;;  %v5187_v56 = vadd.f32 %v5180_v37, %v8089_v22 }
 0xb61   : > { %5189 = vadd.xlane.f32.xlu0 %v5187_v56  ;;  %v5188_v41 = vadd.f32 %v5183_v51, %v8091_v31  ;;  %v5186_v31 = vld [vmem:[%s7564_s0] sm:$0x3] }
 0xb62   : > { %v5214_v1 = vrot.slane %v5186_v31, %v8079_v62  ;;  %v5220_v3 = vrot.slane %v5186_v31, %v8084_v8  ;;  %v6688_v62 = vld [vmem:[#allocation17 + $0x8] sm:$0xff] (!%p5823_p0)  }
 0xb63   : > { %5191 = vadd.xlane.f32.xlu1 %v5188_v41  ;;  %6249 = vmatpush3.bf16.msra.mxu0 (!%p5823_p0), %v6688_v62 }
 0xb64   : > { %6250 = vmatprep.subr.bf16.mxu0 (!%p5823_p0), %v7069_v63 }
 0xb67   : > { %6251 = vmatpush3.bf16.msra.mxu0 (!%p5823_p0), %v6689_v17 }
 0xb68   : > { %6252 = vmatprep.subr.bf16.mxu0 (!%p5823_p0), %v7069_v63 }
 0xb6b   : > { %6253 = vmatpush3.bf16.msra.mxu0 (!%p5823_p0), %v6690_v24 }
 0xb6c   : > { %6254 = vmatprep.subr.bf16.mxu0 (!%p5823_p0), %v7069_v63 }
 0xb6f   : > { %6255 = vmatpush3.bf16.msra.mxu0 (!%p5823_p0), %v6691_v18 }
 0xb70   : > { %6256 = vmatprep.subr.bf16.mxu0 (!%p5823_p0), %v7069_v63 }
 0xb73   : > { %6257 = vmatpush3.bf16.msra.mxu0 (!%p5823_p0), %v6692_v38 }
 0xb74   : > { %6258 = vmatprep.subr.bf16.mxu0 (!%p5823_p0), %v7069_v63 }
 0xb77   : > { %6259 = vmatpush3.bf16.msra.mxu0 (!%p5823_p0), %v6693_v27 }
 0xb78   : > { %6260 = vmatprep.subr.bf16.mxu0 (!%p5823_p0), %v7069_v63 }
 0xb7b   : > { %6261 = vmatpush3.bf16.msra.mxu0 (!%p5823_p0), %v6694_v55 }
 0xbee   : > { %v5190_v42 = vpop.xlane.xlu0 %5189 }
 0xbef   : > { %v5193_v43 = vmul.f32 0.0078125, %v5190_v42 }
 0xbf0   : > { %v5192_v35 = vpop.xlane.xlu1 %5191 }
 0xbf1   : > { %v5195_v60 = vsub.f32 %v5187_v56, %v5193_v43  ;;  %v5194_v45 = vmul.f32 0.0078125, %v5192_v35 }
 0xbf3   : > { %v5196_v4 = vsub.f32 %v5188_v41, %v5194_v45  ;;  %v5197_v47 = vmul.f32 %v5195_v60, %v5195_v60 }
 0xbf5   : > { %5199 = vadd.xlane.f32.xlu0 %v5197_v47  ;;  %v5198_v2 = vmul.f32 %v5196_v4, %v5196_v4 }
 0xbf7   : > { %5201 = vadd.xlane.f32.xlu1 %v5198_v2 }
 0xc82   : > { %v5200_v40 = vpop.xlane.xlu0 %5199 }
 0xc83   : > { %v5203_v52 = vmul.f32 0.0078125, %v5200_v40 }
 0xc84   : > { %v5202_v5 = vpop.xlane.xlu1 %5201 }
 0xc85   : > { %v5205_v46 = vadd.f32 1e-05, %v5203_v52  ;;  %v5204_v22 = vmul.f32 0.0078125, %v5202_v5 }
 0xc87   : > { %6681 = vrsqrt.f32 %v5205_v46  ;;  %v5206_v61 = vadd.f32 1e-05, %v5204_v22 }
 0xc89   : > { %6683 = vrsqrt.f32 %v5206_v61 }
 0xc91   : > { %v6682_v50 = vpop.eup %6681 }
 0xc92   : > { %v5209_v6 = vmul.f32 %v6682_v50, %v5195_v60 }
 0xc93   : > { %v6684_v59 = vpop.eup %6683 }
 0xc94   : > { %v5215_v21 = vmul.f32 %v5214_v1, %v5209_v6  ;;  %v5210_v12 = vmul.f32 %v6684_v59, %v5196_v4  ;;  %5228 = sbr.rel (%p5823_p0) target bundleno = 3458 (0xd82), region = 124 }
 0xc96   : > { %v5221_v28 = vadd.f32 %v5220_v3, %v5215_v21  ;;  %v5216_v11 = vmul.f32 %v5214_v1, %v5210_v12 }
 0xc98   : > { %5223 = vst [vmem:[#allocation2] sm:$0xff] %v5221_v28  ;;  %v5222_v13 = vadd.f32 %v5220_v3, %v5216_v11  ;;  %v5229_v8 = vrot.slane (!%p5823_p0), %v5221_v28, 4 }
 0xc9a   : > { %5224 = vst [vmem:[#allocation2 + $0x8] sm:$0xff] %v5222_v13  ;;  %v5235_v15 = vrot.slane (!%p5823_p0), %v5222_v13, 4  ;;  %v5230_v16 = vadd.f32 (!%p5823_p0), %v5229_v8, %v5221_v28 }
 0xc9c   : > { %v5236_v58 = vadd.f32 %v5235_v15, %v5222_v13  ;;  %v5231_v32 = vrot.slane %v5230_v16, 2 }
 0xc9e   : > { %v5237_v49 = vrot.slane %v5236_v58, 2  ;;  %v5232_v9 = vadd.f32 %v5231_v32, %v5230_v16 }
 0xca0   : > { %v5238_v20 = vadd.f32 %v5237_v49, %v5236_v58  ;;  %v5233_v25 = vrot.slane %v5232_v9, 1 }
 0xca2   : > { %v5239_v23 = vrot.slane %v5238_v20, 1  ;;  %v5234_v53 = vadd.f32 %v5233_v25, %v5232_v9 }
 0xca4   : > { %v5240_v54 = vadd.f32 %v5239_v23, %v5238_v20  ;;  %v5242_v57 = vmul.f32 0.125, %v5234_v53 }
 0xca6   : > { %v5243_v7 = vmul.f32 0.125, %v5240_v54 }
 0xca8   : > { %v5247_v19 = vsel %vm5246_vm10, %v5243_v7, %v5242_v57 }
 0xca9   : > { %v5834_v44 = vpack.c.bf16 %v5247_v19, %v5247_v19 }
 0xcab   : > { %6263 = vmatmul.mubr.msk.bf16.vlgmr.msra.gmra.mrb[0].mxu0 %vm5833_vm12, %v5834_v44 }
 0xd7e   : > { %v5357_v0 = vpop.f32.mrb[0].mxu0 }
 0xd7f   : > { %v5358_v30 = vadd.f32 %v5824_v29, %v5357_v0  ;;  %v6264_v10 = vpop.f32.mrb[1].mxu0 }
 0xd80   : > { %v5360_v33 = vpop.f32.mrb[2].mxu0 }
 0xd81   : > { %5363 = vst [vmem:[#allocation18] sm:$0xff] %v5358_v30  ;;  %v6265_v34 = vpop.f32.mrb[3].mxu0 }
 0xd82 PF: > { %p6334_p8 = scmp.eq.s32.totalorder %s7171_s22, 2  ;;  %s7071_s12 = smov [#allocation18]  }
 0xd83   : > { %s5371_s26 = sshll.u32 %s7071_s12, 4  ;;  %s5372_s26 = int_to_ptr.vmem [resolvable:$true] %s5371_s26 }
 0xd84   : > { %s6957_s1 = scalar_lea.vmem %s5372_s26, 128  ;;  %p6964_p10 = scmp.lt.s32.totalorder %s5372_s26, %s5372_s26 }
 0xd85   : > { %p6958_p1 = scmp.ne.s32.totalorder %s5372_s26, %s6957_s1  ;;  %p6965_p13 = scmp.lt.s32.totalorder %s6957_s1, %s6957_s1 }
 0xd87   : > { %p6959_p4 = pnand %p6958_p1, %p6334_p8  ;;  %p6966_p11 = por %p6965_p13, %p6964_p10 }
 0xd89   : > { %p6960_p5 = pneg %p6959_p4 }
 0xd8b   : > { %p6967_p2 = pnand %p6966_p11, %p6960_p5 }
 0xd8d   : > { %6970 = shalt.err (!%p6967_p2)
}
 0xd8e   : > { %s8329_s16 = sld [smem:[#allocation40_spill]] }
 0xd94   : > { %s6971_s11 = scalar_lea.hbm %s8329_s16, 128 }
 0xd95   : > { %p6972_p6 = scmp.ne.s32.totalorder %s8329_s16, %s6971_s11  ;;  %p6977_p3 = scmp.lt.u32.totalorder %s6971_s11, %s8329_s16 }
 0xd97   : > { %p6973_p9 = pnand %p6972_p6, %p6334_p8 }
 0xd99   : > { %p6974_p12 = pneg %p6973_p9 }
 0xd9b   : > { %p6979_p7 = pnand %p6977_p3, %p6974_p12 }
 0xd9d   : > { %6982 = shalt.err (!%p6979_p7)
}
 0xd9e   : > { %6293 = dma.vmem_to_hbm [thread:$0]  (%p6334_p8), %s5372_s26, 128, %s8329_s16, [#allocation5]  }
 0xd9f   : > { %7024 = dma.done.wait (%p6334_p8), [#allocation5], 128  }
 0xda0   : > { %7026 = vsyncadd (%p6334_p8), [#allocation5], 4294967168 }
 0xda1 PF: > { %s8330_s21 = sld [smem:[#allocation28_spill]]  ;;  %s8331_s28 = sld [smem:[#allocation26_spill]] }
 0xda2   : > { %s8332_s20 = sld [smem:[#allocation29_spill]]  ;;  %s8333_s18 = smov %s7033_s19 }
 0xda7   : > { %p34_p0 = scmp.ge.s32.totalorder %s8330_s21, 5   ;;  %s8334_s19 = smov %s8331_s28 }
 0xda9   :  { %36 = sbr.rel (!%p34_p0) target bundleno = 22 (0x16), region = 202 }
 0xdb0   :  { %5384 = vsyncpa [#allocation4], 1 }
 0xdb1   :  { %5386 = vsyncpa [#allocation4 + $0x1], 1 }
 0xdb2   :  { %5387 = vsyncpa [#allocation7], 1 }
 0xdb3   :  { %5388 = vsyncpa [#allocation10], 1 }
 0xdb4   :  { %5390 = vsyncpa [#allocation10 + $0x1], 1 }
 0xdb5   :  { %5391 = vsyncpa [#allocation13], 1 }
 0xdb6   :  { %5393 = vsyncpa [#allocation13 + $0x1], 1 }
 0xdb7   :  { %5394 = vsyncpa [#allocation16], 1 }
 0xdb8   :  { %5396 = vsyncpa [#allocation16 + $0x1], 1 }
 0xdb9   :  { %5397 = vsyncpa [#allocation5], 1 }
 0xdba   :  { %5399 = vsyncpa [#allocation5 + $0x1], 1 }

</bundles_post_ra>
